<compile_context>
chip_gen: v5e
topology: v5e:2x2
jax: 0.10.0
libtpu: 0.0.40
codegen_flags: <defaults>
</compile_context>

<pallas_src>
import functools
import math

import jax
import jax.numpy as jnp
from jax.experimental import pallas as pl
from jax.experimental.pallas import tpu as pltpu

_BF16 = jnp.bfloat16
_F32 = jnp.float32


# ----------------------------------------------------------------------------
# in-kernel building blocks (plain arrays, one batch element)
# ----------------------------------------------------------------------------
def _layer_norm(x, gamma, beta, eps):
    mean = jnp.mean(x, axis=-1, keepdims=True)
    var = jnp.mean((x - mean) ** 2, axis=-1, keepdims=True)
    return (x - mean) * jax.lax.rsqrt(var + eps) * gamma + beta


def _split_heads(x, n_heads, d):
    """(S, H*d) f32 -> (H, S, d) bf16 head-major."""
    s = x.shape[0]
    return jnp.transpose(x.reshape(s, n_heads, d), (1, 0, 2)).astype(_BF16)


def _attention(qh, kh, vh, mask, wo_h, bo, resid, gamma, beta, *, eps,
               return_attn):
    """Scaled dot-product attention (scale pre-folded into qh), output proj,
    residual and LayerNorm.

    qh: (H, Sq, dk) bf16, kh: (H, Sk, dk) bf16, vh: (H, Sk, dv) bf16,
    mask: (Sq, Sk) (>0 means masked), wo_h: (H, dv, Dm) bf16.
    Returns (out (Sq, Dm) f32, attn (H, Sq, Sk) f32 or None).
    """
    scores = jnp.einsum("hqd,hkd->hqk", qh, kh,
                        preferred_element_type=_F32)             # (H, Sq, Sk)
    scores = jnp.where(mask[None, :, :] > 0, _F32(-1e9), scores)

    m = jnp.max(scores, axis=-1, keepdims=True)
    e = jnp.exp(scores - m)
    denom = jnp.sum(e, axis=-1, keepdims=True)
    inv = pl.reciprocal(denom, approx=True)                      # EUP slot

    if return_attn:
        attn = e * inv                                           # (H, Sq, Sk)
        ctx = jnp.einsum("hqk,hkd->hqd", attn.astype(_BF16), vh,
                         preferred_element_type=_F32)            # (H, Sq, dv)
    else:
        attn = None
        ctx = jnp.einsum("hqk,hkd->hqd", e.astype(_BF16), vh,
                         preferred_element_type=_F32)
        ctx = ctx * inv                                          # scale small tensor

    # head-batched output projection + sum over heads: no transpose of ctx.
    per_head = jnp.einsum("hqd,hdm->hqm", ctx.astype(_BF16), wo_h,
                          preferred_element_type=_F32)           # (H, Sq, Dm)
    out = jnp.sum(per_head, axis=0) + bo + resid
    return _layer_norm(out, gamma, beta, eps), attn


def _ffn(x, w1, b1, w2, b2, gamma, beta, *, eps):
    h = jnp.dot(x.astype(_BF16), w1, preferred_element_type=_F32) + b1
    h = jnp.maximum(h, 0.0)
    y = jnp.dot(h.astype(_BF16), w2, preferred_element_type=_F32) + b2
    return _layer_norm(y + x, gamma, beta, eps)


# ----------------------------------------------------------------------------
# fused decoder-layer kernel (one batch element per grid step)
# ----------------------------------------------------------------------------
def decoder_layer_kernel(*refs, n_heads, d_k, d_v, eps, return_attn):
    dec_ref, enc_ref, smask_ref, xmask_ref = refs[0:4]
    (s_wqkv, s_bqkv, s_wo, s_bo, s_g, s_be,
     c_wq, c_bq, c_wkv, c_bkv, c_wo, c_bo, c_g, c_be,
     f_w1, f_b1, f_w2, f_b2, f_g, f_be) = refs[4:24]
    if return_attn:
        out_ref, sattn_ref, xattn_ref = refs[24:27]
    else:
        out_ref = refs[24]

    hdk = n_heads * d_k
    hdv = n_heads * d_v

    x = dec_ref[0]                                  # (Sd, Dm) f32, DMA'd once
    enc = enc_ref[0]                                # (Se, Dm) f32

    # --- masked self-attention (fused QKV projection, scale folded into wq) --
    qkv = jnp.dot(x.astype(_BF16), s_wqkv[...],
                  preferred_element_type=_F32) + s_bqkv[0]       # (Sd, 2*hdk+hdv)
    qh = _split_heads(qkv[:, :hdk], n_heads, d_k)
    kh = _split_heads(qkv[:, hdk:2 * hdk], n_heads, d_k)
    vh = _split_heads(qkv[:, 2 * hdk:2 * hdk + hdv], n_heads, d_v)
    h1, self_attn = _attention(qh, kh, vh, smask_ref[0], s_wo[...], s_bo[0],
                               x, s_g[0], s_be[0], eps=eps,
                               return_attn=return_attn)

    # --- encoder-decoder attention (fused KV projection) ---------------------
    q = jnp.dot(h1.astype(_BF16), c_wq[...],
                preferred_element_type=_F32) + c_bq[0]           # (Sd, hdk)
    kv = jnp.dot(enc.astype(_BF16), c_wkv[...],
                 preferred_element_type=_F32) + c_bkv[0]         # (Se, hdk+hdv)
    qh = _split_heads(q, n_heads, d_k)
    kh = _split_heads(kv[:, :hdk], n_heads, d_k)
    vh = _split_heads(kv[:, hdk:hdk + hdv], n_heads, d_v)
    h2, enc_attn = _attention(qh, kh, vh, xmask_ref[0], c_wo[...], c_bo[0],
                              h1, c_g[0], c_be[0], eps=eps,
                              return_attn=return_attn)

    # --- position-wise FFN ----------------------------------------------------
    out = _ffn(h2, f_w1[...], f_b1[0], f_w2[...], f_b2[0], f_g[0], f_be[0],
               eps=eps)
    out_ref[0] = out.astype(out_ref.dtype)
    if return_attn:
        sattn_ref[0] = self_attn.astype(sattn_ref.dtype)         # bf16 writeback
        xattn_ref[0] = enc_attn.astype(xattn_ref.dtype)


# ----------------------------------------------------------------------------
# host-side helpers
# ----------------------------------------------------------------------------
def _prepare_params(self_params, enc_params, ffn_params, *, scale, n_heads,
                    d_v, d_model):
    """Fuse/reshape/cast parameters: weight matrices -> bf16 for the MXU,
    biases / LN params -> f32; 1/sqrt(d_k) folded into wq & bq."""
    s_wq, s_bq, s_wk, s_bk, s_wv, s_bv, s_wo, s_bo, s_g, s_be = self_params
    c_wq, c_bq, c_wk, c_bk, c_wv, c_bv, c_wo, c_bo, c_g, c_be = enc_params
    f_w1, f_b1, f_w2, f_b2, f_g, f_be = ffn_params
    scale = jnp.float32(scale)
    return (
        # self-attention: fused [wq*scale | wk | wv], head-major wo
        jnp.concatenate([s_wq * scale, s_wk, s_wv], axis=1).astype(_BF16),
        jnp.concatenate([s_bq * scale, s_bk, s_bv], axis=1).astype(_F32),
        s_wo.reshape(n_heads, d_v, d_model).astype(_BF16),
        s_bo.astype(_F32), s_g.astype(_F32), s_be.astype(_F32),
        # cross-attention: wq*scale separate (query from decoder stream),
        # fused [wk | wv] (keys/values from encoder stream), head-major wo
        (c_wq * scale).astype(_BF16),
        (c_bq * scale).astype(_F32),
        jnp.concatenate([c_wk, c_wv], axis=1).astype(_BF16),
        jnp.concatenate([c_bk, c_bv], axis=1).astype(_F32),
        c_wo.reshape(n_heads, d_v, d_model).astype(_BF16),
        c_bo.astype(_F32), c_g.astype(_F32), c_be.astype(_F32),
        # FFN
        f_w1.astype(_BF16), f_b1.astype(_F32),
        f_w2.astype(_BF16), f_b2.astype(_F32),
        f_g.astype(_F32), f_be.astype(_F32),
    )


def _pick_vmem_limit():
    """Generation-aware scoped VMEM limit (~half of physical VMEM)."""
    try:
        cap = int(pltpu.get_tpu_info().vmem_capacity_bytes)
    except Exception:
        cap = 64 * 1024 * 1024                     # conservative fallback
    return int(min(max(cap // 2, 32 * 1024 * 1024), 96 * 1024 * 1024))


def _cost_estimate(B, Sd, Se, Dm, d_ff, H, d_k, d_v, in_arrays, out_shapes):
    hdk, hdv = H * d_k, H * d_v
    flops_self = (2 * Sd * Dm * (2 * hdk + hdv) + 2 * H * Sd * Sd * d_k
                  + 2 * H * Sd * Sd * d_v + 2 * Sd * hdv * Dm)
    flops_cross = (2 * Sd * Dm * hdk + 2 * Se * Dm * (hdk + hdv)
                   + 2 * H * Sd * Se * d_k + 2 * H * Sd * Se * d_v
                   + 2 * Sd * hdv * Dm)
    flops_ffn = 2 * 2 * Sd * Dm * d_ff
    flops = B * (flops_self + flops_cross + flops_ffn)
    transcendentals = B * (H * Sd * (Sd + Se) + 2 * H * Sd + 3 * Sd)
    bytes_in = sum(int(a.size) * a.dtype.itemsize for a in in_arrays)
    bytes_out = sum(int(math.prod(s.shape)) * s.dtype.itemsize for s in out_shapes)
    return pl.CostEstimate(flops=int(flops),
                           transcendentals=int(transcendentals),
                           bytes_accessed=int(bytes_in + bytes_out))


def decoder_layer(dec_inputs, enc_outputs, self_attn_mask, enc_attn_mask,
                  self_params, enc_params, ffn_params, *,
                  n_heads, d_k, d_v, return_attn=True):
    B, Sd, Dm = dec_inputs.shape
    Se = enc_outputs.shape[1]
    d_ff = ffn_params[0].shape[1]
    scale = 1.0 / math.sqrt(d_k)

    # masks travel as raw 0/1 bf16 (half the DMA of an f32 additive bias);
    # the masked_fill-style select happens in-kernel.
    smask = self_attn_mask.astype(_BF16)
    xmask = enc_attn_mask.astype(_BF16)

    params = _prepare_params(self_params, enc_params, ffn_params, scale=scale,
                             n_heads=n_heads, d_v=d_v, d_model=Dm)

    act_specs = [
        pl.BlockSpec((1, Sd, Dm), lambda b: (b, 0, 0)),
        pl.BlockSpec((1, Se, Dm), lambda b: (b, 0, 0)),
        pl.BlockSpec((1, Sd, Sd), lambda b: (b, 0, 0)),
        pl.BlockSpec((1, Sd, Se), lambda b: (b, 0, 0)),
    ]

    out_shapes = [jax.ShapeDtypeStruct((B, Sd, Dm), jnp.float32)]
    out_specs = [pl.BlockSpec((1, Sd, Dm), lambda b: (b, 0, 0))]
    if return_attn:
        # attention probabilities written back in bf16 (halves the dominant
        # output traffic; module still returns them).
        out_shapes += [
            jax.ShapeDtypeStruct((B, n_heads, Sd, Sd), jnp.bfloat16),
            jax.ShapeDtypeStruct((B, n_heads, Sd, Se), jnp.bfloat16),
        ]
        out_specs += [
            pl.BlockSpec((1, n_heads, Sd, Sd), lambda b: (b, 0, 0, 0)),
            pl.BlockSpec((1, n_heads, Sd, Se), lambda b: (b, 0, 0, 0)),
        ]

    kernel = functools.partial(
        decoder_layer_kernel, n_heads=n_heads, d_k=d_k, d_v=d_v, eps=1e-5,
        return_attn=return_attn)

    cost = _cost_estimate(B, Sd, Se, Dm, d_ff, n_heads, d_k, d_v,
                          [dec_inputs, enc_outputs, smask, xmask, *params],
                          out_shapes)
    compiler_params = pltpu.CompilerParams(
        dimension_semantics=("parallel",),          # batch axis -> megacore / 2 TC
        vmem_limit_bytes=_pick_vmem_limit())

    def const_map(ndim):
        zeros = (0,) * ndim
        return lambda b: zeros

    def build(single_buffer_params):
        param_specs = []
        for p in params:
            kw = {"pipeline_mode": pl.Buffered(1)} if single_buffer_params else {}
            param_specs.append(pl.BlockSpec(p.shape, const_map(p.ndim), **kw))
        return pl.pallas_call(
            kernel,
            out_shape=tuple(out_shapes),
            grid=(B,),
            in_specs=act_specs + param_specs,
            out_specs=tuple(out_specs),
            compiler_params=compiler_params,
            cost_estimate=cost,
        )

    args = (dec_inputs, enc_outputs, smask, xmask, *params)
    try:
        # constant-index weights never re-DMA: single-buffer them (VMEM savings)
        outs = jax.block_until_ready(build(True)(*args))
    except Exception:
        # pipeline_mode unsupported on this jax version -> default buffering
        outs = jax.block_until_ready(build(False)(*args))

    if return_attn:
        return outs[0], outs[1], outs[2]
    return outs[0], None, None


# ----------------------------------------------------------------------------
# parameter init (PyTorch-like layout: separate per-projection weights)
# ----------------------------------------------------------------------------
def init_mha_params(key, d_model, d_k, d_v, n_heads):
    ks = jax.random.split(key, 8)
    s = 0.05
    wq = s * jax.random.normal(ks[0], (d_model, n_heads * d_k), jnp.float32)
    bq = s * jax.random.normal(ks[1], (1, n_heads * d_k), jnp.float32)
    wk = s * jax.random.normal(ks[2], (d_model, n_heads * d_k), jnp.float32)
    bk = s * jax.random.normal(ks[3], (1, n_heads * d_k), jnp.float32)
    wv = s * jax.random.normal(ks[4], (d_model, n_heads * d_v), jnp.float32)
    bv = s * jax.random.normal(ks[5], (1, n_heads * d_v), jnp.float32)
    wo = s * jax.random.normal(ks[6], (n_heads * d_v, d_model), jnp.float32)
    bo = s * jax.random.normal(ks[7], (1, d_model), jnp.float32)
    gamma = jnp.ones((1, d_model), jnp.float32)
    beta = jnp.zeros((1, d_model), jnp.float32)
    return (wq, bq, wk, bk, wv, bv, wo, bo, gamma, beta)


def init_ffn_params(key, d_model, d_ff):
    ks = jax.random.split(key, 4)
    s = 0.05
    w1 = s * jax.random.normal(ks[0], (d_model, d_ff), jnp.float32)
    b1 = s * jax.random.normal(ks[1], (1, d_ff), jnp.float32)
    w2 = s * jax.random.normal(ks[2], (d_ff, d_model), jnp.float32)
    b2 = s * jax.random.normal(ks[3], (1, d_model), jnp.float32)
    gamma = jnp.ones((1, d_model), jnp.float32)
    beta = jnp.zeros((1, d_model), jnp.float32)
    return (w1, b1, w2, b2, gamma, beta)


# ----------------------------------------------------------------------------
# pure-JAX reference (same effective weights as the kernel) for correctness
# ----------------------------------------------------------------------------
def _bf16_round(w):
    return w.astype(jnp.bfloat16).astype(jnp.float32)


def _ref_mha(xq, xkv, mask, params, n_heads, d_k, d_v):
    """wq/bq arrive pre-scaled by 1/sqrt(d_k); weight matrices bf16-rounded."""
    wq, bq, wk, bk, wv, bv, wo, bo, g, be = params
    B, Sq, _ = xq.shape
    Sk = xkv.shape[1]
    q = (xq @ wq + bq[0]).reshape(B, Sq, n_heads, d_k).transpose(0, 2, 1, 3)
    k = (xkv @ wk + bk[0]).reshape(B, Sk, n_heads, d_k).transpose(0, 2, 1, 3)
    v = (xkv @ wv + bv[0]).reshape(B, Sk, n_heads, d_v).transpose(0, 2, 1, 3)
    scores = jnp.einsum("bhqd,bhkd->bhqk", q, k)
    scores = jnp.where(mask[:, None, :, :] > 0, -1e9, scores)
    attn = jax.nn.softmax(scores, axis=-1)
    ctx = jnp.einsum("bhqk,bhkd->bhqd", attn, v).transpose(0, 2, 1, 3)
    ctx = ctx.reshape(B, Sq, n_heads * d_v)
    out = ctx @ wo + bo[0] + xq
    mean = out.mean(-1, keepdims=True)
    var = ((out - mean) ** 2).mean(-1, keepdims=True)
    return (out - mean) * jax.lax.rsqrt(var + 1e-5) * g[0] + be[0], attn


def _ref_ffn(x, params):
    w1, b1, w2, b2, g, be = params
    y = jnp.maximum(x @ w1 + b1[0], 0.0) @ w2 + b2[0] + x
    mean = y.mean(-1, keepdims=True)
    var = ((y - mean) ** 2).mean(-1, keepdims=True)
    return (y - mean) * jax.lax.rsqrt(var + 1e-5) * g[0] + be[0]


if __name__ == "__main__":
    # Small shapes: batch=2, dec_seq=8, enc_seq=8, d_model=32, d_ff=64,
    # n_heads=4, d_k=d_v=8.  (Toy dims -> kernel is overhead/layout bound;
    # realistic perf conclusions need Dm>=512, d_k>=64, Sd>=128.)
    B, Sd, Se = 2, 8, 8
    d_model, d_ff, n_heads, d_k, d_v = 32, 64, 4, 8, 8

    root = jax.random.PRNGKey(0)
    k_in, k_enc, k_p1, k_p2, k_p3 = jax.random.split(root, 5)

    dec_inputs = jax.random.normal(k_in, (B, Sd, d_model), jnp.float32)
    enc_outputs = jax.random.normal(k_enc, (B, Se, d_model), jnp.float32)

    # causal self-attention mask (1.0 = masked); no masking for enc-dec attn
    causal = jnp.triu(jnp.ones((Sd, Sd), jnp.float32), k=1)
    self_attn_mask = jnp.broadcast_to(causal, (B, Sd, Sd))
    enc_attn_mask = jnp.zeros((B, Sd, Se), jnp.float32)

    self_params = init_mha_params(k_p1, d_model, d_k, d_v, n_heads)
    enc_params = init_mha_params(k_p2, d_model, d_k, d_v, n_heads)
    ffn_params = init_ffn_params(k_p3, d_model, d_ff)

    dec_out, self_attn, enc_attn = decoder_layer(
        dec_inputs, enc_outputs, self_attn_mask, enc_attn_mask,
        self_params, enc_params, ffn_params,
        n_heads=n_heads, d_k=d_k, d_v=d_v, return_attn=True)
    jax.block_until_ready((dec_out, self_attn, enc_attn))

    # perf path: no attention-probability writeback
    dec_out_fast, _, _ = decoder_layer(
        dec_inputs, enc_outputs, self_attn_mask, enc_attn_mask,
        self_params, enc_params, ffn_params,
        n_heads=n_heads, d_k=d_k, d_v=d_v, return_attn=False)
    jax.block_until_ready(dec_out_fast)

    # reference with the same effective (bf16-rounded, scale-folded) weights
    scale = 1.0 / math.sqrt(d_k)

    def eff_mha(p):
        wq, bq, wk, bk, wv, bv, wo, bo, g, be = p
        return (_bf16_round(wq * scale), bq * scale, _bf16_round(wk), bk,
                _bf16_round(wv), bv, _bf16_round(wo), bo, g, be)

    def eff_ffn(p):
        w1, b1, w2, b2, g, be = p
        return (_bf16_round(w1), b1, _bf16_round(w2), b2, g, be)

    sp_r, cp_r, fp_r = eff_mha(self_params), eff_mha(enc_params), eff_ffn(ffn_params)
    r1, ra1 = _ref_mha(dec_inputs, dec_inputs, self_attn_mask, sp_r,
                       n_heads, d_k, d_v)
    r2, ra2 = _ref_mha(r1, enc_outputs, enc_attn_mask, cp_r,
                       n_heads, d_k, d_v)
    r3 = _ref_ffn(r2, fp_r)

    assert dec_out.shape == (B, Sd, d_model)
    assert self_attn.shape == (B, n_heads, Sd, Sd)
    assert enc_attn.shape == (B, n_heads, Sd, Se)
    assert jnp.allclose(self_attn.astype(jnp.float32), ra1, atol=2e-2, rtol=2e-2)
    assert jnp.allclose(enc_attn.astype(jnp.float32), ra2, atol=2e-2, rtol=2e-2)
    assert jnp.allclose(dec_out, r3, atol=3e-2, rtol=3e-2)
    assert jnp.allclose(dec_out_fast, r3, atol=3e-2, rtol=3e-2)

    print("KERNEL_OK")
</pallas_src>

<mosaic_0001>
module attributes {stable_mosaic.version = 11 : i64} {
  func.func @decoder_layer_kernel(%arg0: i32, %arg1: memref<1x8x32xf32, #tpu.memory_space<vmem>>, %arg2: memref<1x8x32xf32, #tpu.memory_space<vmem>>, %arg3: memref<1x8x8xbf16, #tpu.memory_space<vmem>>, %arg4: memref<1x8x8xbf16, #tpu.memory_space<vmem>>, %arg5: memref<32x96xbf16, #tpu.memory_space<vmem>>, %arg6: memref<1x96xf32, #tpu.memory_space<vmem>>, %arg7: memref<4x8x32xbf16, #tpu.memory_space<vmem>>, %arg8: memref<1x32xf32, #tpu.memory_space<vmem>>, %arg9: memref<1x32xf32, #tpu.memory_space<vmem>>, %arg10: memref<1x32xf32, #tpu.memory_space<vmem>>, %arg11: memref<32x32xbf16, #tpu.memory_space<vmem>>, %arg12: memref<1x32xf32, #tpu.memory_space<vmem>>, %arg13: memref<32x64xbf16, #tpu.memory_space<vmem>>, %arg14: memref<1x64xf32, #tpu.memory_space<vmem>>, %arg15: memref<4x8x32xbf16, #tpu.memory_space<vmem>>, %arg16: memref<1x32xf32, #tpu.memory_space<vmem>>, %arg17: memref<1x32xf32, #tpu.memory_space<vmem>>, %arg18: memref<1x32xf32, #tpu.memory_space<vmem>>, %arg19: memref<32x64xbf16, #tpu.memory_space<vmem>>, %arg20: memref<1x64xf32, #tpu.memory_space<vmem>>, %arg21: memref<64x32xbf16, #tpu.memory_space<vmem>>, %arg22: memref<1x32xf32, #tpu.memory_space<vmem>>, %arg23: memref<1x32xf32, #tpu.memory_space<vmem>>, %arg24: memref<1x32xf32, #tpu.memory_space<vmem>>, %arg25: memref<1x8x32xf32, #tpu.memory_space<vmem>>, %arg26: memref<1x4x8x8xbf16, #tpu.memory_space<vmem>>, %arg27: memref<1x4x8x8xbf16, #tpu.memory_space<vmem>>) attributes {dimension_semantics = [#tpu.dimension_semantics<parallel>], iteration_bounds = array<i64: 2>, scalar_prefetch = 0 : i64, scratch_operands = 0 : i64, tpu.core_type = #tpu.core_type<tc>, window_params = [{transform_indices = @transform_0, window_bounds = array<i64: 1, 8, 32>}, {transform_indices = @transform_1, window_bounds = array<i64: 1, 8, 32>}, {transform_indices = @transform_2, window_bounds = array<i64: 1, 8, 8>}, {transform_indices = @transform_3, window_bounds = array<i64: 1, 8, 8>}, {pipeline_mode = #tpu.pipeline_mode<synchronous>, transform_indices = @transform_4, window_bounds = array<i64: 32, 96>}, {pipeline_mode = #tpu.pipeline_mode<synchronous>, transform_indices = @transform_5, window_bounds = array<i64: 1, 96>}, {pipeline_mode = #tpu.pipeline_mode<synchronous>, transform_indices = @transform_6, window_bounds = array<i64: 4, 8, 32>}, {pipeline_mode = #tpu.pipeline_mode<synchronous>, transform_indices = @transform_7, window_bounds = array<i64: 1, 32>}, {pipeline_mode = #tpu.pipeline_mode<synchronous>, transform_indices = @transform_8, window_bounds = array<i64: 1, 32>}, {pipeline_mode = #tpu.pipeline_mode<synchronous>, transform_indices = @transform_9, window_bounds = array<i64: 1, 32>}, {pipeline_mode = #tpu.pipeline_mode<synchronous>, transform_indices = @transform_10, window_bounds = array<i64: 32, 32>}, {pipeline_mode = #tpu.pipeline_mode<synchronous>, transform_indices = @transform_11, window_bounds = array<i64: 1, 32>}, {pipeline_mode = #tpu.pipeline_mode<synchronous>, transform_indices = @transform_12, window_bounds = array<i64: 32, 64>}, {pipeline_mode = #tpu.pipeline_mode<synchronous>, transform_indices = @transform_13, window_bounds = array<i64: 1, 64>}, {pipeline_mode = #tpu.pipeline_mode<synchronous>, transform_indices = @transform_14, window_bounds = array<i64: 4, 8, 32>}, {pipeline_mode = #tpu.pipeline_mode<synchronous>, transform_indices = @transform_15, window_bounds = array<i64: 1, 32>}, {pipeline_mode = #tpu.pipeline_mode<synchronous>, transform_indices = @transform_16, window_bounds = array<i64: 1, 32>}, {pipeline_mode = #tpu.pipeline_mode<synchronous>, transform_indices = @transform_17, window_bounds = array<i64: 1, 32>}, {pipeline_mode = #tpu.pipeline_mode<synchronous>, transform_indices = @transform_18, window_bounds = array<i64: 32, 64>}, {pipeline_mode = #tpu.pipeline_mode<synchronous>, transform_indices = @transform_19, window_bounds = array<i64: 1, 64>}, {pipeline_mode = #tpu.pipeline_mode<synchronous>, transform_indices = @transform_20, window_bounds = array<i64: 64, 32>}, {pipeline_mode = #tpu.pipeline_mode<synchronous>, transform_indices = @transform_21, window_bounds = array<i64: 1, 32>}, {pipeline_mode = #tpu.pipeline_mode<synchronous>, transform_indices = @transform_22, window_bounds = array<i64: 1, 32>}, {pipeline_mode = #tpu.pipeline_mode<synchronous>, transform_indices = @transform_23, window_bounds = array<i64: 1, 32>}, {transform_indices = @transform_24, window_bounds = array<i64: 1, 8, 32>}, {transform_indices = @transform_25, window_bounds = array<i64: 1, 4, 8, 8>}, {transform_indices = @transform_26, window_bounds = array<i64: 1, 4, 8, 8>}]} {
    %c0 = arith.constant 0 : index
    %c0_0 = arith.constant 0 : index
    %c0_1 = arith.constant 0 : index
    %0 = vector.load %arg1[%c0, %c0_0, %c0_1] : memref<1x8x32xf32, #tpu.memory_space<vmem>>, vector<1x8x32xf32>
    %1 = vector.shape_cast %0 : vector<1x8x32xf32> to vector<8x32xf32>
    %c0_2 = arith.constant 0 : index
    %c0_3 = arith.constant 0 : index
    %c0_4 = arith.constant 0 : index
    %2 = vector.load %arg2[%c0_2, %c0_3, %c0_4] : memref<1x8x32xf32, #tpu.memory_space<vmem>>, vector<1x8x32xf32>
    %3 = vector.shape_cast %2 : vector<1x8x32xf32> to vector<8x32xf32>
    %4 = arith.truncf %1 : vector<8x32xf32> to vector<8x32xbf16>
    %c0_5 = arith.constant 0 : index
    %c0_6 = arith.constant 0 : index
    %5 = vector.load %arg5[%c0_5, %c0_6] : memref<32x96xbf16, #tpu.memory_space<vmem>>, vector<32x96xbf16>
    %cst = arith.constant dense<0.000000e+00> : vector<8x96xf32>
    %6 = tpu.matmul %4, %5, %cst {dimension_numbers = #tpu.dot_dimension_numbers<[1], [0], [0], [1], [0, 0, 1, 1], [], []>} : vector<8x32xbf16>, vector<32x96xbf16>, vector<8x96xf32> -> vector<8x96xf32>
    %c0_7 = arith.constant 0 : index
    %c0_8 = arith.constant 0 : index
    %7 = vector.load %arg6[%c0_7, %c0_8] : memref<1x96xf32, #tpu.memory_space<vmem>>, vector<1x96xf32>
    %8 = vector.shape_cast %7 : vector<1x96xf32> to vector<96xf32>
    %9 = vector.shape_cast %8 : vector<96xf32> to vector<1x96xf32>
    %10 = vector.broadcast %9 : vector<1x96xf32> to vector<8x96xf32>
    %11 = arith.addf %6, %10 : vector<8x96xf32>
    %12 = vector.extract_strided_slice %11 {offsets = [0, 0], sizes = [8, 32], strides = [1, 1]} : vector<8x96xf32> to vector<8x32xf32>
    %13 = vector.shape_cast %12 : vector<8x32xf32> to vector<8x4x8xf32>
    %14 = tpu.transpose %13, [1, 0, 2] : vector<8x4x8xf32> -> vector<4x8x8xf32>
    %15 = arith.truncf %14 : vector<4x8x8xf32> to vector<4x8x8xbf16>
    %16 = vector.extract_strided_slice %11 {offsets = [0, 32], sizes = [8, 32], strides = [1, 1]} : vector<8x96xf32> to vector<8x32xf32>
    %17 = vector.shape_cast %16 : vector<8x32xf32> to vector<8x4x8xf32>
    %18 = tpu.transpose %17, [1, 0, 2] : vector<8x4x8xf32> -> vector<4x8x8xf32>
    %19 = arith.truncf %18 : vector<4x8x8xf32> to vector<4x8x8xbf16>
    %20 = vector.extract_strided_slice %11 {offsets = [0, 64], sizes = [8, 32], strides = [1, 1]} : vector<8x96xf32> to vector<8x32xf32>
    %21 = vector.shape_cast %20 : vector<8x32xf32> to vector<8x4x8xf32>
    %22 = tpu.transpose %21, [1, 0, 2] : vector<8x4x8xf32> -> vector<4x8x8xf32>
    %23 = arith.truncf %22 : vector<4x8x8xf32> to vector<4x8x8xbf16>
    %c0_9 = arith.constant 0 : index
    %c0_10 = arith.constant 0 : index
    %c0_11 = arith.constant 0 : index
    %24 = vector.load %arg3[%c0_9, %c0_10, %c0_11] : memref<1x8x8xbf16, #tpu.memory_space<vmem>>, vector<1x8x8xbf16>
    %25 = vector.shape_cast %24 : vector<1x8x8xbf16> to vector<8x8xbf16>
    %c0_12 = arith.constant 0 : index
    %c0_13 = arith.constant 0 : index
    %c0_14 = arith.constant 0 : index
    %26 = vector.load %arg7[%c0_12, %c0_13, %c0_14] : memref<4x8x32xbf16, #tpu.memory_space<vmem>>, vector<4x8x32xbf16>
    %c0_15 = arith.constant 0 : index
    %c0_16 = arith.constant 0 : index
    %27 = vector.load %arg8[%c0_15, %c0_16] : memref<1x32xf32, #tpu.memory_space<vmem>>, vector<1x32xf32>
    %28 = vector.shape_cast %27 : vector<1x32xf32> to vector<32xf32>
    %c0_17 = arith.constant 0 : index
    %c0_18 = arith.constant 0 : index
    %29 = vector.load %arg9[%c0_17, %c0_18] : memref<1x32xf32, #tpu.memory_space<vmem>>, vector<1x32xf32>
    %30 = vector.shape_cast %29 : vector<1x32xf32> to vector<32xf32>
    %c0_19 = arith.constant 0 : index
    %c0_20 = arith.constant 0 : index
    %31 = vector.load %arg10[%c0_19, %c0_20] : memref<1x32xf32, #tpu.memory_space<vmem>>, vector<1x32xf32>
    %32 = vector.shape_cast %31 : vector<1x32xf32> to vector<32xf32>
    "tpu.trace_start"() <{level = 10 : i32, message = "hqd,hkd->hqk"}> : () -> ()
    %cst_21 = arith.constant dense<0.000000e+00> : vector<4x8x8xf32>
    %33 = tpu.matmul %15, %19, %cst_21 {dimension_numbers = #tpu.dot_dimension_numbers<[2], [2], [1], [1], [0, 0, 0, 1, 1, 1], [0], [0]>} : vector<4x8x8xbf16>, vector<4x8x8xbf16>, vector<4x8x8xf32> -> vector<4x8x8xf32>
    "tpu.trace_stop"() : () -> ()
    %34 = vector.shape_cast %25 : vector<8x8xbf16> to vector<1x8x8xbf16>
    %cst_22 = arith.constant 0.000000e+00 : bf16
    %35 = vector.broadcast %cst_22 : bf16 to vector<1x8x8xbf16>
    %36 = arith.cmpf ogt, %34, %35 : vector<1x8x8xbf16>
    %cst_23 = arith.constant -1.000000e+09 : f32
    %37 = vector.shape_cast %36 : vector<1x8x8xi1> to vector<1x8x8xi1>
    %38 = vector.broadcast %37 : vector<1x8x8xi1> to vector<4x8x8xi1>
    %39 = vector.broadcast %cst_23 : f32 to vector<4x8x8xf32>
    %40 = arith.select %38, %39, %33 : vector<4x8x8xi1>, vector<4x8x8xf32>
    %cst_24 = arith.constant dense<0xFF800000> : vector<4x8xf32>
    %41 = vector.multi_reduction <maximumf>, %40, %cst_24 [2] : vector<4x8x8xf32> to vector<4x8xf32>
    %42 = vector.shape_cast %41 : vector<4x8xf32> to vector<4x8x1xf32>
    %43 = vector.broadcast %42 : vector<4x8x1xf32> to vector<4x8x8xf32>
    %44 = arith.subf %40, %43 : vector<4x8x8xf32>
    %45 = math.exp %44 : vector<4x8x8xf32>
    %cst_25 = arith.constant dense<0.000000e+00> : vector<4x8xf32>
    %46 = vector.multi_reduction <add>, %45, %cst_25 [2] : vector<4x8x8xf32> to vector<4x8xf32>
    %47 = vector.shape_cast %46 : vector<4x8xf32> to vector<4x8x1xf32>
    %48 = tpu.reciprocal %47 {approx = true} : vector<4x8x1xf32> -> vector<4x8x1xf32>
    %49 = vector.broadcast %48 : vector<4x8x1xf32> to vector<4x8x8xf32>
    %50 = arith.mulf %45, %49 : vector<4x8x8xf32>
    %51 = arith.truncf %50 : vector<4x8x8xf32> to vector<4x8x8xbf16>
    "tpu.trace_start"() <{level = 10 : i32, message = "hqk,hkd->hqd"}> : () -> ()
    %cst_26 = arith.constant dense<0.000000e+00> : vector<4x8x8xf32>
    %52 = tpu.matmul %51, %23, %cst_26 {dimension_numbers = #tpu.dot_dimension_numbers<[2], [1], [1], [2], [0, 0, 0, 1, 1, 2], [0], [0]>} : vector<4x8x8xbf16>, vector<4x8x8xbf16>, vector<4x8x8xf32> -> vector<4x8x8xf32>
    "tpu.trace_stop"() : () -> ()
    %53 = arith.truncf %52 : vector<4x8x8xf32> to vector<4x8x8xbf16>
    "tpu.trace_start"() <{level = 10 : i32, message = "hqd,hdm->hqm"}> : () -> ()
    %cst_27 = arith.constant dense<0.000000e+00> : vector<4x8x32xf32>
    %54 = tpu.matmul %53, %26, %cst_27 {dimension_numbers = #tpu.dot_dimension_numbers<[2], [1], [1], [2], [0, 0, 0, 1, 1, 2], [0], [0]>} : vector<4x8x8xbf16>, vector<4x8x32xbf16>, vector<4x8x32xf32> -> vector<4x8x32xf32>
    "tpu.trace_stop"() : () -> ()
    %cst_28 = arith.constant dense<0.000000e+00> : vector<8x32xf32>
    %55 = vector.multi_reduction <add>, %54, %cst_28 [0] : vector<4x8x32xf32> to vector<8x32xf32>
    %56 = vector.shape_cast %28 : vector<32xf32> to vector<1x32xf32>
    %57 = vector.broadcast %56 : vector<1x32xf32> to vector<8x32xf32>
    %58 = arith.addf %55, %57 : vector<8x32xf32>
    %59 = arith.addf %58, %1 : vector<8x32xf32>
    %cst_29 = arith.constant dense<0.000000e+00> : vector<8xf32>
    %60 = vector.multi_reduction <add>, %59, %cst_29 [1] : vector<8x32xf32> to vector<8xf32>
    %61 = vector.shape_cast %60 : vector<8xf32> to vector<8x1xf32>
    %cst_30 = arith.constant 3.200000e+01 : f32
    %62 = vector.broadcast %cst_30 : f32 to vector<8x1xf32>
    %63 = arith.divf %61, %62 : vector<8x1xf32>
    %64 = vector.broadcast %63 : vector<8x1xf32> to vector<8x32xf32>
    %65 = arith.subf %59, %64 : vector<8x32xf32>
    %66 = arith.mulf %65, %65 : vector<8x32xf32>
    %cst_31 = arith.constant dense<0.000000e+00> : vector<8xf32>
    %67 = vector.multi_reduction <add>, %66, %cst_31 [1] : vector<8x32xf32> to vector<8xf32>
    %68 = vector.shape_cast %67 : vector<8xf32> to vector<8x1xf32>
    %cst_32 = arith.constant 3.200000e+01 : f32
    %69 = vector.broadcast %cst_32 : f32 to vector<8x1xf32>
    %70 = arith.divf %68, %69 : vector<8x1xf32>
    %71 = vector.broadcast %63 : vector<8x1xf32> to vector<8x32xf32>
    %72 = arith.subf %59, %71 : vector<8x32xf32>
    %cst_33 = arith.constant 9.99999974E-6 : f32
    %73 = vector.broadcast %cst_33 : f32 to vector<8x1xf32>
    %74 = arith.addf %70, %73 : vector<8x1xf32>
    %75 = math.rsqrt %74 : vector<8x1xf32>
    %76 = vector.broadcast %75 : vector<8x1xf32> to vector<8x32xf32>
    %77 = arith.mulf %72, %76 : vector<8x32xf32>
    %78 = vector.shape_cast %30 : vector<32xf32> to vector<1x32xf32>
    %79 = vector.broadcast %78 : vector<1x32xf32> to vector<8x32xf32>
    %80 = arith.mulf %77, %79 : vector<8x32xf32>
    %81 = vector.shape_cast %32 : vector<32xf32> to vector<1x32xf32>
    %82 = vector.broadcast %81 : vector<1x32xf32> to vector<8x32xf32>
    %83 = arith.addf %80, %82 : vector<8x32xf32>
    %84 = arith.truncf %83 : vector<8x32xf32> to vector<8x32xbf16>
    %c0_34 = arith.constant 0 : index
    %c0_35 = arith.constant 0 : index
    %85 = vector.load %arg11[%c0_34, %c0_35] : memref<32x32xbf16, #tpu.memory_space<vmem>>, vector<32x32xbf16>
    %cst_36 = arith.constant dense<0.000000e+00> : vector<8x32xf32>
    %86 = tpu.matmul %84, %85, %cst_36 {dimension_numbers = #tpu.dot_dimension_numbers<[1], [0], [0], [1], [0, 0, 1, 1], [], []>} : vector<8x32xbf16>, vector<32x32xbf16>, vector<8x32xf32> -> vector<8x32xf32>
    %c0_37 = arith.constant 0 : index
    %c0_38 = arith.constant 0 : index
    %87 = vector.load %arg12[%c0_37, %c0_38] : memref<1x32xf32, #tpu.memory_space<vmem>>, vector<1x32xf32>
    %88 = vector.shape_cast %87 : vector<1x32xf32> to vector<32xf32>
    %89 = vector.shape_cast %88 : vector<32xf32> to vector<1x32xf32>
    %90 = vector.broadcast %89 : vector<1x32xf32> to vector<8x32xf32>
    %91 = arith.addf %86, %90 : vector<8x32xf32>
    %92 = arith.truncf %3 : vector<8x32xf32> to vector<8x32xbf16>
    %c0_39 = arith.constant 0 : index
    %c0_40 = arith.constant 0 : index
    %93 = vector.load %arg13[%c0_39, %c0_40] : memref<32x64xbf16, #tpu.memory_space<vmem>>, vector<32x64xbf16>
    %cst_41 = arith.constant dense<0.000000e+00> : vector<8x64xf32>
    %94 = tpu.matmul %92, %93, %cst_41 {dimension_numbers = #tpu.dot_dimension_numbers<[1], [0], [0], [1], [0, 0, 1, 1], [], []>} : vector<8x32xbf16>, vector<32x64xbf16>, vector<8x64xf32> -> vector<8x64xf32>
    %c0_42 = arith.constant 0 : index
    %c0_43 = arith.constant 0 : index
    %95 = vector.load %arg14[%c0_42, %c0_43] : memref<1x64xf32, #tpu.memory_space<vmem>>, vector<1x64xf32>
    %96 = vector.shape_cast %95 : vector<1x64xf32> to vector<64xf32>
    %97 = vector.shape_cast %96 : vector<64xf32> to vector<1x64xf32>
    %98 = vector.broadcast %97 : vector<1x64xf32> to vector<8x64xf32>
    %99 = arith.addf %94, %98 : vector<8x64xf32>
    %100 = vector.shape_cast %91 : vector<8x32xf32> to vector<8x4x8xf32>
    %101 = tpu.transpose %100, [1, 0, 2] : vector<8x4x8xf32> -> vector<4x8x8xf32>
    %102 = arith.truncf %101 : vector<4x8x8xf32> to vector<4x8x8xbf16>
    %103 = vector.extract_strided_slice %99 {offsets = [0, 0], sizes = [8, 32], strides = [1, 1]} : vector<8x64xf32> to vector<8x32xf32>
    %104 = vector.shape_cast %103 : vector<8x32xf32> to vector<8x4x8xf32>
    %105 = tpu.transpose %104, [1, 0, 2] : vector<8x4x8xf32> -> vector<4x8x8xf32>
    %106 = arith.truncf %105 : vector<4x8x8xf32> to vector<4x8x8xbf16>
    %107 = vector.extract_strided_slice %99 {offsets = [0, 32], sizes = [8, 32], strides = [1, 1]} : vector<8x64xf32> to vector<8x32xf32>
    %108 = vector.shape_cast %107 : vector<8x32xf32> to vector<8x4x8xf32>
    %109 = tpu.transpose %108, [1, 0, 2] : vector<8x4x8xf32> -> vector<4x8x8xf32>
    %110 = arith.truncf %109 : vector<4x8x8xf32> to vector<4x8x8xbf16>
    %c0_44 = arith.constant 0 : index
    %c0_45 = arith.constant 0 : index
    %c0_46 = arith.constant 0 : index
    %111 = vector.load %arg4[%c0_44, %c0_45, %c0_46] : memref<1x8x8xbf16, #tpu.memory_space<vmem>>, vector<1x8x8xbf16>
    %112 = vector.shape_cast %111 : vector<1x8x8xbf16> to vector<8x8xbf16>
    %c0_47 = arith.constant 0 : index
    %c0_48 = arith.constant 0 : index
    %c0_49 = arith.constant 0 : index
    %113 = vector.load %arg15[%c0_47, %c0_48, %c0_49] : memref<4x8x32xbf16, #tpu.memory_space<vmem>>, vector<4x8x32xbf16>
    %c0_50 = arith.constant 0 : index
    %c0_51 = arith.constant 0 : index
    %114 = vector.load %arg16[%c0_50, %c0_51] : memref<1x32xf32, #tpu.memory_space<vmem>>, vector<1x32xf32>
    %115 = vector.shape_cast %114 : vector<1x32xf32> to vector<32xf32>
    %c0_52 = arith.constant 0 : index
    %c0_53 = arith.constant 0 : index
    %116 = vector.load %arg17[%c0_52, %c0_53] : memref<1x32xf32, #tpu.memory_space<vmem>>, vector<1x32xf32>
    %117 = vector.shape_cast %116 : vector<1x32xf32> to vector<32xf32>
    %c0_54 = arith.constant 0 : index
    %c0_55 = arith.constant 0 : index
    %118 = vector.load %arg18[%c0_54, %c0_55] : memref<1x32xf32, #tpu.memory_space<vmem>>, vector<1x32xf32>
    %119 = vector.shape_cast %118 : vector<1x32xf32> to vector<32xf32>
    "tpu.trace_start"() <{level = 10 : i32, message = "hqd,hkd->hqk"}> : () -> ()
    %cst_56 = arith.constant dense<0.000000e+00> : vector<4x8x8xf32>
    %120 = tpu.matmul %102, %106, %cst_56 {dimension_numbers = #tpu.dot_dimension_numbers<[2], [2], [1], [1], [0, 0, 0, 1, 1, 1], [0], [0]>} : vector<4x8x8xbf16>, vector<4x8x8xbf16>, vector<4x8x8xf32> -> vector<4x8x8xf32>
    "tpu.trace_stop"() : () -> ()
    %121 = vector.shape_cast %112 : vector<8x8xbf16> to vector<1x8x8xbf16>
    %cst_57 = arith.constant 0.000000e+00 : bf16
    %122 = vector.broadcast %cst_57 : bf16 to vector<1x8x8xbf16>
    %123 = arith.cmpf ogt, %121, %122 : vector<1x8x8xbf16>
    %cst_58 = arith.constant -1.000000e+09 : f32
    %124 = vector.shape_cast %123 : vector<1x8x8xi1> to vector<1x8x8xi1>
    %125 = vector.broadcast %124 : vector<1x8x8xi1> to vector<4x8x8xi1>
    %126 = vector.broadcast %cst_58 : f32 to vector<4x8x8xf32>
    %127 = arith.select %125, %126, %120 : vector<4x8x8xi1>, vector<4x8x8xf32>
    %cst_59 = arith.constant dense<0xFF800000> : vector<4x8xf32>
    %128 = vector.multi_reduction <maximumf>, %127, %cst_59 [2] : vector<4x8x8xf32> to vector<4x8xf32>
    %129 = vector.shape_cast %128 : vector<4x8xf32> to vector<4x8x1xf32>
    %130 = vector.broadcast %129 : vector<4x8x1xf32> to vector<4x8x8xf32>
    %131 = arith.subf %127, %130 : vector<4x8x8xf32>
    %132 = math.exp %131 : vector<4x8x8xf32>
    %cst_60 = arith.constant dense<0.000000e+00> : vector<4x8xf32>
    %133 = vector.multi_reduction <add>, %132, %cst_60 [2] : vector<4x8x8xf32> to vector<4x8xf32>
    %134 = vector.shape_cast %133 : vector<4x8xf32> to vector<4x8x1xf32>
    %135 = tpu.reciprocal %134 {approx = true} : vector<4x8x1xf32> -> vector<4x8x1xf32>
    %136 = vector.broadcast %135 : vector<4x8x1xf32> to vector<4x8x8xf32>
    %137 = arith.mulf %132, %136 : vector<4x8x8xf32>
    %138 = arith.truncf %137 : vector<4x8x8xf32> to vector<4x8x8xbf16>
    "tpu.trace_start"() <{level = 10 : i32, message = "hqk,hkd->hqd"}> : () -> ()
    %cst_61 = arith.constant dense<0.000000e+00> : vector<4x8x8xf32>
    %139 = tpu.matmul %138, %110, %cst_61 {dimension_numbers = #tpu.dot_dimension_numbers<[2], [1], [1], [2], [0, 0, 0, 1, 1, 2], [0], [0]>} : vector<4x8x8xbf16>, vector<4x8x8xbf16>, vector<4x8x8xf32> -> vector<4x8x8xf32>
    "tpu.trace_stop"() : () -> ()
    %140 = arith.truncf %139 : vector<4x8x8xf32> to vector<4x8x8xbf16>
    "tpu.trace_start"() <{level = 10 : i32, message = "hqd,hdm->hqm"}> : () -> ()
    %cst_62 = arith.constant dense<0.000000e+00> : vector<4x8x32xf32>
    %141 = tpu.matmul %140, %113, %cst_62 {dimension_numbers = #tpu.dot_dimension_numbers<[2], [1], [1], [2], [0, 0, 0, 1, 1, 2], [0], [0]>} : vector<4x8x8xbf16>, vector<4x8x32xbf16>, vector<4x8x32xf32> -> vector<4x8x32xf32>
    "tpu.trace_stop"() : () -> ()
    %cst_63 = arith.constant dense<0.000000e+00> : vector<8x32xf32>
    %142 = vector.multi_reduction <add>, %141, %cst_63 [0] : vector<4x8x32xf32> to vector<8x32xf32>
    %143 = vector.shape_cast %115 : vector<32xf32> to vector<1x32xf32>
    %144 = vector.broadcast %143 : vector<1x32xf32> to vector<8x32xf32>
    %145 = arith.addf %142, %144 : vector<8x32xf32>
    %146 = arith.addf %145, %83 : vector<8x32xf32>
    %cst_64 = arith.constant dense<0.000000e+00> : vector<8xf32>
    %147 = vector.multi_reduction <add>, %146, %cst_64 [1] : vector<8x32xf32> to vector<8xf32>
    %148 = vector.shape_cast %147 : vector<8xf32> to vector<8x1xf32>
    %cst_65 = arith.constant 3.200000e+01 : f32
    %149 = vector.broadcast %cst_65 : f32 to vector<8x1xf32>
    %150 = arith.divf %148, %149 : vector<8x1xf32>
    %151 = vector.broadcast %150 : vector<8x1xf32> to vector<8x32xf32>
    %152 = arith.subf %146, %151 : vector<8x32xf32>
    %153 = arith.mulf %152, %152 : vector<8x32xf32>
    %cst_66 = arith.constant dense<0.000000e+00> : vector<8xf32>
    %154 = vector.multi_reduction <add>, %153, %cst_66 [1] : vector<8x32xf32> to vector<8xf32>
    %155 = vector.shape_cast %154 : vector<8xf32> to vector<8x1xf32>
    %cst_67 = arith.constant 3.200000e+01 : f32
    %156 = vector.broadcast %cst_67 : f32 to vector<8x1xf32>
    %157 = arith.divf %155, %156 : vector<8x1xf32>
    %158 = vector.broadcast %150 : vector<8x1xf32> to vector<8x32xf32>
    %159 = arith.subf %146, %158 : vector<8x32xf32>
    %cst_68 = arith.constant 9.99999974E-6 : f32
    %160 = vector.broadcast %cst_68 : f32 to vector<8x1xf32>
    %161 = arith.addf %157, %160 : vector<8x1xf32>
    %162 = math.rsqrt %161 : vector<8x1xf32>
    %163 = vector.broadcast %162 : vector<8x1xf32> to vector<8x32xf32>
    %164 = arith.mulf %159, %163 : vector<8x32xf32>
    %165 = vector.shape_cast %117 : vector<32xf32> to vector<1x32xf32>
    %166 = vector.broadcast %165 : vector<1x32xf32> to vector<8x32xf32>
    %167 = arith.mulf %164, %166 : vector<8x32xf32>
    %168 = vector.shape_cast %119 : vector<32xf32> to vector<1x32xf32>
    %169 = vector.broadcast %168 : vector<1x32xf32> to vector<8x32xf32>
    %170 = arith.addf %167, %169 : vector<8x32xf32>
    %c0_69 = arith.constant 0 : index
    %c0_70 = arith.constant 0 : index
    %171 = vector.load %arg19[%c0_69, %c0_70] : memref<32x64xbf16, #tpu.memory_space<vmem>>, vector<32x64xbf16>
    %c0_71 = arith.constant 0 : index
    %c0_72 = arith.constant 0 : index
    %172 = vector.load %arg20[%c0_71, %c0_72] : memref<1x64xf32, #tpu.memory_space<vmem>>, vector<1x64xf32>
    %173 = vector.shape_cast %172 : vector<1x64xf32> to vector<64xf32>
    %c0_73 = arith.constant 0 : index
    %c0_74 = arith.constant 0 : index
    %174 = vector.load %arg21[%c0_73, %c0_74] : memref<64x32xbf16, #tpu.memory_space<vmem>>, vector<64x32xbf16>
    %c0_75 = arith.constant 0 : index
    %c0_76 = arith.constant 0 : index
    %175 = vector.load %arg22[%c0_75, %c0_76] : memref<1x32xf32, #tpu.memory_space<vmem>>, vector<1x32xf32>
    %176 = vector.shape_cast %175 : vector<1x32xf32> to vector<32xf32>
    %c0_77 = arith.constant 0 : index
    %c0_78 = arith.constant 0 : index
    %177 = vector.load %arg23[%c0_77, %c0_78] : memref<1x32xf32, #tpu.memory_space<vmem>>, vector<1x32xf32>
    %178 = vector.shape_cast %177 : vector<1x32xf32> to vector<32xf32>
    %c0_79 = arith.constant 0 : index
    %c0_80 = arith.constant 0 : index
    %179 = vector.load %arg24[%c0_79, %c0_80] : memref<1x32xf32, #tpu.memory_space<vmem>>, vector<1x32xf32>
    %180 = vector.shape_cast %179 : vector<1x32xf32> to vector<32xf32>
    %181 = arith.truncf %170 : vector<8x32xf32> to vector<8x32xbf16>
    %cst_81 = arith.constant dense<0.000000e+00> : vector<8x64xf32>
    %182 = tpu.matmul %181, %171, %cst_81 {dimension_numbers = #tpu.dot_dimension_numbers<[1], [0], [0], [1], [0, 0, 1, 1], [], []>} : vector<8x32xbf16>, vector<32x64xbf16>, vector<8x64xf32> -> vector<8x64xf32>
    %183 = vector.shape_cast %173 : vector<64xf32> to vector<1x64xf32>
    %184 = vector.broadcast %183 : vector<1x64xf32> to vector<8x64xf32>
    %185 = arith.addf %182, %184 : vector<8x64xf32>
    %cst_82 = arith.constant 0.000000e+00 : f32
    %186 = vector.broadcast %cst_82 : f32 to vector<8x64xf32>
    %187 = arith.maximumf %185, %186 : vector<8x64xf32>
    %188 = arith.truncf %187 : vector<8x64xf32> to vector<8x64xbf16>
    %cst_83 = arith.constant dense<0.000000e+00> : vector<8x32xf32>
    %189 = tpu.matmul %188, %174, %cst_83 {dimension_numbers = #tpu.dot_dimension_numbers<[1], [0], [0], [1], [0, 0, 1, 1], [], []>} : vector<8x64xbf16>, vector<64x32xbf16>, vector<8x32xf32> -> vector<8x32xf32>
    %190 = vector.shape_cast %176 : vector<32xf32> to vector<1x32xf32>
    %191 = vector.broadcast %190 : vector<1x32xf32> to vector<8x32xf32>
    %192 = arith.addf %189, %191 : vector<8x32xf32>
    %193 = arith.addf %192, %170 : vector<8x32xf32>
    %cst_84 = arith.constant dense<0.000000e+00> : vector<8xf32>
    %194 = vector.multi_reduction <add>, %193, %cst_84 [1] : vector<8x32xf32> to vector<8xf32>
    %195 = vector.shape_cast %194 : vector<8xf32> to vector<8x1xf32>
    %cst_85 = arith.constant 3.200000e+01 : f32
    %196 = vector.broadcast %cst_85 : f32 to vector<8x1xf32>
    %197 = arith.divf %195, %196 : vector<8x1xf32>
    %198 = vector.broadcast %197 : vector<8x1xf32> to vector<8x32xf32>
    %199 = arith.subf %193, %198 : vector<8x32xf32>
    %200 = arith.mulf %199, %199 : vector<8x32xf32>
    %cst_86 = arith.constant dense<0.000000e+00> : vector<8xf32>
    %201 = vector.multi_reduction <add>, %200, %cst_86 [1] : vector<8x32xf32> to vector<8xf32>
    %202 = vector.shape_cast %201 : vector<8xf32> to vector<8x1xf32>
    %cst_87 = arith.constant 3.200000e+01 : f32
    %203 = vector.broadcast %cst_87 : f32 to vector<8x1xf32>
    %204 = arith.divf %202, %203 : vector<8x1xf32>
    %205 = vector.broadcast %197 : vector<8x1xf32> to vector<8x32xf32>
    %206 = arith.subf %193, %205 : vector<8x32xf32>
    %cst_88 = arith.constant 9.99999974E-6 : f32
    %207 = vector.broadcast %cst_88 : f32 to vector<8x1xf32>
    %208 = arith.addf %204, %207 : vector<8x1xf32>
    %209 = math.rsqrt %208 : vector<8x1xf32>
    %210 = vector.broadcast %209 : vector<8x1xf32> to vector<8x32xf32>
    %211 = arith.mulf %206, %210 : vector<8x32xf32>
    %212 = vector.shape_cast %178 : vector<32xf32> to vector<1x32xf32>
    %213 = vector.broadcast %212 : vector<1x32xf32> to vector<8x32xf32>
    %214 = arith.mulf %211, %213 : vector<8x32xf32>
    %215 = vector.shape_cast %180 : vector<32xf32> to vector<1x32xf32>
    %216 = vector.broadcast %215 : vector<1x32xf32> to vector<8x32xf32>
    %217 = arith.addf %214, %216 : vector<8x32xf32>
    %c0_89 = arith.constant 0 : index
    %c0_90 = arith.constant 0 : index
    %c0_91 = arith.constant 0 : index
    %218 = vector.load %arg25[%c0_89, %c0_90, %c0_91] : memref<1x8x32xf32, #tpu.memory_space<vmem>>, vector<1x8x32xf32>
    %219 = vector.shape_cast %218 : vector<1x8x32xf32> to vector<8x32xf32>
    %220 = vector.shape_cast %217 : vector<8x32xf32> to vector<1x8x32xf32>
    tpu.vector_store %arg25[%c0_89, %c0_90, %c0_91], %220 {strides = array<i32>} : memref<1x8x32xf32, #tpu.memory_space<vmem>>, vector<1x8x32xf32>,
    %221 = arith.truncf %50 : vector<4x8x8xf32> to vector<4x8x8xbf16>
    %c0_92 = arith.constant 0 : index
    %c0_93 = arith.constant 0 : index
    %c0_94 = arith.constant 0 : index
    %c0_95 = arith.constant 0 : index
    %222 = vector.load %arg26[%c0_92, %c0_93, %c0_94, %c0_95] : memref<1x4x8x8xbf16, #tpu.memory_space<vmem>>, vector<1x4x8x8xbf16>
    %223 = vector.shape_cast %222 : vector<1x4x8x8xbf16> to vector<4x8x8xbf16>
    %224 = vector.shape_cast %221 : vector<4x8x8xbf16> to vector<1x4x8x8xbf16>
    tpu.vector_store %arg26[%c0_92, %c0_93, %c0_94, %c0_95], %224 {strides = array<i32>} : memref<1x4x8x8xbf16, #tpu.memory_space<vmem>>, vector<1x4x8x8xbf16>,
    %225 = arith.truncf %137 : vector<4x8x8xf32> to vector<4x8x8xbf16>
    %c0_96 = arith.constant 0 : index
    %c0_97 = arith.constant 0 : index
    %c0_98 = arith.constant 0 : index
    %c0_99 = arith.constant 0 : index
    %226 = vector.load %arg27[%c0_96, %c0_97, %c0_98, %c0_99] : memref<1x4x8x8xbf16, #tpu.memory_space<vmem>>, vector<1x4x8x8xbf16>
    %227 = vector.shape_cast %226 : vector<1x4x8x8xbf16> to vector<4x8x8xbf16>
    %228 = vector.shape_cast %225 : vector<4x8x8xbf16> to vector<1x4x8x8xbf16>
    tpu.vector_store %arg27[%c0_96, %c0_97, %c0_98, %c0_99], %228 {strides = array<i32>} : memref<1x4x8x8xbf16, #tpu.memory_space<vmem>>, vector<1x4x8x8xbf16>,
    return
  }
  func.func @transform_0(%arg0: i32) -> (i32, i32, i32) {
    %c0_i32 = arith.constant 0 : i32
    %c0_i32_0 = arith.constant 0 : i32
    %c0_i32_1 = arith.constant 0 : i32
    return %arg0, %c0_i32, %c0_i32_0 : i32, i32, i32
  }
  func.func @transform_1(%arg0: i32) -> (i32, i32, i32) {
    %c0_i32 = arith.constant 0 : i32
    %c0_i32_0 = arith.constant 0 : i32
    %c0_i32_1 = arith.constant 0 : i32
    return %arg0, %c0_i32, %c0_i32_0 : i32, i32, i32
  }
  func.func @transform_2(%arg0: i32) -> (i32, i32, i32) {
    %c0_i32 = arith.constant 0 : i32
    %c0_i32_0 = arith.constant 0 : i32
    %c0_i32_1 = arith.constant 0 : i32
    return %arg0, %c0_i32, %c0_i32_0 : i32, i32, i32
  }
  func.func @transform_3(%arg0: i32) -> (i32, i32, i32) {
    %c0_i32 = arith.constant 0 : i32
    %c0_i32_0 = arith.constant 0 : i32
    %c0_i32_1 = arith.constant 0 : i32
    return %arg0, %c0_i32, %c0_i32_0 : i32, i32, i32
  }
  func.func @transform_4(%arg0: i32) -> (i32, i32) {
    %c0_i32 = arith.constant 0 : i32
    %c0_i32_0 = arith.constant 0 : i32
    %c0_i32_1 = arith.constant 0 : i32
    return %c0_i32, %c0_i32_0 : i32, i32
  }
  func.func @transform_5(%arg0: i32) -> (i32, i32) {
    %c0_i32 = arith.constant 0 : i32
    %c0_i32_0 = arith.constant 0 : i32
    %c0_i32_1 = arith.constant 0 : i32
    return %c0_i32, %c0_i32_0 : i32, i32
  }
  func.func @transform_6(%arg0: i32) -> (i32, i32, i32) {
    %c0_i32 = arith.constant 0 : i32
    %c0_i32_0 = arith.constant 0 : i32
    %c0_i32_1 = arith.constant 0 : i32
    %c0_i32_2 = arith.constant 0 : i32
    return %c0_i32, %c0_i32_0, %c0_i32_1 : i32, i32, i32
  }
  func.func @transform_7(%arg0: i32) -> (i32, i32) {
    %c0_i32 = arith.constant 0 : i32
    %c0_i32_0 = arith.constant 0 : i32
    %c0_i32_1 = arith.constant 0 : i32
    return %c0_i32, %c0_i32_0 : i32, i32
  }
  func.func @transform_8(%arg0: i32) -> (i32, i32) {
    %c0_i32 = arith.constant 0 : i32
    %c0_i32_0 = arith.constant 0 : i32
    %c0_i32_1 = arith.constant 0 : i32
    return %c0_i32, %c0_i32_0 : i32, i32
  }
  func.func @transform_9(%arg0: i32) -> (i32, i32) {
    %c0_i32 = arith.constant 0 : i32
    %c0_i32_0 = arith.constant 0 : i32
    %c0_i32_1 = arith.constant 0 : i32
    return %c0_i32, %c0_i32_0 : i32, i32
  }
  func.func @transform_10(%arg0: i32) -> (i32, i32) {
    %c0_i32 = arith.constant 0 : i32
    %c0_i32_0 = arith.constant 0 : i32
    %c0_i32_1 = arith.constant 0 : i32
    return %c0_i32, %c0_i32_0 : i32, i32
  }
  func.func @transform_11(%arg0: i32) -> (i32, i32) {
    %c0_i32 = arith.constant 0 : i32
    %c0_i32_0 = arith.constant 0 : i32
    %c0_i32_1 = arith.constant 0 : i32
    return %c0_i32, %c0_i32_0 : i32, i32
  }
  func.func @transform_12(%arg0: i32) -> (i32, i32) {
    %c0_i32 = arith.constant 0 : i32
    %c0_i32_0 = arith.constant 0 : i32
    %c0_i32_1 = arith.constant 0 : i32
    return %c0_i32, %c0_i32_0 : i32, i32
  }
  func.func @transform_13(%arg0: i32) -> (i32, i32) {
    %c0_i32 = arith.constant 0 : i32
    %c0_i32_0 = arith.constant 0 : i32
    %c0_i32_1 = arith.constant 0 : i32
    return %c0_i32, %c0_i32_0 : i32, i32
  }
  func.func @transform_14(%arg0: i32) -> (i32, i32, i32) {
    %c0_i32 = arith.constant 0 : i32
    %c0_i32_0 = arith.constant 0 : i32
    %c0_i32_1 = arith.constant 0 : i32
    %c0_i32_2 = arith.constant 0 : i32
    return %c0_i32, %c0_i32_0, %c0_i32_1 : i32, i32, i32
  }
  func.func @transform_15(%arg0: i32) -> (i32, i32) {
    %c0_i32 = arith.constant 0 : i32
    %c0_i32_0 = arith.constant 0 : i32
    %c0_i32_1 = arith.constant 0 : i32
    return %c0_i32, %c0_i32_0 : i32, i32
  }
  func.func @transform_16(%arg0: i32) -> (i32, i32) {
    %c0_i32 = arith.constant 0 : i32
    %c0_i32_0 = arith.constant 0 : i32
    %c0_i32_1 = arith.constant 0 : i32
    return %c0_i32, %c0_i32_0 : i32, i32
  }
  func.func @transform_17(%arg0: i32) -> (i32, i32) {
    %c0_i32 = arith.constant 0 : i32
    %c0_i32_0 = arith.constant 0 : i32
    %c0_i32_1 = arith.constant 0 : i32
    return %c0_i32, %c0_i32_0 : i32, i32
  }
  func.func @transform_18(%arg0: i32) -> (i32, i32) {
    %c0_i32 = arith.constant 0 : i32
    %c0_i32_0 = arith.constant 0 : i32
    %c0_i32_1 = arith.constant 0 : i32
    return %c0_i32, %c0_i32_0 : i32, i32
  }
  func.func @transform_19(%arg0: i32) -> (i32, i32) {
    %c0_i32 = arith.constant 0 : i32
    %c0_i32_0 = arith.constant 0 : i32
    %c0_i32_1 = arith.constant 0 : i32
    return %c0_i32, %c0_i32_0 : i32, i32
  }
  func.func @transform_20(%arg0: i32) -> (i32, i32) {
    %c0_i32 = arith.constant 0 : i32
    %c0_i32_0 = arith.constant 0 : i32
    %c0_i32_1 = arith.constant 0 : i32
    return %c0_i32, %c0_i32_0 : i32, i32
  }
  func.func @transform_21(%arg0: i32) -> (i32, i32) {
    %c0_i32 = arith.constant 0 : i32
    %c0_i32_0 = arith.constant 0 : i32
    %c0_i32_1 = arith.constant 0 : i32
    return %c0_i32, %c0_i32_0 : i32, i32
  }
  func.func @transform_22(%arg0: i32) -> (i32, i32) {
    %c0_i32 = arith.constant 0 : i32
    %c0_i32_0 = arith.constant 0 : i32
    %c0_i32_1 = arith.constant 0 : i32
    return %c0_i32, %c0_i32_0 : i32, i32
  }
  func.func @transform_23(%arg0: i32) -> (i32, i32) {
    %c0_i32 = arith.constant 0 : i32
    %c0_i32_0 = arith.constant 0 : i32
    %c0_i32_1 = arith.constant 0 : i32
    return %c0_i32, %c0_i32_0 : i32, i32
  }
  func.func @transform_24(%arg0: i32) -> (i32, i32, i32) {
    %c0_i32 = arith.constant 0 : i32
    %c0_i32_0 = arith.constant 0 : i32
    %c0_i32_1 = arith.constant 0 : i32
    return %arg0, %c0_i32, %c0_i32_0 : i32, i32, i32
  }
  func.func @transform_25(%arg0: i32) -> (i32, i32, i32, i32) {
    %c0_i32 = arith.constant 0 : i32
    %c0_i32_0 = arith.constant 0 : i32
    %c0_i32_1 = arith.constant 0 : i32
    %c0_i32_2 = arith.constant 0 : i32
    return %arg0, %c0_i32, %c0_i32_0, %c0_i32_1 : i32, i32, i32, i32
  }
  func.func @transform_26(%arg0: i32) -> (i32, i32, i32, i32) {
    %c0_i32 = arith.constant 0 : i32
    %c0_i32_0 = arith.constant 0 : i32
    %c0_i32_1 = arith.constant 0 : i32
    %c0_i32_2 = arith.constant 0 : i32
    return %arg0, %c0_i32, %c0_i32_0, %c0_i32_1 : i32, i32, i32, i32
  }
}

module attributes {stable_mosaic.version = 11 : i64} {
  func.func @decoder_layer_kernel(%arg0: i32, %arg1: memref<1x8x32xf32, #tpu.memory_space<vmem>>, %arg2: memref<1x8x32xf32, #tpu.memory_space<vmem>>, %arg3: memref<1x8x8xbf16, #tpu.memory_space<vmem>>, %arg4: memref<1x8x8xbf16, #tpu.memory_space<vmem>>, %arg5: memref<32x96xbf16, #tpu.memory_space<vmem>>, %arg6: memref<1x96xf32, #tpu.memory_space<vmem>>, %arg7: memref<4x8x32xbf16, #tpu.memory_space<vmem>>, %arg8: memref<1x32xf32, #tpu.memory_space<vmem>>, %arg9: memref<1x32xf32, #tpu.memory_space<vmem>>, %arg10: memref<1x32xf32, #tpu.memory_space<vmem>>, %arg11: memref<32x32xbf16, #tpu.memory_space<vmem>>, %arg12: memref<1x32xf32, #tpu.memory_space<vmem>>, %arg13: memref<32x64xbf16, #tpu.memory_space<vmem>>, %arg14: memref<1x64xf32, #tpu.memory_space<vmem>>, %arg15: memref<4x8x32xbf16, #tpu.memory_space<vmem>>, %arg16: memref<1x32xf32, #tpu.memory_space<vmem>>, %arg17: memref<1x32xf32, #tpu.memory_space<vmem>>, %arg18: memref<1x32xf32, #tpu.memory_space<vmem>>, %arg19: memref<32x64xbf16, #tpu.memory_space<vmem>>, %arg20: memref<1x64xf32, #tpu.memory_space<vmem>>, %arg21: memref<64x32xbf16, #tpu.memory_space<vmem>>, %arg22: memref<1x32xf32, #tpu.memory_space<vmem>>, %arg23: memref<1x32xf32, #tpu.memory_space<vmem>>, %arg24: memref<1x32xf32, #tpu.memory_space<vmem>>, %arg25: memref<1x8x32xf32, #tpu.memory_space<vmem>>, %arg26: memref<1x4x8x8xbf16, #tpu.memory_space<vmem>>, %arg27: memref<1x4x8x8xbf16, #tpu.memory_space<vmem>>) attributes {dimension_semantics = [#tpu.dimension_semantics<parallel>], iteration_bounds = array<i64: 2>, scalar_prefetch = 0 : i64, scratch_operands = 0 : i64, tpu.core_type = #tpu.core_type<tc>, window_params = [{transform_indices = @transform_0, window_bounds = array<i64: 1, 8, 32>}, {transform_indices = @transform_1, window_bounds = array<i64: 1, 8, 32>}, {transform_indices = @transform_2, window_bounds = array<i64: 1, 8, 8>}, {transform_indices = @transform_3, window_bounds = array<i64: 1, 8, 8>}, {pipeline_mode = #tpu.pipeline_mode<synchronous>, transform_indices = @transform_4, window_bounds = array<i64: 32, 96>}, {pipeline_mode = #tpu.pipeline_mode<synchronous>, transform_indices = @transform_5, window_bounds = array<i64: 1, 96>}, {pipeline_mode = #tpu.pipeline_mode<synchronous>, transform_indices = @transform_6, window_bounds = array<i64: 4, 8, 32>}, {pipeline_mode = #tpu.pipeline_mode<synchronous>, transform_indices = @transform_7, window_bounds = array<i64: 1, 32>}, {pipeline_mode = #tpu.pipeline_mode<synchronous>, transform_indices = @transform_8, window_bounds = array<i64: 1, 32>}, {pipeline_mode = #tpu.pipeline_mode<synchronous>, transform_indices = @transform_9, window_bounds = array<i64: 1, 32>}, {pipeline_mode = #tpu.pipeline_mode<synchronous>, transform_indices = @transform_10, window_bounds = array<i64: 32, 32>}, {pipeline_mode = #tpu.pipeline_mode<synchronous>, transform_indices = @transform_11, window_bounds = array<i64: 1, 32>}, {pipeline_mode = #tpu.pipeline_mode<synchronous>, transform_indices = @transform_12, window_bounds = array<i64: 32, 64>}, {pipeline_mode = #tpu.pipeline_mode<synchronous>, transform_indices = @transform_13, window_bounds = array<i64: 1, 64>}, {pipeline_mode = #tpu.pipeline_mode<synchronous>, transform_indices = @transform_14, window_bounds = array<i64: 4, 8, 32>}, {pipeline_mode = #tpu.pipeline_mode<synchronous>, transform_indices = @transform_15, window_bounds = array<i64: 1, 32>}, {pipeline_mode = #tpu.pipeline_mode<synchronous>, transform_indices = @transform_16, window_bounds = array<i64: 1, 32>}, {pipeline_mode = #tpu.pipeline_mode<synchronous>, transform_indices = @transform_17, window_bounds = array<i64: 1, 32>}, {pipeline_mode = #tpu.pipeline_mode<synchronous>, transform_indices = @transform_18, window_bounds = array<i64: 32, 64>}, {pipeline_mode = #tpu.pipeline_mode<synchronous>, transform_indices = @transform_19, window_bounds = array<i64: 1, 64>}, {pipeline_mode = #tpu.pipeline_mode<synchronous>, transform_indices = @transform_20, window_bounds = array<i64: 64, 32>}, {pipeline_mode = #tpu.pipeline_mode<synchronous>, transform_indices = @transform_21, window_bounds = array<i64: 1, 32>}, {pipeline_mode = #tpu.pipeline_mode<synchronous>, transform_indices = @transform_22, window_bounds = array<i64: 1, 32>}, {pipeline_mode = #tpu.pipeline_mode<synchronous>, transform_indices = @transform_23, window_bounds = array<i64: 1, 32>}, {transform_indices = @transform_24, window_bounds = array<i64: 1, 8, 32>}, {transform_indices = @transform_25, window_bounds = array<i64: 1, 4, 8, 8>}, {transform_indices = @transform_26, window_bounds = array<i64: 1, 4, 8, 8>}]} {
    %c0 = arith.constant 0 : index
    %c0_0 = arith.constant 0 : index
    %c0_1 = arith.constant 0 : index
    %0 = vector.load %arg1[%c0, %c0_0, %c0_1] : memref<1x8x32xf32, #tpu.memory_space<vmem>>, vector<1x8x32xf32>
    %1 = vector.shape_cast %0 : vector<1x8x32xf32> to vector<8x32xf32>
    %c0_2 = arith.constant 0 : index
    %c0_3 = arith.constant 0 : index
    %c0_4 = arith.constant 0 : index
    %2 = vector.load %arg2[%c0_2, %c0_3, %c0_4] : memref<1x8x32xf32, #tpu.memory_space<vmem>>, vector<1x8x32xf32>
    %3 = vector.shape_cast %2 : vector<1x8x32xf32> to vector<8x32xf32>
    %4 = arith.truncf %1 : vector<8x32xf32> to vector<8x32xbf16>
    %c0_5 = arith.constant 0 : index
    %c0_6 = arith.constant 0 : index
    %5 = vector.load %arg5[%c0_5, %c0_6] : memref<32x96xbf16, #tpu.memory_space<vmem>>, vector<32x96xbf16>
    %cst = arith.constant dense<0.000000e+00> : vector<8x96xf32>
    %6 = tpu.matmul %4, %5, %cst {dimension_numbers = #tpu.dot_dimension_numbers<[1], [0], [0], [1], [0, 0, 1, 1], [], []>} : vector<8x32xbf16>, vector<32x96xbf16>, vector<8x96xf32> -> vector<8x96xf32>
    %c0_7 = arith.constant 0 : index
    %c0_8 = arith.constant 0 : index
    %7 = vector.load %arg6[%c0_7, %c0_8] : memref<1x96xf32, #tpu.memory_space<vmem>>, vector<1x96xf32>
    %8 = vector.shape_cast %7 : vector<1x96xf32> to vector<96xf32>
    %9 = vector.shape_cast %8 : vector<96xf32> to vector<1x96xf32>
    %10 = vector.broadcast %9 : vector<1x96xf32> to vector<8x96xf32>
    %11 = arith.addf %6, %10 : vector<8x96xf32>
    %12 = vector.extract_strided_slice %11 {offsets = [0, 0], sizes = [8, 32], strides = [1, 1]} : vector<8x96xf32> to vector<8x32xf32>
    %13 = vector.shape_cast %12 : vector<8x32xf32> to vector<8x4x8xf32>
    %14 = tpu.transpose %13, [1, 0, 2] : vector<8x4x8xf32> -> vector<4x8x8xf32>
    %15 = arith.truncf %14 : vector<4x8x8xf32> to vector<4x8x8xbf16>
    %16 = vector.extract_strided_slice %11 {offsets = [0, 32], sizes = [8, 32], strides = [1, 1]} : vector<8x96xf32> to vector<8x32xf32>
    %17 = vector.shape_cast %16 : vector<8x32xf32> to vector<8x4x8xf32>
    %18 = tpu.transpose %17, [1, 0, 2] : vector<8x4x8xf32> -> vector<4x8x8xf32>
    %19 = arith.truncf %18 : vector<4x8x8xf32> to vector<4x8x8xbf16>
    %20 = vector.extract_strided_slice %11 {offsets = [0, 64], sizes = [8, 32], strides = [1, 1]} : vector<8x96xf32> to vector<8x32xf32>
    %21 = vector.shape_cast %20 : vector<8x32xf32> to vector<8x4x8xf32>
    %22 = tpu.transpose %21, [1, 0, 2] : vector<8x4x8xf32> -> vector<4x8x8xf32>
    %23 = arith.truncf %22 : vector<4x8x8xf32> to vector<4x8x8xbf16>
    %c0_9 = arith.constant 0 : index
    %c0_10 = arith.constant 0 : index
    %c0_11 = arith.constant 0 : index
    %24 = vector.load %arg3[%c0_9, %c0_10, %c0_11] : memref<1x8x8xbf16, #tpu.memory_space<vmem>>, vector<1x8x8xbf16>
    %25 = vector.shape_cast %24 : vector<1x8x8xbf16> to vector<8x8xbf16>
    %c0_12 = arith.constant 0 : index
    %c0_13 = arith.constant 0 : index
    %c0_14 = arith.constant 0 : index
    %26 = vector.load %arg7[%c0_12, %c0_13, %c0_14] : memref<4x8x32xbf16, #tpu.memory_space<vmem>>, vector<4x8x32xbf16>
    %c0_15 = arith.constant 0 : index
    %c0_16 = arith.constant 0 : index
    %27 = vector.load %arg8[%c0_15, %c0_16] : memref<1x32xf32, #tpu.memory_space<vmem>>, vector<1x32xf32>
    %28 = vector.shape_cast %27 : vector<1x32xf32> to vector<32xf32>
    %c0_17 = arith.constant 0 : index
    %c0_18 = arith.constant 0 : index
    %29 = vector.load %arg9[%c0_17, %c0_18] : memref<1x32xf32, #tpu.memory_space<vmem>>, vector<1x32xf32>
    %30 = vector.shape_cast %29 : vector<1x32xf32> to vector<32xf32>
    %c0_19 = arith.constant 0 : index
    %c0_20 = arith.constant 0 : index
    %31 = vector.load %arg10[%c0_19, %c0_20] : memref<1x32xf32, #tpu.memory_space<vmem>>, vector<1x32xf32>
    %32 = vector.shape_cast %31 : vector<1x32xf32> to vector<32xf32>
    "tpu.trace_start"() <{level = 10 : i32, message = "hqd,hkd->hqk"}> : () -> ()
    %cst_21 = arith.constant dense<0.000000e+00> : vector<4x8x8xf32>
    %33 = tpu.matmul %15, %19, %cst_21 {dimension_numbers = #tpu.dot_dimension_numbers<[2], [2], [1], [1], [0, 0, 0, 1, 1, 1], [0], [0]>} : vector<4x8x8xbf16>, vector<4x8x8xbf16>, vector<4x8x8xf32> -> vector<4x8x8xf32>
    "tpu.trace_stop"() : () -> ()
    %34 = vector.shape_cast %25 : vector<8x8xbf16> to vector<1x8x8xbf16>
    %cst_22 = arith.constant 0.000000e+00 : bf16
    %35 = vector.broadcast %cst_22 : bf16 to vector<1x8x8xbf16>
    %36 = arith.cmpf ogt, %34, %35 : vector<1x8x8xbf16>
    %cst_23 = arith.constant -1.000000e+09 : f32
    %37 = vector.shape_cast %36 : vector<1x8x8xi1> to vector<1x8x8xi1>
    %38 = vector.broadcast %37 : vector<1x8x8xi1> to vector<4x8x8xi1>
    %39 = vector.broadcast %cst_23 : f32 to vector<4x8x8xf32>
    %40 = arith.select %38, %39, %33 : vector<4x8x8xi1>, vector<4x8x8xf32>
    %cst_24 = arith.constant dense<0xFF800000> : vector<4x8xf32>
    %41 = vector.multi_reduction <maximumf>, %40, %cst_24 [2] : vector<4x8x8xf32> to vector<4x8xf32>
    %42 = vector.shape_cast %41 : vector<4x8xf32> to vector<4x8x1xf32>
    %43 = vector.broadcast %42 : vector<4x8x1xf32> to vector<4x8x8xf32>
    %44 = arith.subf %40, %43 : vector<4x8x8xf32>
    %45 = math.exp %44 : vector<4x8x8xf32>
    %cst_25 = arith.constant dense<0.000000e+00> : vector<4x8xf32>
    %46 = vector.multi_reduction <add>, %45, %cst_25 [2] : vector<4x8x8xf32> to vector<4x8xf32>
    %47 = vector.shape_cast %46 : vector<4x8xf32> to vector<4x8x1xf32>
    %48 = tpu.reciprocal %47 {approx = true} : vector<4x8x1xf32> -> vector<4x8x1xf32>
    %49 = vector.broadcast %48 : vector<4x8x1xf32> to vector<4x8x8xf32>
    %50 = arith.mulf %45, %49 : vector<4x8x8xf32>
    %51 = arith.truncf %50 : vector<4x8x8xf32> to vector<4x8x8xbf16>
    "tpu.trace_start"() <{level = 10 : i32, message = "hqk,hkd->hqd"}> : () -> ()
    %cst_26 = arith.constant dense<0.000000e+00> : vector<4x8x8xf32>
    %52 = tpu.matmul %51, %23, %cst_26 {dimension_numbers = #tpu.dot_dimension_numbers<[2], [1], [1], [2], [0, 0, 0, 1, 1, 2], [0], [0]>} : vector<4x8x8xbf16>, vector<4x8x8xbf16>, vector<4x8x8xf32> -> vector<4x8x8xf32>
    "tpu.trace_stop"() : () -> ()
    %53 = arith.truncf %52 : vector<4x8x8xf32> to vector<4x8x8xbf16>
    "tpu.trace_start"() <{level = 10 : i32, message = "hqd,hdm->hqm"}> : () -> ()
    %cst_27 = arith.constant dense<0.000000e+00> : vector<4x8x32xf32>
    %54 = tpu.matmul %53, %26, %cst_27 {dimension_numbers = #tpu.dot_dimension_numbers<[2], [1], [1], [2], [0, 0, 0, 1, 1, 2], [0], [0]>} : vector<4x8x8xbf16>, vector<4x8x32xbf16>, vector<4x8x32xf32> -> vector<4x8x32xf32>
    "tpu.trace_stop"() : () -> ()
    %cst_28 = arith.constant dense<0.000000e+00> : vector<8x32xf32>
    %55 = vector.multi_reduction <add>, %54, %cst_28 [0] : vector<4x8x32xf32> to vector<8x32xf32>
    %56 = vector.shape_cast %28 : vector<32xf32> to vector<1x32xf32>
    %57 = vector.broadcast %56 : vector<1x32xf32> to vector<8x32xf32>
    %58 = arith.addf %55, %57 : vector<8x32xf32>
    %59 = arith.addf %58, %1 : vector<8x32xf32>
    %cst_29 = arith.constant dense<0.000000e+00> : vector<8xf32>
    %60 = vector.multi_reduction <add>, %59, %cst_29 [1] : vector<8x32xf32> to vector<8xf32>
    %61 = vector.shape_cast %60 : vector<8xf32> to vector<8x1xf32>
    %cst_30 = arith.constant 3.200000e+01 : f32
    %62 = vector.broadcast %cst_30 : f32 to vector<8x1xf32>
    %63 = arith.divf %61, %62 : vector<8x1xf32>
    %64 = vector.broadcast %63 : vector<8x1xf32> to vector<8x32xf32>
    %65 = arith.subf %59, %64 : vector<8x32xf32>
    %66 = arith.mulf %65, %65 : vector<8x32xf32>
    %cst_31 = arith.constant dense<0.000000e+00> : vector<8xf32>
    %67 = vector.multi_reduction <add>, %66, %cst_31 [1] : vector<8x32xf32> to vector<8xf32>
    %68 = vector.shape_cast %67 : vector<8xf32> to vector<8x1xf32>
    %cst_32 = arith.constant 3.200000e+01 : f32
    %69 = vector.broadcast %cst_32 : f32 to vector<8x1xf32>
    %70 = arith.divf %68, %69 : vector<8x1xf32>
    %71 = vector.broadcast %63 : vector<8x1xf32> to vector<8x32xf32>
    %72 = arith.subf %59, %71 : vector<8x32xf32>
    %cst_33 = arith.constant 9.99999974E-6 : f32
    %73 = vector.broadcast %cst_33 : f32 to vector<8x1xf32>
    %74 = arith.addf %70, %73 : vector<8x1xf32>
    %75 = math.rsqrt %74 : vector<8x1xf32>
    %76 = vector.broadcast %75 : vector<8x1xf32> to vector<8x32xf32>
    %77 = arith.mulf %72, %76 : vector<8x32xf32>
    %78 = vector.shape_cast %30 : vector<32xf32> to vector<1x32xf32>
    %79 = vector.broadcast %78 : vector<1x32xf32> to vector<8x32xf32>
    %80 = arith.mulf %77, %79 : vector<8x32xf32>
    %81 = vector.shape_cast %32 : vector<32xf32> to vector<1x32xf32>
    %82 = vector.broadcast %81 : vector<1x32xf32> to vector<8x32xf32>
    %83 = arith.addf %80, %82 : vector<8x32xf32>
    %84 = arith.truncf %83 : vector<8x32xf32> to vector<8x32xbf16>
    %c0_34 = arith.constant 0 : index
    %c0_35 = arith.constant 0 : index
    %85 = vector.load %arg11[%c0_34, %c0_35] : memref<32x32xbf16, #tpu.memory_space<vmem>>, vector<32x32xbf16>
    %cst_36 = arith.constant dense<0.000000e+00> : vector<8x32xf32>
    %86 = tpu.matmul %84, %85, %cst_36 {dimension_numbers = #tpu.dot_dimension_numbers<[1], [0], [0], [1], [0, 0, 1, 1], [], []>} : vector<8x32xbf16>, vector<32x32xbf16>, vector<8x32xf32> -> vector<8x32xf32>
    %c0_37 = arith.constant 0 : index
    %c0_38 = arith.constant 0 : index
    %87 = vector.load %arg12[%c0_37, %c0_38] : memref<1x32xf32, #tpu.memory_space<vmem>>, vector<1x32xf32>
    %88 = vector.shape_cast %87 : vector<1x32xf32> to vector<32xf32>
    %89 = vector.shape_cast %88 : vector<32xf32> to vector<1x32xf32>
    %90 = vector.broadcast %89 : vector<1x32xf32> to vector<8x32xf32>
    %91 = arith.addf %86, %90 : vector<8x32xf32>
    %92 = arith.truncf %3 : vector<8x32xf32> to vector<8x32xbf16>
    %c0_39 = arith.constant 0 : index
    %c0_40 = arith.constant 0 : index
    %93 = vector.load %arg13[%c0_39, %c0_40] : memref<32x64xbf16, #tpu.memory_space<vmem>>, vector<32x64xbf16>
    %cst_41 = arith.constant dense<0.000000e+00> : vector<8x64xf32>
    %94 = tpu.matmul %92, %93, %cst_41 {dimension_numbers = #tpu.dot_dimension_numbers<[1], [0], [0], [1], [0, 0, 1, 1], [], []>} : vector<8x32xbf16>, vector<32x64xbf16>, vector<8x64xf32> -> vector<8x64xf32>
    %c0_42 = arith.constant 0 : index
    %c0_43 = arith.constant 0 : index
    %95 = vector.load %arg14[%c0_42, %c0_43] : memref<1x64xf32, #tpu.memory_space<vmem>>, vector<1x64xf32>
    %96 = vector.shape_cast %95 : vector<1x64xf32> to vector<64xf32>
    %97 = vector.shape_cast %96 : vector<64xf32> to vector<1x64xf32>
    %98 = vector.broadcast %97 : vector<1x64xf32> to vector<8x64xf32>
    %99 = arith.addf %94, %98 : vector<8x64xf32>
    %100 = vector.shape_cast %91 : vector<8x32xf32> to vector<8x4x8xf32>
    %101 = tpu.transpose %100, [1, 0, 2] : vector<8x4x8xf32> -> vector<4x8x8xf32>
    %102 = arith.truncf %101 : vector<4x8x8xf32> to vector<4x8x8xbf16>
    %103 = vector.extract_strided_slice %99 {offsets = [0, 0], sizes = [8, 32], strides = [1, 1]} : vector<8x64xf32> to vector<8x32xf32>
    %104 = vector.shape_cast %103 : vector<8x32xf32> to vector<8x4x8xf32>
    %105 = tpu.transpose %104, [1, 0, 2] : vector<8x4x8xf32> -> vector<4x8x8xf32>
    %106 = arith.truncf %105 : vector<4x8x8xf32> to vector<4x8x8xbf16>
    %107 = vector.extract_strided_slice %99 {offsets = [0, 32], sizes = [8, 32], strides = [1, 1]} : vector<8x64xf32> to vector<8x32xf32>
    %108 = vector.shape_cast %107 : vector<8x32xf32> to vector<8x4x8xf32>
    %109 = tpu.transpose %108, [1, 0, 2] : vector<8x4x8xf32> -> vector<4x8x8xf32>
    %110 = arith.truncf %109 : vector<4x8x8xf32> to vector<4x8x8xbf16>
    %c0_44 = arith.constant 0 : index
    %c0_45 = arith.constant 0 : index
    %c0_46 = arith.constant 0 : index
    %111 = vector.load %arg4[%c0_44, %c0_45, %c0_46] : memref<1x8x8xbf16, #tpu.memory_space<vmem>>, vector<1x8x8xbf16>
    %112 = vector.shape_cast %111 : vector<1x8x8xbf16> to vector<8x8xbf16>
    %c0_47 = arith.constant 0 : index
    %c0_48 = arith.constant 0 : index
    %c0_49 = arith.constant 0 : index
    %113 = vector.load %arg15[%c0_47, %c0_48, %c0_49] : memref<4x8x32xbf16, #tpu.memory_space<vmem>>, vector<4x8x32xbf16>
    %c0_50 = arith.constant 0 : index
    %c0_51 = arith.constant 0 : index
    %114 = vector.load %arg16[%c0_50, %c0_51] : memref<1x32xf32, #tpu.memory_space<vmem>>, vector<1x32xf32>
    %115 = vector.shape_cast %114 : vector<1x32xf32> to vector<32xf32>
    %c0_52 = arith.constant 0 : index
    %c0_53 = arith.constant 0 : index
    %116 = vector.load %arg17[%c0_52, %c0_53] : memref<1x32xf32, #tpu.memory_space<vmem>>, vector<1x32xf32>
    %117 = vector.shape_cast %116 : vector<1x32xf32> to vector<32xf32>
    %c0_54 = arith.constant 0 : index
    %c0_55 = arith.constant 0 : index
    %118 = vector.load %arg18[%c0_54, %c0_55] : memref<1x32xf32, #tpu.memory_space<vmem>>, vector<1x32xf32>
    %119 = vector.shape_cast %118 : vector<1x32xf32> to vector<32xf32>
    "tpu.trace_start"() <{level = 10 : i32, message = "hqd,hkd->hqk"}> : () -> ()
    %cst_56 = arith.constant dense<0.000000e+00> : vector<4x8x8xf32>
    %120 = tpu.matmul %102, %106, %cst_56 {dimension_numbers = #tpu.dot_dimension_numbers<[2], [2], [1], [1], [0, 0, 0, 1, 1, 1], [0], [0]>} : vector<4x8x8xbf16>, vector<4x8x8xbf16>, vector<4x8x8xf32> -> vector<4x8x8xf32>
    "tpu.trace_stop"() : () -> ()
    %121 = vector.shape_cast %112 : vector<8x8xbf16> to vector<1x8x8xbf16>
    %cst_57 = arith.constant 0.000000e+00 : bf16
    %122 = vector.broadcast %cst_57 : bf16 to vector<1x8x8xbf16>
    %123 = arith.cmpf ogt, %121, %122 : vector<1x8x8xbf16>
    %cst_58 = arith.constant -1.000000e+09 : f32
    %124 = vector.shape_cast %123 : vector<1x8x8xi1> to vector<1x8x8xi1>
    %125 = vector.broadcast %124 : vector<1x8x8xi1> to vector<4x8x8xi1>
    %126 = vector.broadcast %cst_58 : f32 to vector<4x8x8xf32>
    %127 = arith.select %125, %126, %120 : vector<4x8x8xi1>, vector<4x8x8xf32>
    %cst_59 = arith.constant dense<0xFF800000> : vector<4x8xf32>
    %128 = vector.multi_reduction <maximumf>, %127, %cst_59 [2] : vector<4x8x8xf32> to vector<4x8xf32>
    %129 = vector.shape_cast %128 : vector<4x8xf32> to vector<4x8x1xf32>
    %130 = vector.broadcast %129 : vector<4x8x1xf32> to vector<4x8x8xf32>
    %131 = arith.subf %127, %130 : vector<4x8x8xf32>
    %132 = math.exp %131 : vector<4x8x8xf32>
    %cst_60 = arith.constant dense<0.000000e+00> : vector<4x8xf32>
    %133 = vector.multi_reduction <add>, %132, %cst_60 [2] : vector<4x8x8xf32> to vector<4x8xf32>
    %134 = vector.shape_cast %133 : vector<4x8xf32> to vector<4x8x1xf32>
    %135 = tpu.reciprocal %134 {approx = true} : vector<4x8x1xf32> -> vector<4x8x1xf32>
    %136 = vector.broadcast %135 : vector<4x8x1xf32> to vector<4x8x8xf32>
    %137 = arith.mulf %132, %136 : vector<4x8x8xf32>
    %138 = arith.truncf %137 : vector<4x8x8xf32> to vector<4x8x8xbf16>
    "tpu.trace_start"() <{level = 10 : i32, message = "hqk,hkd->hqd"}> : () -> ()
    %cst_61 = arith.constant dense<0.000000e+00> : vector<4x8x8xf32>
    %139 = tpu.matmul %138, %110, %cst_61 {dimension_numbers = #tpu.dot_dimension_numbers<[2], [1], [1], [2], [0, 0, 0, 1, 1, 2], [0], [0]>} : vector<4x8x8xbf16>, vector<4x8x8xbf16>, vector<4x8x8xf32> -> vector<4x8x8xf32>
    "tpu.trace_stop"() : () -> ()
    %140 = arith.truncf %139 : vector<4x8x8xf32> to vector<4x8x8xbf16>
    "tpu.trace_start"() <{level = 10 : i32, message = "hqd,hdm->hqm"}> : () -> ()
    %cst_62 = arith.constant dense<0.000000e+00> : vector<4x8x32xf32>
    %141 = tpu.matmul %140, %113, %cst_62 {dimension_numbers = #tpu.dot_dimension_numbers<[2], [1], [1], [2], [0, 0, 0, 1, 1, 2], [0], [0]>} : vector<4x8x8xbf16>, vector<4x8x32xbf16>, vector<4x8x32xf32> -> vector<4x8x32xf32>
    "tpu.trace_stop"() : () -> ()
    %cst_63 = arith.constant dense<0.000000e+00> : vector<8x32xf32>
    %142 = vector.multi_reduction <add>, %141, %cst_63 [0] : vector<4x8x32xf32> to vector<8x32xf32>
    %143 = vector.shape_cast %115 : vector<32xf32> to vector<1x32xf32>
    %144 = vector.broadcast %143 : vector<1x32xf32> to vector<8x32xf32>
    %145 = arith.addf %142, %144 : vector<8x32xf32>
    %146 = arith.addf %145, %83 : vector<8x32xf32>
    %cst_64 = arith.constant dense<0.000000e+00> : vector<8xf32>
    %147 = vector.multi_reduction <add>, %146, %cst_64 [1] : vector<8x32xf32> to vector<8xf32>
    %148 = vector.shape_cast %147 : vector<8xf32> to vector<8x1xf32>
    %cst_65 = arith.constant 3.200000e+01 : f32
    %149 = vector.broadcast %cst_65 : f32 to vector<8x1xf32>
    %150 = arith.divf %148, %149 : vector<8x1xf32>
    %151 = vector.broadcast %150 : vector<8x1xf32> to vector<8x32xf32>
    %152 = arith.subf %146, %151 : vector<8x32xf32>
    %153 = arith.mulf %152, %152 : vector<8x32xf32>
    %cst_66 = arith.constant dense<0.000000e+00> : vector<8xf32>
    %154 = vector.multi_reduction <add>, %153, %cst_66 [1] : vector<8x32xf32> to vector<8xf32>
    %155 = vector.shape_cast %154 : vector<8xf32> to vector<8x1xf32>
    %cst_67 = arith.constant 3.200000e+01 : f32
    %156 = vector.broadcast %cst_67 : f32 to vector<8x1xf32>
    %157 = arith.divf %155, %156 : vector<8x1xf32>
    %158 = vector.broadcast %150 : vector<8x1xf32> to vector<8x32xf32>
    %159 = arith.subf %146, %158 : vector<8x32xf32>
    %cst_68 = arith.constant 9.99999974E-6 : f32
    %160 = vector.broadcast %cst_68 : f32 to vector<8x1xf32>
    %161 = arith.addf %157, %160 : vector<8x1xf32>
    %162 = math.rsqrt %161 : vector<8x1xf32>
    %163 = vector.broadcast %162 : vector<8x1xf32> to vector<8x32xf32>
    %164 = arith.mulf %159, %163 : vector<8x32xf32>
    %165 = vector.shape_cast %117 : vector<32xf32> to vector<1x32xf32>
    %166 = vector.broadcast %165 : vector<1x32xf32> to vector<8x32xf32>
    %167 = arith.mulf %164, %166 : vector<8x32xf32>
    %168 = vector.shape_cast %119 : vector<32xf32> to vector<1x32xf32>
    %169 = vector.broadcast %168 : vector<1x32xf32> to vector<8x32xf32>
    %170 = arith.addf %167, %169 : vector<8x32xf32>
    %c0_69 = arith.constant 0 : index
    %c0_70 = arith.constant 0 : index
    %171 = vector.load %arg19[%c0_69, %c0_70] : memref<32x64xbf16, #tpu.memory_space<vmem>>, vector<32x64xbf16>
    %c0_71 = arith.constant 0 : index
    %c0_72 = arith.constant 0 : index
    %172 = vector.load %arg20[%c0_71, %c0_72] : memref<1x64xf32, #tpu.memory_space<vmem>>, vector<1x64xf32>
    %173 = vector.shape_cast %172 : vector<1x64xf32> to vector<64xf32>
    %c0_73 = arith.constant 0 : index
    %c0_74 = arith.constant 0 : index
    %174 = vector.load %arg21[%c0_73, %c0_74] : memref<64x32xbf16, #tpu.memory_space<vmem>>, vector<64x32xbf16>
    %c0_75 = arith.constant 0 : index
    %c0_76 = arith.constant 0 : index
    %175 = vector.load %arg22[%c0_75, %c0_76] : memref<1x32xf32, #tpu.memory_space<vmem>>, vector<1x32xf32>
    %176 = vector.shape_cast %175 : vector<1x32xf32> to vector<32xf32>
    %c0_77 = arith.constant 0 : index
    %c0_78 = arith.constant 0 : index
    %177 = vector.load %arg23[%c0_77, %c0_78] : memref<1x32xf32, #tpu.memory_space<vmem>>, vector<1x32xf32>
    %178 = vector.shape_cast %177 : vector<1x32xf32> to vector<32xf32>
    %c0_79 = arith.constant 0 : index
    %c0_80 = arith.constant 0 : index
    %179 = vector.load %arg24[%c0_79, %c0_80] : memref<1x32xf32, #tpu.memory_space<vmem>>, vector<1x32xf32>
    %180 = vector.shape_cast %179 : vector<1x32xf32> to vector<32xf32>
    %181 = arith.truncf %170 : vector<8x32xf32> to vector<8x32xbf16>
    %cst_81 = arith.constant dense<0.000000e+00> : vector<8x64xf32>
    %182 = tpu.matmul %181, %171, %cst_81 {dimension_numbers = #tpu.dot_dimension_numbers<[1], [0], [0], [1], [0, 0, 1, 1], [], []>} : vector<8x32xbf16>, vector<32x64xbf16>, vector<8x64xf32> -> vector<8x64xf32>
    %183 = vector.shape_cast %173 : vector<64xf32> to vector<1x64xf32>
    %184 = vector.broadcast %183 : vector<1x64xf32> to vector<8x64xf32>
    %185 = arith.addf %182, %184 : vector<8x64xf32>
    %cst_82 = arith.constant 0.000000e+00 : f32
    %186 = vector.broadcast %cst_82 : f32 to vector<8x64xf32>
    %187 = arith.maximumf %185, %186 : vector<8x64xf32>
    %188 = arith.truncf %187 : vector<8x64xf32> to vector<8x64xbf16>
    %cst_83 = arith.constant dense<0.000000e+00> : vector<8x32xf32>
    %189 = tpu.matmul %188, %174, %cst_83 {dimension_numbers = #tpu.dot_dimension_numbers<[1], [0], [0], [1], [0, 0, 1, 1], [], []>} : vector<8x64xbf16>, vector<64x32xbf16>, vector<8x32xf32> -> vector<8x32xf32>
    %190 = vector.shape_cast %176 : vector<32xf32> to vector<1x32xf32>
    %191 = vector.broadcast %190 : vector<1x32xf32> to vector<8x32xf32>
    %192 = arith.addf %189, %191 : vector<8x32xf32>
    %193 = arith.addf %192, %170 : vector<8x32xf32>
    %cst_84 = arith.constant dense<0.000000e+00> : vector<8xf32>
    %194 = vector.multi_reduction <add>, %193, %cst_84 [1] : vector<8x32xf32> to vector<8xf32>
    %195 = vector.shape_cast %194 : vector<8xf32> to vector<8x1xf32>
    %cst_85 = arith.constant 3.200000e+01 : f32
    %196 = vector.broadcast %cst_85 : f32 to vector<8x1xf32>
    %197 = arith.divf %195, %196 : vector<8x1xf32>
    %198 = vector.broadcast %197 : vector<8x1xf32> to vector<8x32xf32>
    %199 = arith.subf %193, %198 : vector<8x32xf32>
    %200 = arith.mulf %199, %199 : vector<8x32xf32>
    %cst_86 = arith.constant dense<0.000000e+00> : vector<8xf32>
    %201 = vector.multi_reduction <add>, %200, %cst_86 [1] : vector<8x32xf32> to vector<8xf32>
    %202 = vector.shape_cast %201 : vector<8xf32> to vector<8x1xf32>
    %cst_87 = arith.constant 3.200000e+01 : f32
    %203 = vector.broadcast %cst_87 : f32 to vector<8x1xf32>
    %204 = arith.divf %202, %203 : vector<8x1xf32>
    %205 = vector.broadcast %197 : vector<8x1xf32> to vector<8x32xf32>
    %206 = arith.subf %193, %205 : vector<8x32xf32>
    %cst_88 = arith.constant 9.99999974E-6 : f32
    %207 = vector.broadcast %cst_88 : f32 to vector<8x1xf32>
    %208 = arith.addf %204, %207 : vector<8x1xf32>
    %209 = math.rsqrt %208 : vector<8x1xf32>
    %210 = vector.broadcast %209 : vector<8x1xf32> to vector<8x32xf32>
    %211 = arith.mulf %206, %210 : vector<8x32xf32>
    %212 = vector.shape_cast %178 : vector<32xf32> to vector<1x32xf32>
    %213 = vector.broadcast %212 : vector<1x32xf32> to vector<8x32xf32>
    %214 = arith.mulf %211, %213 : vector<8x32xf32>
    %215 = vector.shape_cast %180 : vector<32xf32> to vector<1x32xf32>
    %216 = vector.broadcast %215 : vector<1x32xf32> to vector<8x32xf32>
    %217 = arith.addf %214, %216 : vector<8x32xf32>
    %c0_89 = arith.constant 0 : index
    %c0_90 = arith.constant 0 : index
    %c0_91 = arith.constant 0 : index
    %218 = vector.load %arg25[%c0_89, %c0_90, %c0_91] : memref<1x8x32xf32, #tpu.memory_space<vmem>>, vector<1x8x32xf32>
    %219 = vector.shape_cast %218 : vector<1x8x32xf32> to vector<8x32xf32>
    %220 = vector.shape_cast %217 : vector<8x32xf32> to vector<1x8x32xf32>
    tpu.vector_store %arg25[%c0_89, %c0_90, %c0_91], %220 {strides = array<i32>} : memref<1x8x32xf32, #tpu.memory_space<vmem>>, vector<1x8x32xf32>,
    %221 = arith.truncf %50 : vector<4x8x8xf32> to vector<4x8x8xbf16>
    %c0_92 = arith.constant 0 : index
    %c0_93 = arith.constant 0 : index
    %c0_94 = arith.constant 0 : index
    %c0_95 = arith.constant 0 : index
    %222 = vector.load %arg26[%c0_92, %c0_93, %c0_94, %c0_95] : memref<1x4x8x8xbf16, #tpu.memory_space<vmem>>, vector<1x4x8x8xbf16>
    %223 = vector.shape_cast %222 : vector<1x4x8x8xbf16> to vector<4x8x8xbf16>
    %224 = vector.shape_cast %221 : vector<4x8x8xbf16> to vector<1x4x8x8xbf16>
    tpu.vector_store %arg26[%c0_92, %c0_93, %c0_94, %c0_95], %224 {strides = array<i32>} : memref<1x4x8x8xbf16, #tpu.memory_space<vmem>>, vector<1x4x8x8xbf16>,
    %225 = arith.truncf %137 : vector<4x8x8xf32> to vector<4x8x8xbf16>
    %c0_96 = arith.constant 0 : index
    %c0_97 = arith.constant 0 : index
    %c0_98 = arith.constant 0 : index
    %c0_99 = arith.constant 0 : index
    %226 = vector.load %arg27[%c0_96, %c0_97, %c0_98, %c0_99] : memref<1x4x8x8xbf16, #tpu.memory_space<vmem>>, vector<1x4x8x8xbf16>
    %227 = vector.shape_cast %226 : vector<1x4x8x8xbf16> to vector<4x8x8xbf16>
    %228 = vector.shape_cast %225 : vector<4x8x8xbf16> to vector<1x4x8x8xbf16>
    tpu.vector_store %arg27[%c0_96, %c0_97, %c0_98, %c0_99], %228 {strides = array<i32>} : memref<1x4x8x8xbf16, #tpu.memory_space<vmem>>, vector<1x4x8x8xbf16>,
    return
  }
  func.func @transform_0(%arg0: i32) -> (i32, i32, i32) {
    %c0_i32 = arith.constant 0 : i32
    %c0_i32_0 = arith.constant 0 : i32
    %c0_i32_1 = arith.constant 0 : i32
    return %arg0, %c0_i32, %c0_i32_0 : i32, i32, i32
  }
  func.func @transform_1(%arg0: i32) -> (i32, i32, i32) {
    %c0_i32 = arith.constant 0 : i32
    %c0_i32_0 = arith.constant 0 : i32
    %c0_i32_1 = arith.constant 0 : i32
    return %arg0, %c0_i32, %c0_i32_0 : i32, i32, i32
  }
  func.func @transform_2(%arg0: i32) -> (i32, i32, i32) {
    %c0_i32 = arith.constant 0 : i32
    %c0_i32_0 = arith.constant 0 : i32
    %c0_i32_1 = arith.constant 0 : i32
    return %arg0, %c0_i32, %c0_i32_0 : i32, i32, i32
  }
  func.func @transform_3(%arg0: i32) -> (i32, i32, i32) {
    %c0_i32 = arith.constant 0 : i32
    %c0_i32_0 = arith.constant 0 : i32
    %c0_i32_1 = arith.constant 0 : i32
    return %arg0, %c0_i32, %c0_i32_0 : i32, i32, i32
  }
  func.func @transform_4(%arg0: i32) -> (i32, i32) {
    %c0_i32 = arith.constant 0 : i32
    %c0_i32_0 = arith.constant 0 : i32
    %c0_i32_1 = arith.constant 0 : i32
    return %c0_i32, %c0_i32_0 : i32, i32
  }
  func.func @transform_5(%arg0: i32) -> (i32, i32) {
    %c0_i32 = arith.constant 0 : i32
    %c0_i32_0 = arith.constant 0 : i32
    %c0_i32_1 = arith.constant 0 : i32
    return %c0_i32, %c0_i32_0 : i32, i32
  }
  func.func @transform_6(%arg0: i32) -> (i32, i32, i32) {
    %c0_i32 = arith.constant 0 : i32
    %c0_i32_0 = arith.constant 0 : i32
    %c0_i32_1 = arith.constant 0 : i32
    %c0_i32_2 = arith.constant 0 : i32
    return %c0_i32, %c0_i32_0, %c0_i32_1 : i32, i32, i32
  }
  func.func @transform_7(%arg0: i32) -> (i32, i32) {
    %c0_i32 = arith.constant 0 : i32
    %c0_i32_0 = arith.constant 0 : i32
    %c0_i32_1 = arith.constant 0 : i32
    return %c0_i32, %c0_i32_0 : i32, i32
  }
  func.func @transform_8(%arg0: i32) -> (i32, i32) {
    %c0_i32 = arith.constant 0 : i32
    %c0_i32_0 = arith.constant 0 : i32
    %c0_i32_1 = arith.constant 0 : i32
    return %c0_i32, %c0_i32_0 : i32, i32
  }
  func.func @transform_9(%arg0: i32) -> (i32, i32) {
    %c0_i32 = arith.constant 0 : i32
    %c0_i32_0 = arith.constant 0 : i32
    %c0_i32_1 = arith.constant 0 : i32
    return %c0_i32, %c0_i32_0 : i32, i32
  }
  func.func @transform_10(%arg0: i32) -> (i32, i32) {
    %c0_i32 = arith.constant 0 : i32
    %c0_i32_0 = arith.constant 0 : i32
    %c0_i32_1 = arith.constant 0 : i32
    return %c0_i32, %c0_i32_0 : i32, i32
  }
  func.func @transform_11(%arg0: i32) -> (i32, i32) {
    %c0_i32 = arith.constant 0 : i32
    %c0_i32_0 = arith.constant 0 : i32
    %c0_i32_1 = arith.constant 0 : i32
    return %c0_i32, %c0_i32_0 : i32, i32
  }
  func.func @transform_12(%arg0: i32) -> (i32, i32) {
    %c0_i32 = arith.constant 0 : i32
    %c0_i32_0 = arith.constant 0 : i32
    %c0_i32_1 = arith.constant 0 : i32
    return %c0_i32, %c0_i32_0 : i32, i32
  }
  func.func @transform_13(%arg0: i32) -> (i32, i32) {
    %c0_i32 = arith.constant 0 : i32
    %c0_i32_0 = arith.constant 0 : i32
    %c0_i32_1 = arith.constant 0 : i32
    return %c0_i32, %c0_i32_0 : i32, i32
  }
  func.func @transform_14(%arg0: i32) -> (i32, i32, i32) {
    %c0_i32 = arith.constant 0 : i32
    %c0_i32_0 = arith.constant 0 : i32
    %c0_i32_1 = arith.constant 0 : i32
    %c0_i32_2 = arith.constant 0 : i32
    return %c0_i32, %c0_i32_0, %c0_i32_1 : i32, i32, i32
  }
  func.func @transform_15(%arg0: i32) -> (i32, i32) {
    %c0_i32 = arith.constant 0 : i32
    %c0_i32_0 = arith.constant 0 : i32
    %c0_i32_1 = arith.constant 0 : i32
    return %c0_i32, %c0_i32_0 : i32, i32
  }
  func.func @transform_16(%arg0: i32) -> (i32, i32) {
    %c0_i32 = arith.constant 0 : i32
    %c0_i32_0 = arith.constant 0 : i32
    %c0_i32_1 = arith.constant 0 : i32
    return %c0_i32, %c0_i32_0 : i32, i32
  }
  func.func @transform_17(%arg0: i32) -> (i32, i32) {
    %c0_i32 = arith.constant 0 : i32
    %c0_i32_0 = arith.constant 0 : i32
    %c0_i32_1 = arith.constant 0 : i32
    return %c0_i32, %c0_i32_0 : i32, i32
  }
  func.func @transform_18(%arg0: i32) -> (i32, i32) {
    %c0_i32 = arith.constant 0 : i32
    %c0_i32_0 = arith.constant 0 : i32
    %c0_i32_1 = arith.constant 0 : i32
    return %c0_i32, %c0_i32_0 : i32, i32
  }
  func.func @transform_19(%arg0: i32) -> (i32, i32) {
    %c0_i32 = arith.constant 0 : i32
    %c0_i32_0 = arith.constant 0 : i32
    %c0_i32_1 = arith.constant 0 : i32
    return %c0_i32, %c0_i32_0 : i32, i32
  }
  func.func @transform_20(%arg0: i32) -> (i32, i32) {
    %c0_i32 = arith.constant 0 : i32
    %c0_i32_0 = arith.constant 0 : i32
    %c0_i32_1 = arith.constant 0 : i32
    return %c0_i32, %c0_i32_0 : i32, i32
  }
  func.func @transform_21(%arg0: i32) -> (i32, i32) {
    %c0_i32 = arith.constant 0 : i32
    %c0_i32_0 = arith.constant 0 : i32
    %c0_i32_1 = arith.constant 0 : i32
    return %c0_i32, %c0_i32_0 : i32, i32
  }
  func.func @transform_22(%arg0: i32) -> (i32, i32) {
    %c0_i32 = arith.constant 0 : i32
    %c0_i32_0 = arith.constant 0 : i32
    %c0_i32_1 = arith.constant 0 : i32
    return %c0_i32, %c0_i32_0 : i32, i32
  }
  func.func @transform_23(%arg0: i32) -> (i32, i32) {
    %c0_i32 = arith.constant 0 : i32
    %c0_i32_0 = arith.constant 0 : i32
    %c0_i32_1 = arith.constant 0 : i32
    return %c0_i32, %c0_i32_0 : i32, i32
  }
  func.func @transform_24(%arg0: i32) -> (i32, i32, i32) {
    %c0_i32 = arith.constant 0 : i32
    %c0_i32_0 = arith.constant 0 : i32
    %c0_i32_1 = arith.constant 0 : i32
    return %arg0, %c0_i32, %c0_i32_0 : i32, i32, i32
  }
  func.func @transform_25(%arg0: i32) -> (i32, i32, i32, i32) {
    %c0_i32 = arith.constant 0 : i32
    %c0_i32_0 = arith.constant 0 : i32
    %c0_i32_1 = arith.constant 0 : i32
    %c0_i32_2 = arith.constant 0 : i32
    return %arg0, %c0_i32, %c0_i32_0, %c0_i32_1 : i32, i32, i32, i32
  }
  func.func @transform_26(%arg0: i32) -> (i32, i32, i32, i32) {
    %c0_i32 = arith.constant 0 : i32
    %c0_i32_0 = arith.constant 0 : i32
    %c0_i32_1 = arith.constant 0 : i32
    %c0_i32_2 = arith.constant 0 : i32
    return %arg0, %c0_i32, %c0_i32_0, %c0_i32_1 : i32, i32, i32, i32
  }
}

</mosaic_0001>

<bundles_post_ra>
// kernel: tpu_custom_call.1
= control target key start
LH: loop header
LB: loop body
LE: loop exit
PB: predicated region body
PF: predicated region fallthrough
CT: control target
= control target key end

     0   :  { %s5160_s0 = inlined_call_operand.vmem [shape: f32[2,8,32], index: 0, kind: input, shape index: {}]   ;;  %s5161_s1 = inlined_call_operand.vmem [shape: f32[2,8,32], index: 1, kind: input, shape index: {}]   ;;  %s5162_s2 = inlined_call_operand.hbm [shape: bf16[2,8,8], index: 2, kind: input, shape index: {}]   ;;  %s5163_s3 = inlined_call_operand.hbm [shape: bf16[2,8,8], index: 3, kind: input, shape index: {}]   ;;  %s5164_s4 = inlined_call_operand.vmem [shape: bf16[32,96], index: 4, kind: input, shape index: {}]   ;;  %s5165_s5 = inlined_call_operand.hbm [shape: f32[1,96], index: 5, kind: input, shape index: {}]   ;;  %s5166_s6 = inlined_call_operand.hbm [shape: bf16[4,8,32], index: 6, kind: input, shape index: {}]   ;;  %s5167_s7 = inlined_call_operand.hbm [shape: f32[1,32], index: 7, kind: input, shape index: {}]   ;;  %s5168_s8 = inlined_call_operand.hbm [shape: f32[1,32], index: 8, kind: input, shape index: {}]   ;;  %s5169_s9 = inlined_call_operand.hbm [shape: f32[1,32], index: 9, kind: input, shape index: {}]   ;;  %s5170_s10 = inlined_call_operand.hbm [shape: bf16[32,32], index: 10, kind: input, shape index: {}]   ;;  %s5171_s11 = inlined_call_operand.hbm [shape: f32[1,32], index: 11, kind: input, shape index: {}]   ;;  %s5172_s12 = inlined_call_operand.hbm [shape: bf16[32,64], index: 12, kind: input, shape index: {}]   ;;  %s5173_s13 = inlined_call_operand.hbm [shape: f32[1,64], index: 13, kind: input, shape index: {}]   ;;  %s5174_s14 = inlined_call_operand.hbm [shape: bf16[4,8,32], index: 14, kind: input, shape index: {}]   ;;  %s5175_s15 = inlined_call_operand.hbm [shape: f32[1,32], index: 15, kind: input, shape index: {}]   ;;  %s5176_s16 = inlined_call_operand.hbm [shape: f32[1,32], index: 16, kind: input, shape index: {}]   ;;  %s5177_s17 = inlined_call_operand.hbm [shape: f32[1,32], index: 17, kind: input, shape index: {}]   ;;  %s5178_s18 = inlined_call_operand.vmem [shape: bf16[32,64], index: 18, kind: input, shape index: {}]   ;;  %s5179_s19 = inlined_call_operand.vmem [shape: f32[1,64], index: 19, kind: input, shape index: {}]   ;;  %s5180_s20 = inlined_call_operand.vmem [shape: bf16[64,32], index: 20, kind: input, shape index: {}]   ;;  %s5181_s21 = inlined_call_operand.vmem [shape: f32[1,32], index: 21, kind: input, shape index: {}]   ;;  %s5182_s22 = inlined_call_operand.vmem [shape: f32[1,32], index: 22, kind: input, shape index: {}]   ;;  %s5183_s23 = inlined_call_operand.vmem [shape: f32[1,32], index: 23, kind: input, shape index: {}]   ;;  %s5184_s24 = inlined_call_operand.hbm [shape: f32[2,8,32], index: 24, kind: output, shape index: {0}]   ;;  %s5185_s25 = inlined_call_operand.hbm [shape: bf16[2,4,8,8], index: 25, kind: output, shape index: {1}]   ;;  %s5186_s26 = inlined_call_operand.hbm [shape: bf16[2,4,8,8], index: 26, kind: output, shape index: {2}]  }
   0x1   :  { %5201 = sst [smem:[#allocation41_spill]] %s5160_s0 }
   0x2   :  { %5202 = sst [smem:[#allocation42_spill]] %s5161_s1 }
   0x3   :  { %5203 = sst [smem:[#allocation43_spill]] %s5162_s2 }
   0x4   :  { %5204 = sst [smem:[#allocation44_spill]] %s5163_s3 }
   0x5   :  { %5205 = sst [smem:[#allocation45_spill]] %s5164_s4 }
   0x6   :  { %5206 = sst [smem:[#allocation46_spill]] %s5165_s5 }
   0x7   :  { %5207 = sst [smem:[#allocation47_spill]] %s5166_s6 }
   0x8   :  { %5208 = sst [smem:[#allocation48_spill]] %s5167_s7 }
   0x9   :  { %5209 = sst [smem:[#allocation49_spill]] %s5168_s8 }
   0xa   :  { %5210 = sst [smem:[#allocation50_spill]] %s5169_s9 }
   0xb   :  { %5211 = sst [smem:[#allocation51_spill]] %s5170_s10 }
   0xc   :  { %5212 = sst [smem:[#allocation52_spill]] %s5171_s11 }
   0xd   :  { %5213 = sst [smem:[#allocation53_spill]] %s5172_s12 }
   0xe   :  { %5214 = sst [smem:[#allocation54_spill]] %s5173_s13 }
   0xf   :  { %5215 = sst [smem:[#allocation55_spill]] %s5174_s14 }
  0x10   :  { %5216 = sst [smem:[#allocation56_spill]] %s5175_s15 }
  0x11   :  { %5217 = sst [smem:[#allocation57_spill]] %s5176_s16 }
  0x12   :  { %5218 = sst [smem:[#allocation58_spill]] %s5177_s17 }
  0x13   :  { %5219 = sst [smem:[#allocation59_spill]] %s5178_s18 }
  0x14   :  { %5220 = sst [smem:[#allocation60_spill]] %s5179_s19 }
  0x15   :  { %5221 = sst [smem:[#allocation61_spill]] %s5180_s20 }
  0x16   :  { %5222 = sst [smem:[#allocation62_spill]] %s5181_s21 }
  0x17   :  { %5223 = sst [smem:[#allocation63_spill]] %s5182_s22 }
  0x18   :  { %5224 = sst [smem:[#allocation64_spill]] %s5183_s23 }
  0x19   :  { %5225 = sst [smem:[#allocation65_spill]] %s5184_s24 }
  0x1a   :  { %5226 = sst [smem:[#allocation66_spill]] %s5185_s25 }
  0x1b   :  { %5227 = sst [smem:[#allocation67_spill]] %s5186_s26 }
  0x1c   :  { %32 = vsyncpa [#allocation3], 0 }
  0x1d   :  { %34 = vsyncpa [#allocation3 + $0x1], 0 }
  0x1e   :  { %35 = vsyncpa [#allocation6], 0 }
  0x1f   :  { %37 = vsyncpa [#allocation6 + $0x1], 0 }
  0x20   :  { %38 = vsyncpa [#allocation9], 0 }
  0x21   :  { %39 = vsyncpa [#allocation12], 0 }
  0x22   :  { %40 = vsyncpa [#allocation15], 0 }
  0x23   :  { %41 = vsyncpa [#allocation18], 0 }
  0x24   :  { %42 = vsyncpa [#allocation21], 0 }
  0x25   :  { %43 = vsyncpa [#allocation24], 0 }
  0x26   :  { %44 = vsyncpa [#allocation4], 0 }
  0x27   :  { %46 = vsyncpa [#allocation4 + $0x1], 0 }
  0x28   :  { %47 = vsyncpa [#allocation28], 0 }
  0x29   :  { %49 = vsyncpa [#allocation28 + $0x1], 0  ;;  %s4342_s27 = smov 0   ;;  %s4344_s3 = smov 0  }
  0x2a   :  { %s4346_s7 = smov 0   ;;  %s4348_s28 = smov 0  }
  0x2b LB: > { %s5228_s29 = sld [smem:[#allocation46_spill]]  ;;  %s4366_s9 = sadd.s32 4294967295, %s4181_s28   ;;  %s4181_s28 = sphi %s4348_s28, %s5268_s28   ;;  %s4177_s7 = sphi %s4346_s7, %s5267_s7   ;;  %s4173_s3 = sphi %s4344_s3, %s5266_s3   ;;  %s4169_s27 = sphi %s4342_s27, %s5265_s27  }
  0x2c   : > { %p3146_p0 = scmp.ge.s32.totalorder %s4181_s28, 1  ;;  %p128_p1 = scmp.eq.s32.totalorder %s4366_s9, 0 }
  0x2d   : > { %p662_p2 = scmp.lt.s32.totalorder %s4181_s28, 3  ;;  %s4183_s2 = smov [#allocation7]  }
  0x2e   : > { %s679_s5 = sshll.u32 %s4183_s2, 4  ;;  %s5230_s1 = sld [smem:[#allocation47_spill]]  ;;  %s680_s5 = int_to_ptr.vmem [resolvable:$true] %s679_s5 }
  0x2f   : > { %p4371_p3 = pnand %p3146_p0, %p662_p2  ;;  %s4185_s2 = smov 64  }
  0x30   : > { %s4186_s24 = smov 4   ;;  %s4187_s26 = smov [#allocation11]  }
  0x31   : > { %s677_s0 = sshll.u32 %s5228_s29, 4  ;;  %p3349_p5 = pneg %p4371_p3  ;;  %s678_s0 = int_to_ptr.hbm [resolvable:$true] %s677_s0 }
  0x32   : > { %s4184_s29 = smov [#allocation8]   ;;  %s717_s25 = sshll.u32 %s4187_s26, 4  ;;  %s718_s25 = int_to_ptr.vmem [resolvable:$true] %s717_s25 }
  0x33   : > { %p4383_p6 = pnand %p3349_p5, %p128_p1  ;;  %s690_s23 = sshll.u32 %s4184_s29, 4  ;;  %s691_s23 = int_to_ptr.vmem [resolvable:$true] %s690_s23 }
  0x34   : > { %s688_s8 = sshll.u32 %s5230_s1, 4  ;;  %s5232_s1 = sld [smem:[#allocation49_spill]]  ;;  %s689_s8 = int_to_ptr.hbm [resolvable:$true] %s688_s8 }
  0x35   : > { %3352 = dma.hbm_to_vmem [thread:$0]  (!%p4383_p6), %s678_s0, 16, %s680_s5, [#allocation6]  }
  0x36   : > { %3355 = dma.hbm_to_vmem [thread:$0]  (!%p4383_p6), %s689_s8, 256, %s691_s23, [#allocation9], %s4185_s2, %s4185_s2, %s4186_s24  }
  0x37   : > { %s5233_s0 = sld [smem:[#allocation51_spill]]  ;;  %s4188_s19 = smov [#allocation14]  }
  0x38   : > { %s740_s20 = sshll.u32 %s4188_s19, 4  ;;  %s5234_s12 = sld [smem:[#allocation53_spill]]  ;;  %s741_s20 = int_to_ptr.vmem [resolvable:$true] %s740_s20 }
  0x39   : > { %s5235_s14 = sld [smem:[#allocation55_spill]]  ;;  %s4190_s18 = smov [#allocation20]  }
  0x3a   : > { %s715_s22 = sshll.u32 %s5232_s1, 4  ;;  %s792_s19 = sshll.u32 %s4190_s18, 4  ;;  %s716_s22 = int_to_ptr.hbm [resolvable:$true] %s715_s22  ;;  %s793_s19 = int_to_ptr.vmem [resolvable:$true] %s792_s19 }
  0x3b   : > { %3361 = dma.hbm_to_vmem [thread:$0]  (!%p4383_p6), %s716_s22, 16, %s718_s25, [#allocation12]  }
  0x3c   : > { %s4189_s22 = smov [#allocation17]   ;;  %s5236_s16 = sld [smem:[#allocation57_spill]] }
  0x3d   : > { %s738_s5 = sshll.u32 %s5233_s0, 4  ;;  %s766_s25 = sshll.u32 %s4189_s22, 4  ;;  %s739_s5 = int_to_ptr.hbm [resolvable:$true] %s738_s5  ;;  %s767_s25 = int_to_ptr.vmem [resolvable:$true] %s766_s25 }
  0x3e   : > { %s764_s8 = sshll.u32 %s5234_s12, 4  ;;  %s4191_s26 = smov [#allocation23]   ;;  %s765_s8 = int_to_ptr.hbm [resolvable:$true] %s764_s8 }
  0x3f   : > { %3367 = dma.hbm_to_vmem [thread:$0]  (!%p4383_p6), %s739_s5, 256, %s741_s20, [#allocation15], %s4185_s2, %s4185_s2, %s4186_s24  }
  0x40   : > { %s790_s10 = sshll.u32 %s5235_s14, 4  ;;  %s5237_s5 = sld [smem:[#allocation48_spill]]  ;;  %s791_s10 = int_to_ptr.hbm [resolvable:$true] %s790_s10 }
  0x41   : > { %3373 = dma.hbm_to_vmem [thread:$0]  (!%p4383_p6), %s765_s8, 256, %s767_s25, [#allocation18], %s4185_s2, %s4185_s2, %s4186_s24  }
  0x42   : > { %s817_s20 = sshll.u32 %s5236_s16, 4  ;;  %s819_s8 = sshll.u32 %s4191_s26, 4  ;;  %s818_s20 = int_to_ptr.hbm [resolvable:$true] %s817_s20  ;;  %s820_s8 = int_to_ptr.vmem [resolvable:$true] %s819_s8 }
  0x43   : > { %3379 = dma.hbm_to_vmem [thread:$0]  (!%p4383_p6), %s791_s10, 256, %s793_s19, [#allocation21], %s4185_s2, %s4185_s2, %s4186_s24  }
  0x44   : > { %3385 = dma.hbm_to_vmem [thread:$0]  (!%p4383_p6), %s818_s20, 16, %s820_s8, [#allocation24]  }
  0x45   : > { %s4192_s21 = smov [#allocation10]   ;;  %s5238_s6 = sld [smem:[#allocation50_spill]] }
  0x46   : > { %s703_s23 = sshll.u32 %s5237_s5, 4  ;;  %s705_s22 = sshll.u32 %s4192_s21, 4  ;;  %s704_s23 = int_to_ptr.hbm [resolvable:$true] %s703_s23  ;;  %s706_s22 = int_to_ptr.vmem [resolvable:$true] %s705_s22 }
  0x47   : > { %3358 = dma.hbm_to_vmem [thread:$0]  (!%p4383_p6), %s704_s23, 16, %s706_s22, [#allocation9]  }
  0x48   : > { %s5239_s11 = sld [smem:[#allocation52_spill]]  ;;  %s4193_s19 = smov [#allocation13]  }
  0x49   : > { %s729_s29 = sshll.u32 %s4193_s19, 4  ;;  %s4194_s20 = smov [#allocation16]   ;;  %s730_s29 = int_to_ptr.vmem [resolvable:$true] %s729_s29 }
  0x4a   : > { %s755_s0 = sshll.u32 %s4194_s20, 4  ;;  %s5240_s13 = sld [smem:[#allocation54_spill]]  ;;  %s756_s0 = int_to_ptr.vmem [resolvable:$true] %s755_s0 }
  0x4b   : > { %s727_s1 = sshll.u32 %s5238_s6, 4  ;;  %s5241_s15 = sld [smem:[#allocation56_spill]]  ;;  %s728_s1 = int_to_ptr.hbm [resolvable:$true] %s727_s1 }
  0x4c   : > { %3364 = dma.hbm_to_vmem [thread:$0]  (!%p4383_p6), %s728_s1, 16, %s730_s29, [#allocation12]  }
  0x4d   : > { %s4195_s25 = smov [#allocation19]   ;;  %s4196_s6 = smov [#allocation22]  }
  0x4e   : > { %s753_s10 = sshll.u32 %s5239_s11, 4  ;;  %s781_s18 = sshll.u32 %s4195_s25, 4  ;;  %s754_s10 = int_to_ptr.hbm [resolvable:$true] %s753_s10  ;;  %s782_s18 = int_to_ptr.vmem [resolvable:$true] %s781_s18 }
  0x4f   : > { %3370 = dma.hbm_to_vmem [thread:$0]  (!%p4383_p6), %s754_s10, 16, %s756_s0, [#allocation15]  }
  0x50   : > { %s779_s8 = sshll.u32 %s5240_s13, 4  ;;  %s807_s1 = sshll.u32 %s4196_s6, 4  ;;  %s780_s8 = int_to_ptr.hbm [resolvable:$true] %s779_s8  ;;  %s808_s1 = int_to_ptr.vmem [resolvable:$true] %s807_s1 }
  0x51   : > { %s805_s22 = sshll.u32 %s5241_s15, 4  ;;  %s5242_s17 = sld [smem:[#allocation58_spill]]  ;;  %s806_s22 = int_to_ptr.hbm [resolvable:$true] %s805_s22 }
  0x52   : > { %3376 = dma.hbm_to_vmem [thread:$0]  (!%p4383_p6), %s780_s8, 16, %s782_s18, [#allocation18]  }
  0x53   : > { %3382 = dma.hbm_to_vmem [thread:$0]  (!%p4383_p6), %s806_s22, 16, %s808_s1, [#allocation21]  }
  0x54   : > { %s4197_s19 = smov [#allocation25]   ;;  %s5195_s20 = sadd.s32 4294967294, %s4181_s28  }
  0x55   : > { %s831_s29 = sshll.u32 %s4197_s19, 4  ;;  %s4460_s0 = sadd.s32 1, %s4181_s28   ;;  %s832_s29 = int_to_ptr.vmem [resolvable:$true] %s831_s29 }
  0x56   : > { %s114_s5 = sadd.s32 1, %s4177_s7  ;;  %s111_s26 = ssub.s32 %s4181_s28, %s4460_s0 }
  0x57   : > { %s829_s10 = sshll.u32 %s5242_s17, 4  ;;  %p121_p7 = scmp.ne.s32.totalorder %s4177_s7, %s4173_s3  ;;  %s830_s10 = int_to_ptr.hbm [resolvable:$true] %s829_s10 }
  0x58   : > { %3388 = dma.hbm_to_vmem [thread:$0]  (!%p4383_p6), %s830_s10, 16, %s832_s29, [#allocation24]  }
  0x59   : > { %p112_p8 = scmp.eq.s32.totalorder %s111_s26, 0  ;;  %p122_p9 = scmp.eq.s32.totalorder %s4181_s28, 0 }
  0x5a   : > { %p127_p10 = scmp.ne.s32.totalorder %s4173_s3, %s4169_s27  ;;  %p597_p11 = scmp.eq.s32.totalorder %s4366_s9, 1 }
  0x5b   : > { %s4472_s8 = scalar_select %p112_p8, %s4177_s7, %s114_s5  }
  0x5c   : > { %p4474_p12 = por %p122_p9, %p121_p7  ;;  %p4480_p13 = por %p128_p1, %p127_p10 }
  0x5d   : > { %p4484_p0 = por %p597_p11, %p121_p7  ;;  %p603_p2 = scmp.eq.s32.totalorder %s5195_s20, 1 }
  0x5e   : > { %p3419_p5 = scmp.lt.s32.totalorder %s4181_s28, 2  ;;  %s874_s22 = sand.u32 1, %s4177_s7  }
  0x5f   : > { %p4492_p6 = por %p603_p2, %p127_p10  ;;  %s3161_s18 = sshll.u32 %s874_s22, 2 }
  0x60   : > { %s3162_s6 = sshll.u32 %s4181_s28, 2  ;;  %s5247_s2 = sld [smem:[#allocation43_spill]] }
  0x61   : > { %s878_s29 = scalar_lea.vmem [#allocation2], %s3161_s18  ;;  %p4502_p7 = pnand %p3419_p5, %p4474_p12 }
  0x62   : > { %s886_s5 = sshll.u32 %s878_s29, 4  ;;  %s5249_s12 = sld [smem:[#allocation44_spill]]  ;;  %s887_s5 = int_to_ptr.vmem [resolvable:$true] %s886_s5 }
  0x63   : > { %s893_s14 = sand.u32 1, %s4181_s28   ;;  %s875_s15 = scalar_lea.sflag [#allocation3], %s874_s22 }
  0x64   : > { %p3967_p9 = pneg %p4502_p7 }
  0x66   : > { %s882_s10 = scalar_lea.hbm %s5247_s2, %s3162_s6  ;;  %s3970_s29 = scalar_lea.hbm %s5247_s2, 8 }
  0x67   : > { %s884_s19 = sshll.u32 %s882_s10, 4  ;;  %s885_s19 = int_to_ptr.hbm [resolvable:$true] %s884_s19 }
  0x68   : > { %s901_s13 = scalar_lea.hbm %s5249_s12, %s3162_s6  ;;  %s3963_s1 = sshra.s32 %s885_s19, 4  ;;  %s3964_s1 = int_to_ptr.hbm [resolvable:$true] %s3963_s1 }
  0x69   : > { %s3965_s24 = scalar_lea.hbm %s3964_s1, 4  ;;  %p3971_p12 = scmp.lt.s32.totalorder %s3964_s1, %s5247_s2 }
  0x6a   : > { %p3966_p8 = scmp.ne.s32.totalorder %s3964_s1, %s3965_s24  ;;  %p3972_p2 = scmp.lt.s32.totalorder %s3970_s29, %s3965_s24 }
  0x6c   : > { %p3968_p10 = pnand %p3967_p9, %p3966_p8  ;;  %p3973_p5 = por %p3972_p2, %p3971_p12 }
  0x6e   : > { %p3969_p11 = pneg %p3968_p10 }
  0x70   : > { %p3974_p4 = pnand %p3973_p5, %p3969_p11 }
  0x72   : > { %3977 = shalt.err (!%p3974_p4)
}
  0x73   : > { %3392 = dma.hbm_to_vmem [thread:$0]  (!%p4502_p7), %s885_s19, 64, %s887_s5, %s875_s15  }
  0x74   : > { %s903_s22 = sshll.u32 %s901_s13, 4  ;;  %s897_s6 = scalar_lea.vmem [#allocation5], %s3161_s18  ;;  %s904_s22 = int_to_ptr.hbm [resolvable:$true] %s903_s22 }
  0x75   : > { %s905_s16 = sshll.u32 %s897_s6, 4  ;;  %s894_s17 = scalar_lea.sflag [#allocation6], %s893_s14  ;;  %s906_s16 = int_to_ptr.vmem [resolvable:$true] %s905_s16 }
  0x76   : > { %s3993_s23 = sshra.s32 %s904_s22, 4  ;;  %s4000_s29 = scalar_lea.hbm %s5249_s12, 8  ;;  %s3994_s23 = int_to_ptr.hbm [resolvable:$true] %s3993_s23 }
  0x77   : > { %s3995_s10 = scalar_lea.hbm %s3994_s23, 4  ;;  %p4001_p4 = scmp.lt.s32.totalorder %s3994_s23, %s5249_s12 }
  0x78   : > { %p3996_p8 = scmp.ne.s32.totalorder %s3994_s23, %s3995_s10  ;;  %p4002_p11 = scmp.lt.s32.totalorder %s4000_s29, %s3995_s10 }
  0x7a   : > { %p3998_p10 = pnand %p3996_p8, %p3967_p9  ;;  %p4003_p2 = por %p4002_p11, %p4001_p4 }
  0x7c   : > { %p3999_p12 = pneg %p3998_p10 }
  0x7e   : > { %p4004_p5 = pnand %p4003_p2, %p3999_p12 }
  0x80   : > { %4007 = shalt.err (!%p4004_p5)
}
  0x81   : > { %3395 = dma.hbm_to_vmem [thread:$0]  (!%p4502_p7), %s904_s22, 64, %s906_s16, %s894_s17  }
  0x82   : > { %914 = sbr.rel (%p4371_p3) target bundleno = 3262 (0xcbe), region = 116  ;;  %s4537_s13 = sand.u32 (!%p4371_p3), 1, %s4173_s3  }
  0x83   : > { %s3166_s14 = sshll.u32 (!%p4371_p3), %s4537_s13, 2  ;;  %s917_s18 = scalar_lea.sflag (!%p4371_p3), [#allocation3], %s4537_s13 }
  0x84   : > { %s4541_s19 = scalar_lea.vmem (!%p4371_p3), [#allocation2], %s3166_s14 }
  0x87   : > { %4124 = dma.done.wait (%p4480_p13), %s917_s18, 64  }
  0x88   : > { %4126 = vsyncadd (%p4480_p13), %s917_s18, 4294967232  ;;  %s926_s16 = sand.u32 1, %s4366_s9   ;;  %s4550_s30 = scalar_lea.vmem [#allocation5], %s3166_s14 }
  0x89   : > { %s927_s17 = scalar_lea.sflag [#allocation6], %s926_s16 }
  0x8a   : > { %4128 = dma.done.wait (%p4480_p13), %s927_s17, 64  }
  0x8b   : > { %4130 = vsyncadd (%p4480_p13), %s927_s17, 4294967232 }
  0x8c   : > { %4132 = dma.done.wait (%p128_p1), [#allocation6], 16  }
  0x8d   : > { %4134 = vsyncadd (%p128_p1), [#allocation6], 4294967280 }
  0x8e   : > { %4136 = dma.done.wait (%p128_p1), [#allocation9], 272  }
  0x8f   : > { %4138 = vsyncadd (%p128_p1), [#allocation9], 4294967024 }
  0x90   : > { %4140 = dma.done.wait (%p128_p1), [#allocation12], 32  }
  0x91   : > { %4142 = vsyncadd (%p128_p1), [#allocation12], 4294967264 }
  0x92   : > { %4144 = dma.done.wait (%p128_p1), [#allocation15], 272  }
  0x93   : > { %4146 = vsyncadd (%p128_p1), [#allocation15], 4294967024 }
  0x94   : > { %4148 = dma.done.wait (%p128_p1), [#allocation18], 272  }
  0x95   : > { %4150 = vsyncadd (%p128_p1), [#allocation18], 4294967024 }
  0x96   : > { %4152 = dma.done.wait (%p128_p1), [#allocation21], 272  }
  0x97   : > { %4154 = vsyncadd (%p128_p1), [#allocation21], 4294967024 }
  0x98   : > { %4156 = dma.done.wait (%p128_p1), [#allocation24], 32  }
  0x99   : > { %4158 = vsyncadd (%p128_p1), [#allocation24], 4294967264  ;;  %p1088_p3 = scmp.lt.s32.totalorder %s4366_s9, 1  ;;  %s5250_s22 = sld [smem:[#allocation41_spill]]  ;;  %vm1120_vm0 = vcmask 261120   ;;  %vm1148_vm1 = vcmask 1047556  }
  0x9a   : > { %s5251_s1 = sld [smem:[#allocation45_spill]]  ;;  %v3520_v4 = vld [vmem:[#allocation7] ss:$0 sm:$0xff]  ;;  %s4198_s11 = smov 120   ;;  %v4202_v13 = vmov 1983009808  }
  0x9b   : > { %s4586_s4 = scalar_select %p1088_p3, %s4366_s9, 1  ;;  %v1153_v14 = vunpack.c.l.s4 %v4202_v13  ;;  %v4203_v26 = vmov 1934713408   ;;  %vm1522_vm2 = vcmask 64512   ;;  %vm1658_vm4 = vcmask 1043456  }
  0x9c   : > { %s4199_s15 = smov 112   ;;  %s4200_s14 = smov 104   ;;  %v1177_v27 = vunpack.c.l.s4 %v4203_v26  ;;  %vm2773_vm5 = vcmask 60416   ;;  %vm2724_vm14 = vcmask 523264  }
  0x9d   : > { %s3184_s5 = sshll.u32 %s4586_s4, 3  ;;  %s4201_s18 = smov 96   ;;  %v4616_v19 = vunpack.c.0.s8 %v1153_v14 }
  0x9e   : > { %v4626_v33 = vunpack.c.0.s8 %v1177_v27  ;;  %s3182_s17 = sshll.u32 %s4537_s13, 4  ;;  %s5253_s10 = sld [smem:[#allocation59_spill]] }
  0x9f   : > { %s1091_s6 = scalar_lea.vmem %s5250_s22, %s3184_s5  ;;  %s4781_s26 = scalar_lea.vmem [#allocation27], %s3182_s17 }
  0xa0   : > { %v3274_v0 = vld [vmem:[%s5251_s1 + $0x8] sm:$0xff]  ;;  %v3273_v1 = vld [vmem:[%s5251_s1] sm:$0xff]  ;;  %s5255_s24 = sld [smem:[#allocation60_spill]] }
  0xa1   : > { %v4600_v2 = vld [vmem:[%s1091_s6] sm:$0xff]  ;;  %1130 = vmatpush.bf16.msra.mxu0 %v3274_v0  ;;  %s5252_s6 = sld [smem:[#allocation42_spill]] }
  0xa2   : > { %v1099_v3 = vpack.c.bf16 %v4600_v2, %v4600_v2  ;;  %s5257_s22 = sld [smem:[#allocation66_spill]] }
  0xa5   : > { %1131 = vmatpush.bf16.msra.mxu0 %v3273_v1 }
  0xa7   : > { %s1095_s23 = scalar_lea.vmem %s5252_s6, %s3184_s5  ;;  %s5084_s5 = scalar_lea.sflag [#allocation28], %s926_s16 }
  0xa8   : > { %3194 = vmatmul.msk.bf16.vlgmr.msra.gmra.mxu0 %vm1120_vm0, %v1099_v3 }
 0x125   : > { %v1133_v5 = vpop.f32.mrf.mxu0 }
 0x126   : > { %v1134_v6 = vadd.f32 %v3520_v4, %v1133_v5 }
 0x128   : > { %1138 = vrot.lane.b32.xlu1 %v1134_v6, %s4198_s11  ;;  %1141 = vrot.lane.b32.xlu0 %v1134_v6, %s4199_s15  ;;  %v1150_v16 = vrot.slane %v1134_v6, 4 }
 0x12d   : > { %v1135_v7 = vpop.f32.mrf.mxu0 }
 0x130   : > { %1144 = vrot.lane.b32.xlu0 %v1134_v6, %s4200_s14 }
 0x19a   : > { %v1142_v8 = vpop.permute.xlu0 %1141  ;;  %v1139_v10 = vpop.permute.xlu1 %1138 }
 0x19b   : > { %v4608_v9 = vpack.i.bf16 %v1134_v6, %v1142_v8  ;;  %v1147_v15 = vrot.slane %v1142_v8, 4  ;;  %v1162_v18 = vrot.slane %v1139_v10, 4  ;;  %v1151_v20 = vsel %vm1148_vm1, %v1142_v8, %v1150_v16 }
 0x19c   : > { %v1159_v24 = vperm.slane %v1151_v20, %v4616_v19 }
 0x19d   : > { %3491 = vrot.lane.b32.xlu1 %v4608_v9, %s4201_s18  ;;  %v1149_v21 = vsel %vm1148_vm1, %v1147_v15, %v1134_v6 }
 0x19e   : > { %v1155_v25 = vperm.slane %v1149_v21, %v4616_v19  ;;  %v1186_v30 = vrot.slane %v1159_v24, 4 }
 0x1a0   : > { %v1174_v32 = vrot.slane %v1155_v25, 4 }
 0x1a2   : > { %v1145_v11 = vpop.permute.xlu0 %1144 }
 0x1a3   : > { %v4612_v12 = vpack.i.bf16 %v1139_v10, %v1145_v11  ;;  %v1160_v17 = vrot.slane %v1145_v11, 4  ;;  %v1163_v22 = vsel %vm1148_vm1, %v1145_v11, %v1162_v18 }
 0x1a4   : > { %v1171_v28 = vperm.slane %v1163_v22, %v4616_v19 }
 0x1a5   : > { %3496 = vrot.lane.b32.xlu2 %v4612_v12, %s4201_s18  ;;  %v1161_v23 = vsel %vm1148_vm1, %v1160_v17, %v1139_v10 }
 0x1a6   : > { %v1167_v29 = vperm.slane %v1161_v23, %v4616_v19  ;;  %v1184_v34 = vrot.slane %v1171_v28, 4  ;;  %v1187_v36 = vsel %vm1148_vm1, %v1171_v28, %v1186_v30 }
 0x1a7   : > { %v1195_v41 = vperm.slane %v1187_v36, %v4626_v33 }
 0x1a8   : > { %v1172_v35 = vrot.slane %v1167_v29, 4  ;;  %v1175_v37 = vsel %vm1148_vm1, %v1167_v29, %v1174_v32  ;;  %v1185_v40 = vsel %vm1148_vm1, %v1184_v34, %v1159_v24 }
 0x1a9   : > { %v1183_v43 = vperm.slane %v1175_v37, %v4626_v33  ;;  %v1191_v46 = vperm.slane %v1185_v40, %v4626_v33  ;;  %v1202_v48 = vrot.slane %v1195_v41, 4 }
 0x1aa   : > { %v1173_v42 = vsel %vm1148_vm1, %v1172_v35, %v1155_v25 }
 0x1ab   : > { %v1179_v47 = vperm.slane %v1173_v42, %v4626_v33  ;;  %v1198_v49 = vrot.slane %v1183_v43, 4  ;;  %v1200_v52 = vrot.slane %v1191_v46, 4  ;;  %v1203_v54 = vsel %vm1148_vm1, 0.0, %v1202_v48 }
 0x1ac   : > { %v1220_v0 = vrot.slane %v1203_v54, 4  ;;  %v1215_v11 = vsel %vm1148_vm1, %v1202_v48, %v1191_v46 }
 0x1ad   : > { %v1196_v57 = vrot.slane %v1179_v47, 4  ;;  %v1199_v58 = vsel %vm1148_vm1, 0.0, %v1198_v49  ;;  %v1201_v63 = vsel %vm1148_vm1, 0.0, %v1200_v52  ;;  %v1204_v13 = vsel %vm1148_vm1, %v1198_v49, %v1179_v47 }
 0x1ae   : > { %v1209_v1 = vrot.slane %v1199_v58, 4  ;;  %v1221_v22 = vsel %vm1148_vm1, %v1220_v0, %v1201_v63  ;;  %v1208_v25 = vperm.slane %v1204_v13, %v4616_v19  ;;  %v1219_v26 = vperm.slane %v1215_v11, %v4616_v19 }
 0x1af   : > { %v1197_v5 = vsel %vm1148_vm1, 0.0, %v1196_v57  ;;  %v1225_v30 = vperm.slane %v1221_v22, %v4616_v19 }
 0x1b0   : > { %v1210_v21 = vsel %vm1148_vm1, %v1209_v1, %v1197_v5  ;;  %v1228_v36 = vrot.slane %v1208_v25, 4  ;;  %v1240_v37 = vrot.slane %v1219_v26, 4 }
 0x1b1   : > { %v1214_v29 = vperm.slane %v1210_v21, %v4616_v19  ;;  %v1238_v49 = vrot.slane %v1225_v30, 4 }
 0x1b2   : > { %v1241_v57 = vsel %vm1148_vm1, %v1225_v30, %v1240_v37 }
 0x1b3   : > { %v1226_v48 = vrot.slane %v1214_v29, 4  ;;  %v1239_v1 = vsel %vm1148_vm1, %v1238_v49, %v1219_v26 }
 0x1b5   : > { %v1227_v0 = vsel %vm1148_vm1, %v1226_v48, %v1208_v25 }
 0x1b6   : > { %v1233_v13 = vperm.slane %v1227_v0, %v4626_v33 }
 0x1ff   : > { %v3497_v31 = vpop.permute.xlu2 %3496 }
 0x200   : > { %v3499_v38 = vunpack.i.h.bf16 %v3497_v31  ;;  %v3498_v39 = vunpack.i.l.bf16 %v3497_v31 }
 0x202   : > { %v1288_v44 = vrot.slane %v3499_v38, 4  ;;  %v1286_v45 = vrot.slane %v3498_v39, 4 }
 0x204   : > { %v1287_v50 = vsel %vm1148_vm1, %v1286_v45, %v3499_v38  ;;  %v1289_v51 = vsel %vm1148_vm1, %v3498_v39, %v1288_v44 }
 0x205   : > { %v1293_v59 = vperm.slane %v1287_v50, %v4616_v19  ;;  %v1297_v60 = vperm.slane %v1289_v51, %v4616_v19 }
 0x207   : > { %v1298_v6 = vrot.slane %v1293_v59, 4  ;;  %v1310_v7 = vrot.slane %v1297_v60, 4 }
 0x20f   : > { %v3492_v53 = vpop.permute.xlu1 %3491 }
 0x210   : > { %v3494_v55 = vunpack.i.h.bf16 %v3492_v53  ;;  %v3493_v56 = vunpack.i.l.bf16 %v3492_v53 }
 0x212   : > { %v1276_v61 = vrot.slane %v3494_v55, 4  ;;  %v1274_v62 = vrot.slane %v3493_v56, 4 }
 0x214   : > { %v1275_v3 = vsel %vm1148_vm1, %v1274_v62, %v3494_v55  ;;  %v1277_v4 = vsel %vm1148_vm1, %v3493_v56, %v1276_v61  ;;  %v1229_v56 = vsel %vm1148_vm1, %v1214_v29, %v1228_v36 }
 0x215   : > { %v1281_v8 = vperm.slane %v1275_v3, %v4616_v19  ;;  %v1285_v10 = vperm.slane %v1277_v4, %v4616_v19  ;;  %v1237_v5 = vperm.slane %v1229_v56, %v4626_v33 }
 0x217   : > { %v1299_v14 = vsel %vm1148_vm1, %v1298_v6, %v1281_v8  ;;  %v1300_v15 = vrot.slane %v1281_v8, 4  ;;  %v1311_v16 = vsel %vm1148_vm1, %v1310_v7, %v1285_v10  ;;  %v1312_v17 = vrot.slane %v1285_v10, 4 }
 0x218   : > { %v1305_v18 = vperm.slane %v1299_v14, %v4626_v33  ;;  %v1317_v20 = vperm.slane %v1311_v16, %v4626_v33  ;;  %v1249_v6 = vperm.slane %v1241_v57, %v4626_v33  ;;  %v1245_v14 = vperm.slane %v1239_v1, %v4626_v33 }
 0x219   : > { %v1301_v23 = vsel %vm1148_vm1, %v1293_v59, %v1300_v15  ;;  %v1313_v24 = vsel %vm1148_vm1, %v1297_v60, %v1312_v17  ;;  %v1256_v25 = vrot.slane %v1237_v5, 4 }
 0x21a   : > { %v1309_v27 = vperm.slane %v1301_v23, %v4626_v33  ;;  %v1321_v28 = vperm.slane %v1313_v24, %v4626_v33  ;;  %v1322_v31 = vrot.slane %v1305_v18, 4  ;;  %v1326_v34 = vrot.slane %v1317_v20, 4 }
 0x21b   : > { %v1254_v24 = vrot.slane %v1249_v6, 4  ;;  %v1250_v30 = vrot.slane %v1245_v14, 4  ;;  %v1257_v36 = vsel %vm1148_vm1, %v1249_v6, %v1256_v25 }
 0x21c   : > { %v1324_v32 = vrot.slane %v1309_v27, 4  ;;  %v1328_v35 = vrot.slane %v1321_v28, 4  ;;  %v1327_v46 = vsel %vm1148_vm1, 0.0, %v1326_v34  ;;  %v1323_v47 = vsel %vm1148_vm1, 0.0, %v1322_v31 }
 0x21d   : > { %v1252_v31 = vrot.slane %v1233_v13, 4  ;;  %v1251_v37 = vsel %vm1148_vm1, %v1250_v30, %v1233_v13 }
 0x21e   : > { %v1325_v38 = vsel %vm1148_vm1, 0.0, %v1324_v32  ;;  %v1329_v39 = vsel %vm1148_vm1, 0.0, %v1328_v35  ;;  %v1330_v40 = vsel %vm1148_vm1, %v1324_v32, %v1305_v18  ;;  %v1341_v41 = vsel %vm1148_vm1, %v1328_v35, %v1317_v20 }
 0x21f   : > { %v1346_v42 = vrot.slane %v1329_v39, 4  ;;  %v1334_v43 = vperm.slane %v1330_v40, %v4616_v19  ;;  %v1335_v44 = vrot.slane %v1325_v38, 4  ;;  %v1345_v45 = vperm.slane %v1341_v41, %v4616_v19 }
 0x220   : > { %v1255_v35 = vsel %vm1148_vm1, %v1254_v24, %v1237_v5  ;;  %v1253_v38 = vsel %vm1148_vm1, %v1245_v14, %v1252_v31  ;;  %v1261_v40 = vpack.c.bf16 %v1257_v36, %v1257_v36  ;;  %v1258_v41 = vpack.c.bf16 %v1251_v37, %v1251_v37 }
 0x221   : > { %v1336_v50 = vsel %vm1148_vm1, %v1335_v44, %v1323_v47  ;;  %v1347_v51 = vsel %vm1148_vm1, %v1346_v42, %v1327_v46  ;;  %v1354_v52 = vrot.slane %v1334_v43, 4  ;;  %v1366_v53 = vrot.slane %v1345_v45, 4 }
 0x222   : > { %v1340_v54 = vperm.slane %v1336_v50, %v4616_v19  ;;  %v1351_v55 = vperm.slane %v1347_v51, %v4616_v19  ;;  %v1260_v39 = vpack.c.bf16 %v1255_v35, %v1255_v35  ;;  %v1259_v42 = vpack.c.bf16 %v1253_v38, %v1253_v38 }
 0x224   : > { %v1355_v58 = vsel %vm1148_vm1, %v1340_v54, %v1354_v52  ;;  %v1367_v59 = vsel %vm1148_vm1, %v1351_v55, %v1366_v53  ;;  %v1352_v60 = vrot.slane %v1340_v54, 4  ;;  %v1364_v61 = vrot.slane %v1351_v55, 4 }
 0x225   : > { %v1363_v62 = vperm.slane %v1355_v58, %v4626_v33  ;;  %v1375_v63 = vperm.slane %v1367_v59, %v4626_v33 }
 0x226   : > { %v1353_v3 = vsel %vm1148_vm1, %v1352_v60, %v1334_v43  ;;  %v1365_v4 = vsel %vm1148_vm1, %v1364_v61, %v1345_v45  ;;  %v1514_v43 = vld [vmem:[%s4541_s19] sm:$0xf]  ;;  %s5196_s19 = smov 64  }
 0x227   : > { %v1380_v7 = vrot.slane %v1375_v63, 4  ;;  %v1382_v8 = vrot.slane %v1363_v62, 4  ;;  %v1359_v10 = vperm.slane %v1353_v3, %v4626_v33  ;;  %v1371_v11 = vperm.slane %v1365_v4, %v4626_v33 }
 0x228   : > { %v1599_v44 = vunpack.c.l.bf16 %v1514_v43 }
 0x229   : > { %v1381_v15 = vsel %vm1148_vm1, %v1380_v7, %v1363_v62  ;;  %v1383_v16 = vsel %vm1148_vm1, %v1375_v63, %v1382_v8  ;;  %v1376_v17 = vrot.slane %v1371_v11, 4  ;;  %v1378_v18 = vrot.slane %v1359_v10, 4 }
 0x22a   : > { %v1386_v20 = vpack.c.bf16 %v1381_v15, %v1381_v15  ;;  %v1387_v21 = vpack.c.bf16 %v1383_v16, %v1383_v16  ;;  %vm1600_vm3 = vcmp.gt.f32.partialorder %v1599_v44, 0.0 }
 0x22b   : > { %v1377_v22 = vsel %vm1148_vm1, %v1376_v17, %v1359_v10  ;;  %v1379_v23 = vsel %vm1148_vm1, %v1371_v11, %v1378_v18 }
 0x22c   : > { %v1565_v26 = vsel %vm1522_vm2, %v1386_v20, 0  ;;  %v1584_v27 = vsel %vm1522_vm2, %v1387_v21, 0  ;;  %v1384_v28 = vpack.c.bf16 %v1377_v22, %v1377_v22  ;;  %v1385_v29 = vpack.c.bf16 %v1379_v23, %v1379_v23 }
 0x22d   : > { %1574 = vmatpush.bf16.xpose.msra.mxu3 %v1565_v26  ;;  %1593 = vmatpush.bf16.xpose.msrb.mxu0 %v1584_v27 }
 0x22e   : > { %v1527_v32 = vsel %vm1522_vm2, %v1384_v28, 0  ;;  %v1546_v34 = vsel %vm1522_vm2, %v1385_v29, 0 }
 0x22f   : > { %1536 = vmatpush.bf16.xpose.msra.mxu1 %v1527_v32  ;;  %1555 = vmatpush.bf16.xpose.msra.mxu2 %v1546_v34 }
 0x234   : > { %3197 = vmatmul.msk.bf16.vlgmr.msra.gmra.mxu3 %vm1522_vm2, %v1260_v39  ;;  %3198 = vmatmul.msk.bf16.vlgmr.msrb.gmra.mxu0 %vm1522_vm2, %v1261_v40 }
 0x236   : > { %3195 = vmatmul.msk.bf16.vlgmr.msra.gmra.mxu1 %vm1522_vm2, %v1258_v41  ;;  %3196 = vmatmul.msk.bf16.vlgmr.msra.gmra.mxu2 %vm1522_vm2, %v1259_v42 }
 0x2b1   : > { %v1595_v45 = vpop.f32.mrf.mxu0 }
 0x2b2   : > { %v1606_v46 = vsel %vm1600_vm3, -1e+09, %v1595_v45 }
 0x2b3   : > { %v1538_v47 = vpop.f32.mrf.mxu1  ;;  %v1616_v48 = vsel %vm1522_vm2, %v1606_v46, -inf }
 0x2b4   : > { %v1603_v49 = vsel %vm1600_vm3, -1e+09, %v1538_v47  ;;  %1617 = vmax.xlane.f32.xlu2 %v1616_v48 }
 0x2b5   : > { %v1607_v50 = vsel %vm1522_vm2, %v1603_v49, -inf }
 0x2b6   : > { %1608 = vmax.xlane.f32.xlu1 %v1607_v50 }
 0x2b7   : > { %v1576_v51 = vpop.f32.mrf.mxu3 }
 0x2b8   : > { %v1605_v52 = vsel %vm1600_vm3, -1e+09, %v1576_v51 }
 0x2b9   : > { %v1557_v53 = vpop.f32.mrf.mxu2  ;;  %v1597_v54 = vpop.f32.mrf.mxu0  ;;  %v1613_v55 = vsel %vm1522_vm2, %v1605_v52, -inf }
 0x2ba   : > { %v1604_v56 = vsel %vm1600_vm3, -1e+09, %v1557_v53  ;;  %1614 = vmax.xlane.f32.xlu0 %v1613_v55 }
 0x2bb   : > { %v1540_v57 = vpop.f32.mrf.mxu1  ;;  %v1610_v58 = vsel %vm1522_vm2, %v1604_v56, -inf }
 0x2bc   : > { %1611 = vmax.xlane.f32.xlu2 %v1610_v58 }
 0x2bf   : > { %v1578_v59 = vpop.f32.mrf.mxu3 }
 0x2c1   : > { %v1559_v60 = vpop.f32.mrf.mxu2 }
 0x2ce   : > { %3506 = vrot.lane.b32.xlu0 %v4612_v12, %s5196_s19 }
 0x2d4   : > { %3501 = vrot.lane.b32.xlu2 %v4608_v9, %s5196_s19  ;;  %s4043_s19 = scalar_lea.hbm %s5257_s22, 32 }
 0x327   : > { %v1618_v61 = vpop.xlane.xlu2 %1617 }
 0x328   : > { %v1622_v62 = vsub.f32 %v1606_v46, %v1618_v61 }
 0x329   : > { %v1609_v12 = vpop.xlane.xlu1 %1608 }
 0x32a   : > { %v1629_v63 = vmul.f32 1.442695, %v1622_v62  ;;  %v1619_v13 = vsub.f32 %v1603_v49, %v1609_v12 }
 0x32c   : > { %3533 = vpow2.f32 %v1629_v63  ;;  %v1623_v18 = vmul.f32 1.442695, %v1619_v13 }
 0x32d   : > { %v1615_v0 = vpop.xlane.xlu0 %1614 }
 0x32e   : > { %v1621_v5 = vsub.f32 %v1605_v52, %v1615_v0 }
 0x32f   : > { %v1612_v1 = vpop.xlane.xlu2 %1611 }
 0x330   : > { %v1620_v3 = vsub.f32 %v1604_v56, %v1612_v1  ;;  %v1627_v8 = vmul.f32 1.442695, %v1621_v5 }
 0x332   : > { %v4717_v4 = vpop.eup %3533  ;;  %v1625_v6 = vmul.f32 1.442695, %v1620_v3 }
 0x333   : > { %v1640_v7 = vsel %vm1522_vm2, %v4717_v4, 0.0 }
 0x334   : > { %3535 = vpow2.f32 %v1625_v6  ;;  %1641 = vadd.xlane.f32.xlu0 %v1640_v7 }
 0x335   : > { %3537 = vpow2.f32 %v1627_v8 }
 0x336   : > { %3539 = vpow2.f32 %v1623_v18 }
 0x337   : > { %v3502_v10 = vpop.permute.xlu2 %3501 }
 0x338   : > { %v3504_v9 = vunpack.i.h.bf16 %v3502_v10  ;;  %v3503_v11 = vunpack.i.l.bf16 %v3502_v10 }
 0x33a   : > { %v4721_v14 = vpop.eup %3535  ;;  %v1402_v15 = vrot.slane %v3504_v9, 4  ;;  %v1400_v16 = vrot.slane %v3503_v11, 4 }
 0x33b   : > { %v1634_v17 = vsel %vm1522_vm2, %v4721_v14, 0.0  ;;  %v4727_v22 = vpop.eup %3537 }
 0x33c   : > { %1635 = vadd.xlane.f32.xlu1 %v1634_v17  ;;  %v1401_v20 = vsel %vm1148_vm1, %v1400_v16, %v3504_v9  ;;  %v1403_v21 = vsel %vm1148_vm1, %v3503_v11, %v1402_v15  ;;  %v1637_v30 = vsel %vm1522_vm2, %v4727_v22, 0.0  ;;  %v4737_v38 = vpop.eup %3539 }
 0x33d   : > { %v1407_v26 = vperm.slane %v1401_v20, %v4616_v19  ;;  %v1411_v27 = vperm.slane %v1403_v21, %v4616_v19  ;;  %v1631_v47 = vsel %vm1522_vm2, %v4737_v38, 0.0 }
 0x33f   : > { %v1426_v34 = vrot.slane %v1407_v26, 4  ;;  %v1438_v35 = vrot.slane %v1411_v27, 4 }
 0x340   : > { %v3507_v23 = vpop.permute.xlu0 %3506 }
 0x341   : > { %v3509_v24 = vunpack.i.h.bf16 %v3507_v23  ;;  %v3508_v25 = vunpack.i.l.bf16 %v3507_v23 }
 0x343   : > { %v1414_v28 = vrot.slane %v3509_v24, 4  ;;  %v1412_v29 = vrot.slane %v3508_v25, 4 }
 0x344   : > { %1638 = vadd.xlane.f32.xlu1 %v1637_v30 }
 0x345   : > { %v1413_v31 = vsel %vm1148_vm1, %v1412_v29, %v3509_v24  ;;  %v1415_v32 = vsel %vm1148_vm1, %v3508_v25, %v1414_v28 }
 0x346   : > { %v1419_v36 = vperm.slane %v1413_v31, %v4616_v19  ;;  %v1423_v37 = vperm.slane %v1415_v32, %v4616_v19 }
 0x348   : > { %v1424_v39 = vrot.slane %v1419_v36, 4  ;;  %v1427_v40 = vsel %vm1148_vm1, %v1419_v36, %v1426_v34  ;;  %v1436_v41 = vrot.slane %v1423_v37, 4  ;;  %v1439_v42 = vsel %vm1148_vm1, %v1423_v37, %v1438_v35 }
 0x349   : > { %v1435_v43 = vperm.slane %v1427_v40, %v4626_v33  ;;  %v1447_v44 = vperm.slane %v1439_v42, %v4626_v33 }
 0x34a   : > { %v1425_v45 = vsel %vm1148_vm1, %v1424_v39, %v1407_v26  ;;  %v1437_v46 = vsel %vm1148_vm1, %v1436_v41, %v1411_v27 }
 0x34b   : > { %v1431_v48 = vperm.slane %v1425_v45, %v4626_v33  ;;  %v1443_v49 = vperm.slane %v1437_v46, %v4626_v33  ;;  %v1450_v50 = vrot.slane %v1435_v43, 4  ;;  %v1454_v51 = vrot.slane %v1447_v44, 4 }
 0x34c   : > { %1632 = vadd.xlane.f32.xlu1 %v1631_v47 }
 0x34d   : > { %v1448_v52 = vrot.slane %v1431_v48, 4  ;;  %v1451_v53 = vsel %vm1148_vm1, 0.0, %v1450_v50  ;;  %v1452_v54 = vrot.slane %v1443_v49, 4  ;;  %v1455_v55 = vsel %vm1148_vm1, 0.0, %v1454_v51 }
 0x34e   : > { %v1461_v56 = vrot.slane %v1451_v53, 4  ;;  %v1472_v57 = vrot.slane %v1455_v55, 4  ;;  %v1456_v58 = vsel %vm1148_vm1, %v1450_v50, %v1431_v48  ;;  %v1467_v59 = vsel %vm1148_vm1, %v1454_v51, %v1443_v49  ;;  %v1518_v53 = vld [vmem:[#allocation8 + $0xc] sm:$0xf] }
 0x34f   : > { %v1449_v60 = vsel %vm1148_vm1, 0.0, %v1448_v52  ;;  %v1453_v61 = vsel %vm1148_vm1, 0.0, %v1452_v54  ;;  %v1460_v62 = vperm.slane %v1456_v58, %v4616_v19  ;;  %v1471_v63 = vperm.slane %v1467_v59, %v4616_v19  ;;  %v1515_v58 = vld [vmem:[#allocation8] sm:$0xf] }
 0x350   : > { %v1462_v0 = vsel %vm1148_vm1, %v1461_v56, %v1449_v60  ;;  %v1473_v1 = vsel %vm1148_vm1, %v1472_v57, %v1453_v61  ;;  %v1797_v54 = vsel %vm1658_vm4, %v1518_v53, 0  ;;  %v1517_v56 = vld [vmem:[#allocation8 + $0x8] sm:$0xf] }
 0x351   : > { %v1466_v3 = vperm.slane %v1462_v0, %v4616_v19  ;;  %v1477_v5 = vperm.slane %v1473_v1, %v4616_v19  ;;  %v1480_v6 = vrot.slane %v1460_v62, 4  ;;  %v1492_v7 = vrot.slane %v1471_v63, 4 }
 0x352   : > { %v1778_v57 = vsel %vm1658_vm4, %v1517_v56, 0 }
 0x353   : > { %v1481_v12 = vsel %vm1148_vm1, %v1466_v3, %v1480_v6  ;;  %v1493_v8 = vsel %vm1148_vm1, %v1477_v5, %v1492_v7  ;;  %v1478_v10 = vrot.slane %v1466_v3, 4  ;;  %v1490_v9 = vrot.slane %v1477_v5, 4 }
 0x354   : > { %v1489_v11 = vperm.slane %v1481_v12, %v4626_v33  ;;  %v1501_v13 = vperm.slane %v1493_v8, %v4626_v33 }
 0x355   : > { %v1479_v15 = vsel %vm1148_vm1, %v1478_v10, %v1460_v62  ;;  %v1491_v16 = vsel %vm1148_vm1, %v1490_v9, %v1471_v63  ;;  %v3278_v10 = vld [vmem:[#allocation17 + $0x8] sm:$0xff] }
 0x356   : > { %v1506_v17 = vrot.slane %v1501_v13, 4  ;;  %v1508_v18 = vrot.slane %v1489_v11, 4  ;;  %v1485_v20 = vperm.slane %v1479_v15, %v4626_v33  ;;  %v1497_v21 = vperm.slane %v1491_v16, %v4626_v33 }
 0x358   : > { %v1507_v23 = vsel %vm1148_vm1, %v1506_v17, %v1489_v11  ;;  %v1509_v24 = vsel %vm1148_vm1, %v1501_v13, %v1508_v18  ;;  %v1502_v25 = vrot.slane %v1497_v21, 4  ;;  %v1504_v26 = vrot.slane %v1485_v20, 4 }
 0x359   : > { %v1512_v27 = vpack.c.bf16 %v1507_v23, %v1507_v23  ;;  %v1513_v28 = vpack.c.bf16 %v1509_v24, %v1509_v24  ;;  %v3521_v24 = vld [vmem:[#allocation10] ss:$0 sm:$0xff] }
 0x35a   : > { %v1503_v29 = vsel %vm1148_vm1, %v1502_v25, %v1485_v20  ;;  %v1505_v30 = vsel %vm1148_vm1, %v1497_v21, %v1504_v26 }
 0x35b   : > { %v1698_v31 = vsel %vm1658_vm4, %v1512_v27, 0  ;;  %v1717_v32 = vsel %vm1658_vm4, %v1513_v28, 0  ;;  %v1510_v34 = vpack.c.bf16 %v1503_v29, %v1503_v29  ;;  %v1511_v35 = vpack.c.bf16 %v1505_v30, %v1505_v30 }
 0x35c   : > { %1707 = vmatpush.bf16.msrb.mxu3 %v1698_v31  ;;  %1726 = vmatpush.bf16.msra.mxu0 %v1717_v32  ;;  %v1098_v32 = vld [vmem:[%s1095_s23] sm:$0xff]  ;;  %s2819_s23 = sshll.u32 %s4781_s26, 4  ;;  %s2820_s23 = int_to_ptr.vmem [resolvable:$true] %s2819_s23 }
 0x35d   : > { %v1660_v36 = vsel %vm1658_vm4, %v1510_v34, 0  ;;  %v1679_v37 = vsel %vm1658_vm4, %v1511_v35, 0  ;;  %v3277_v34 = vld [vmem:[#allocation17] sm:$0xff]  ;;  %v1898_v35 = vpack.c.bf16 %v1098_v32, %v1098_v32 }
 0x35e   : > { %1669 = vmatpush.bf16.msrb.mxu1 %v1660_v36  ;;  %1688 = vmatpush.bf16.msrb.mxu2 %v1679_v37  ;;  %v4205_v36 = vmov 32.0  }
 0x360   : > { %1806 = vmatpush.bf16.msrb.mxu0 %v1797_v54  ;;  %1787 = vmatpush.bf16.msra.mxu3 %v1778_v57 }
 0x3a7   : > { %v1642_v39 = vpop.xlane.xlu0 %1641 }
 0x3a8   : > { %3541 = vrcp.f32 %v1642_v39 }
 0x3ae   : > { %v3542_v40 = vpop.eup %3541 }
 0x3af   : > { %v1650_v41 = vmul.f32 %v3542_v40, %v4717_v4  ;;  %v1636_v42 = vpop.xlane.xlu1 %1635 }
 0x3b0   : > { %3543 = vrcp.f32 %v1636_v42 }
 0x3b1   : > { %v1654_v43 = vpack.c.bf16 %v1650_v41, %v1650_v41 }
 0x3b3   : > { %2777 = vst.msk [vmem:[%s4781_s26 + $0xc] sm:$0xf] %vm2773_vm5, %v1654_v43  ;;  %3202 = vmatmul.msk.bf16.vlgmr.msra.gmra.mxu0 %vm1522_vm2, %v1654_v43 }
 0x3b6   : > { %v3544_v44 = vpop.eup %3543 }
 0x3b7   : > { %v1648_v45 = vmul.f32 %v3544_v44, %v4721_v14  ;;  %v1639_v46 = vpop.xlane.xlu1 %1638 }
 0x3b8   : > { %3545 = vrcp.f32 %v1639_v46 }
 0x3b9   : > { %v1652_v4 = vpack.c.bf16 %v1648_v45, %v1648_v45 }
 0x3bb   : > { %3200 = vmatmul.msk.bf16.vlgmr.msrb.gmra.mxu2 %vm1522_vm2, %v1652_v4  ;;  %2775 = vst.msk [vmem:[%s4781_s26 + $0x4] sm:$0xf] %vm2773_vm5, %v1652_v4 }
 0x3be   : > { %v3546_v47 = vpop.eup %3545 }
 0x3bf   : > { %v1649_v48 = vmul.f32 %v3546_v47, %v4727_v22  ;;  %v1633_v49 = vpop.xlane.xlu1 %1632  ;;  %v1516_v22 = vld [vmem:[#allocation8 + $0x4] sm:$0xf]  ;;  %v3524_v47 = vld [vmem:[#allocation19] ss:$0 sm:$0xff] }
 0x3c0   : > { %3547 = vrcp.f32 %v1633_v49  ;;  %v1759_v55 = vsel %vm1658_vm4, %v1516_v22, 0 }
 0x3c1   : > { %v1653_v50 = vpack.c.bf16 %v1649_v48, %v1649_v48  ;;  %1768 = vmatpush.bf16.msra.mxu2 %v1759_v55  ;;  %3549 = vrcp.f32 %v4205_v36 }
 0x3c3   : > { %3201 = vmatmul.msk.bf16.vlgmr.msrb.gmra.mxu3 %vm1522_vm2, %v1653_v50  ;;  %2776 = vst.msk [vmem:[%s4781_s26 + $0x8] sm:$0xf] %vm2773_vm5, %v1653_v50 }
 0x3c5   : > { %1928 = vmatpush.bf16.msrb.mxu2 %v3278_v10 }
 0x3c6   : > { %v3548_v51 = vpop.eup %3547 }
 0x3c7   : > { %v1647_v14 = vmul.f32 %v3548_v51, %v4737_v38  ;;  %v1740_v38 = vsel %vm1658_vm4, %v1515_v58, 0  ;;  %v3550_v37 = vpop.eup %3549  ;;  %v3276_v51 = vld [vmem:[#allocation14 + $0x8] sm:$0xff] }
 0x3c8   : > { %1749 = vmatpush.bf16.msra.mxu1 %v1740_v38  ;;  %v1828_v39 = vmul.f32 32.0, %v3550_v37  ;;  %vm1832_vm6 = vweird.f32 %v3550_v37 }
 0x3c9   : > { %v1651_v52 = vpack.c.bf16 %v1647_v14, %v1647_v14  ;;  %1929 = vmatpush.bf16.msrb.mxu2 %v3277_v34  ;;  %v3275_v14 = vld [vmem:[#allocation14] sm:$0xff] }
 0x3ca   : > { %v1829_v40 = vsub.f32 1.0, %v1828_v39 }
 0x3cb   : > { %3199 = vmatmul.msk.bf16.vlgmr.msrb.gmra.mxu1 %vm1522_vm2, %v1651_v52  ;;  %2774 = vst.msk [vmem:[%s4781_s26] sm:$0xf] %vm2773_vm5, %v1651_v52 }
 0x3cc   : > { %1891 = vmatpush.bf16.msrb.mxu1 %v3276_v51 }
 0x3d0   : > { %1892 = vmatpush.bf16.msrb.mxu1 %v3275_v14 }
 0x430   : > { %v1728_v59 = vpop.f32.mrf.mxu0 }
 0x431   : > { %v1735_v60 = vpack.c.bf16 %v1728_v59, %v1728_v59  ;;  %v3522_v59 = vld [vmem:[#allocation11] ss:$0 sm:$0xff] }
 0x433   : > { %3206 = vmatmul.msk.bf16.vlgmr.msrb.gmra.mxu0 %vm1522_vm2, %v1735_v60 }
 0x438   : > { %v1730_v61 = vpop.f32.mrf.mxu0 }
 0x439   : > { %v3523_v61 = vld [vmem:[#allocation13] ss:$0 sm:$0xff] }
 0x43e   : > { %v1690_v62 = vpop.f32.mrf.mxu2 }
 0x43f   : > { %v1733_v63 = vpack.c.bf16 %v1690_v62, %v1690_v62 }
 0x441   : > { %3204 = vmatmul.msk.bf16.vlgmr.msra.gmra.mxu2 %vm1522_vm2, %v1733_v63 }
 0x446   : > { %v1692_v0 = vpop.f32.mrf.mxu2  ;;  %v1709_v1 = vpop.f32.mrf.mxu3 }
 0x447   : > { %v1734_v3 = vpack.c.bf16 %v1709_v1, %v1709_v1 }
 0x448   : > { %v1671_v5 = vpop.f32.mrf.mxu1 }
 0x449   : > { %v1732_v6 = vpack.c.bf16 %v1671_v5, %v1671_v5  ;;  %3205 = vmatmul.msk.bf16.vlgmr.msra.gmra.mxu3 %vm1522_vm2, %v1734_v3 }
 0x44b   : > { %3203 = vmatmul.msk.bf16.vlgmr.msra.gmra.mxu1 %vm1522_vm2, %v1732_v6 }
 0x44e   : > { %v1711_v7 = vpop.f32.mrf.mxu3 }
 0x450   : > { %v1673_v12 = vpop.f32.mrf.mxu1 }
 0x451   : > { %3224 = vmatmul.msk.bf16.vlgmr.msrb.gmra.mxu2 %vm1120_vm0, %v1898_v35 }
 0x4b0   : > { %v1808_v8 = vpop.f32.mrf.mxu0 }
 0x4b1   : > { %v1817_v25 = vsel %vm1120_vm0, %v1808_v8, 0.0 }
 0x4b8   : > { %v1810_v9 = vpop.f32.mrf.mxu0 }
 0x4c4   : > { %v1770_v11 = vpop.f32.mrf.mxu2 }
 0x4c5   : > { %v1813_v16 = vsel %vm1120_vm0, %v1770_v11, 0.0 }
 0x4c8   : > { %v1751_v13 = vpop.f32.mrf.mxu1 }
 0x4c9   : > { %v1812_v15 = vsel %vm1120_vm0, %v1751_v13, 0.0 }
 0x4ca   : > { %v1814_v17 = vadd.f32 %v1813_v16, %v1812_v15 }
 0x4cc   : > { %v1772_v18 = vpop.f32.mrf.mxu2  ;;  %v1789_v20 = vpop.f32.mrf.mxu3 }
 0x4cd   : > { %v1815_v21 = vsel %vm1120_vm0, %v1789_v20, 0.0 }
 0x4ce   : > { %v1816_v23 = vadd.f32 %v1815_v21, %v1814_v17 }
 0x4d0   : > { %v1818_v26 = vadd.f32 %v1817_v25, %v1816_v23  ;;  %v1753_v27 = vpop.f32.mrf.mxu1 }
 0x4d2   : > { %v1822_v28 = vadd.f32 %v3521_v24, %v1818_v26 }
 0x4d4   : > { %v1791_v29 = vpop.f32.mrf.mxu3  ;;  %v1823_v30 = vadd.f32 %v1822_v28, %v4600_v2  ;;  %v1830_v2 = vmul.f32 %v3550_v37, %v1829_v40  ;;  %v1931_v48 = vpop.f32.mrf.mxu2 }
 0x4d5   : > { %v4822_v49 = vadd.f32 %v3524_v47, %v1931_v48 }
 0x4d6   : > { %v1824_v31 = vsel %vm1120_vm0, %v1823_v30, 0.0  ;;  %v1831_v41 = vadd.f32 %v3550_v37, %v1830_v2 }
 0x4d7   : > { %1825 = vadd.xlane.f32.xlu2 %v1824_v31  ;;  %2066 = vrot.lane.b32.xlu0 %v4822_v49, %s4200_s14  ;;  %v2071_v9 = vrot.slane %v4822_v49, 4 }
 0x4d8   : > { %v4818_v42 = vsel %vm1832_vm6, %v3550_v37, %v1831_v41 }
 0x4dc   : > { %v1933_v50 = vpop.f32.mrf.mxu2 }
 0x549   : > { %v4838_v5 = vpop.permute.xlu0 %2066 }
 0x54a   : > { %v1826_v43 = vpop.xlane.xlu2 %1825  ;;  %v2081_v7 = vrot.slane %v4838_v5, 4 }
 0x54b   : > { %v1834_v44 = vmul.f32 %v4818_v42, %v1826_v43 }
 0x54d   : > { %v1835_v45 = vsub.f32 %v1823_v30, %v1834_v44 }
 0x54f   : > { %v1836_v46 = vmul.f32 %v1835_v45, %v1835_v45 }
 0x551   : > { %v1837_v4 = vsel %vm1120_vm0, %v1836_v46, 0.0 }
 0x552   : > { %1838 = vadd.xlane.f32.xlu1 %v1837_v4 }
 0x56b   : > { %2060 = vrot.lane.b32.xlu1 %v4822_v49, %s4198_s11 }
 0x573   : > { %2063 = vrot.lane.b32.xlu1 %v4822_v49, %s4199_s15 }
 0x5c5   : > { %v1839_v52 = vpop.xlane.xlu1 %1838 }
 0x5c6   : > { %v1840_v53 = vmul.f32 %v1839_v52, %v4818_v42 }
 0x5c8   : > { %v1841_v54 = vadd.f32 1e-05, %v1840_v53 }
 0x5ca   : > { %3551 = vrsqrt.f32 %v1841_v54  ;;  %vm1848_vm8 = vweird.f32 %v1841_v54 }
 0x5d0   : > { %v3552_v22 = vpop.eup %3551 }
 0x5d1   : > { %v1843_v55 = vmul.f32 %v3552_v22, %v1841_v54  ;;  %vm1849_vm7 = vweird.f32 %v3552_v22 }
 0x5d2   : > { %vm1850_vm9 = vmor %vm1848_vm8, %vm1849_vm7 }
 0x5d3   : > { %v1844_v56 = vmul.f32 %v3552_v22, %v1843_v55 }
 0x5d5   : > { %v1845_v57 = vmul.f32 0.5, %v1844_v56 }
 0x5d7   : > { %v1846_v58 = vsub.f32 1.5, %v1845_v57 }
 0x5d9   : > { %v1847_v38 = vmul.f32 %v3552_v22, %v1846_v58 }
 0x5db   : > { %v1851_v60 = vsel %vm1850_vm9, %v3552_v22, %v1847_v38 }
 0x5dc   : > { %v1852_v62 = vmul.f32 %v1851_v60, %v1835_v45 }
 0x5dd   : > { %v4836_v3 = vpop.permute.xlu1 %2060 }
 0x5de   : > { %v1856_v63 = vmul.f32 %v3522_v59, %v1852_v62  ;;  %v2083_v6 = vrot.slane %v4836_v3, 4  ;;  %v2082_v12 = vsel %vm1148_vm1, %v2081_v7, %v4836_v3 }
 0x5df   : > { %v2088_v11 = vperm.slane %v2082_v12, %v4616_v19 }
 0x5e0   : > { %v4831_v0 = vadd.f32 %v3523_v61, %v1856_v63  ;;  %v2084_v8 = vsel %vm1148_vm1, %v4838_v5, %v2083_v6 }
 0x5e1   : > { %v2092_v10 = vperm.slane %v2084_v8, %v4616_v19  ;;  %v2093_v20 = vrot.slane %v2088_v11, 4 }
 0x5e2   : > { %v1861_v1 = vpack.c.bf16 %v4831_v0, %v4831_v0 }
 0x5e3   : > { %v2105_v15 = vrot.slane %v2092_v10, 4 }
 0x5e4   : > { %3215 = vmatmul.msk.bf16.vlgmr.msrb.gmra.mxu1 %vm1120_vm0, %v1861_v1 }
 0x5e5   : > { %v4849_v13 = vpop.permute.xlu1 %2063 }
 0x5e6   : > { %v2069_v16 = vrot.slane %v4849_v13, 4  ;;  %v2072_v17 = vsel %vm1148_vm1, %v4849_v13, %v2071_v9 }
 0x5e7   : > { %v2080_v18 = vperm.slane %v2072_v17, %v4616_v19 }
 0x5e8   : > { %v2070_v21 = vsel %vm1148_vm1, %v2069_v16, %v4822_v49 }
 0x5e9   : > { %v2076_v23 = vperm.slane %v2070_v21, %v4616_v19  ;;  %v2107_v24 = vrot.slane %v2080_v18, 4  ;;  %v2106_v25 = vsel %vm1148_vm1, %v2105_v15, %v2080_v18 }
 0x5ea   : > { %v2112_v26 = vperm.slane %v2106_v25, %v4626_v33 }
 0x5eb   : > { %v2095_v27 = vrot.slane %v2076_v23, 4  ;;  %v2094_v28 = vsel %vm1148_vm1, %v2093_v20, %v2076_v23  ;;  %v2108_v29 = vsel %vm1148_vm1, %v2092_v10, %v2107_v24  ;;  %v3525_v24 = vld [vmem:[#allocation16] ss:$0 sm:$0xff] }
 0x5ec   : > { %v2100_v30 = vperm.slane %v2094_v28, %v4626_v33  ;;  %v2116_v31 = vperm.slane %v2108_v29, %v4626_v33  ;;  %v2121_v32 = vrot.slane %v2112_v26, 4 }
 0x5ed   : > { %v2096_v34 = vsel %vm1148_vm1, %v2088_v11, %v2095_v27 }
 0x5ee   : > { %v2104_v35 = vperm.slane %v2096_v34, %v4626_v33  ;;  %v2117_v36 = vrot.slane %v2100_v30, 4  ;;  %v2123_v37 = vrot.slane %v2116_v31, 4  ;;  %v2122_v40 = vsel %vm1148_vm1, 0.0, %v2121_v32 }
 0x5f0   : > { %v2119_v39 = vrot.slane %v2104_v35, 4  ;;  %v2124_v2 = vsel %vm1148_vm1, 0.0, %v2123_v37  ;;  %v2136_v41 = vsel %vm1148_vm1, %v2123_v37, %v2112_v26  ;;  %v2118_v44 = vsel %vm1148_vm1, 0.0, %v2117_v36 }
 0x5f1   : > { %v2141_v43 = vrot.slane %v2124_v2, 4  ;;  %v2140_v47 = vperm.slane %v2136_v41, %v4616_v19 }
 0x5f2   : > { %v2120_v45 = vsel %vm1148_vm1, 0.0, %v2119_v39  ;;  %v2125_v52 = vsel %vm1148_vm1, %v2119_v39, %v2100_v30 }
 0x5f3   : > { %v2130_v46 = vrot.slane %v2120_v45, 4  ;;  %v2142_v4 = vsel %vm1148_vm1, %v2141_v43, %v2122_v40  ;;  %v2129_v53 = vperm.slane %v2125_v52, %v4616_v19  ;;  %v2161_v55 = vrot.slane %v2140_v47, 4 }
 0x5f4   : > { %v2146_v48 = vperm.slane %v2142_v4, %v4616_v19 }
 0x5f5   : > { %v2131_v50 = vsel %vm1148_vm1, %v2130_v46, %v2118_v44  ;;  %v2149_v58 = vrot.slane %v2129_v53, 4 }
 0x5f6   : > { %v2135_v51 = vperm.slane %v2131_v50, %v4616_v19  ;;  %v2159_v14 = vrot.slane %v2146_v48, 4  ;;  %v2162_v38 = vsel %vm1148_vm1, %v2146_v48, %v2161_v55 }
 0x5f7   : > { %v2170_v61 = vperm.slane %v2162_v38, %v4626_v33 }
 0x5f8   : > { %v2147_v54 = vrot.slane %v2135_v51, 4  ;;  %v2160_v22 = vsel %vm1148_vm1, %v2159_v14, %v2140_v47  ;;  %v2150_v62 = vsel %vm1148_vm1, %v2135_v51, %v2149_v58 }
 0x5f9   : > { %v2166_v56 = vperm.slane %v2160_v22, %v4626_v33  ;;  %v2158_v6 = vperm.slane %v2150_v62, %v4626_v33  ;;  %v2175_v7 = vrot.slane %v2170_v61, 4 }
 0x5fa   : > { %v2148_v57 = vsel %vm1148_vm1, %v2147_v54, %v2129_v53 }
 0x5fb   : > { %v2154_v59 = vperm.slane %v2148_v57, %v4626_v33  ;;  %v2171_v60 = vrot.slane %v2166_v56, 4  ;;  %v2176_v10 = vsel %vm1148_vm1, %v2175_v7, %v2158_v6  ;;  %v2177_v9 = vrot.slane %v2158_v6, 4 }
 0x5fc   : > { %v2181_v16 = vpack.c.bf16 %v2176_v10, %v2176_v10 }
 0x5fd   : > { %v2172_v63 = vsel %vm1148_vm1, %v2171_v60, %v2154_v59  ;;  %v2173_v1 = vrot.slane %v2154_v59, 4  ;;  %v2178_v17 = vsel %vm1148_vm1, %v2170_v61, %v2177_v9 }
 0x5fe   : > { %v2179_v12 = vpack.c.bf16 %v2172_v63, %v2172_v63  ;;  %v2359_v20 = vsel %vm1522_vm2, %v2181_v16, 0  ;;  %v2182_v21 = vpack.c.bf16 %v2178_v17, %v2178_v17 }
 0x5ff   : > { %v2174_v8 = vsel %vm1148_vm1, %v2166_v56, %v2173_v1  ;;  %2368 = vmatpush.bf16.xpose.msra.mxu1 %v2359_v20 }
 0x600   : > { %v2321_v11 = vsel %vm1522_vm2, %v2179_v12, 0  ;;  %v2180_v15 = vpack.c.bf16 %v2174_v8, %v2174_v8  ;;  %v2378_v23 = vsel %vm1522_vm2, %v2182_v21, 0 }
 0x601   : > { %2330 = vmatpush.bf16.xpose.msrb.mxu3 %v2321_v11  ;;  %2387 = vmatpush.bf16.xpose.msra.mxu2 %v2378_v23 }
 0x602   : > { %v2340_v18 = vsel %vm1522_vm2, %v2180_v15, 0 }
 0x603   : > { %2349 = vmatpush.bf16.xpose.msra.mxu0 %v2340_v18 }
 0x661   : > { %v1894_v25 = vpop.f32.mrf.mxu1 }
 0x662   : > { %v1895_v26 = vadd.f32 %v3525_v24, %v1894_v25 }
 0x664   : > { %1939 = vrot.lane.b32.xlu1 %v1895_v26, %s4199_s15  ;;  %1936 = vrot.lane.b32.xlu2 %v1895_v26, %s4198_s11  ;;  %v1947_v30 = vrot.slane %v1895_v26, 4  ;;  %s5256_s15 = sld [smem:[#allocation62_spill]] }
 0x669   : > { %v1896_v27 = vpop.f32.mrf.mxu1 }
 0x66c   : > { %1942 = vrot.lane.b32.xlu1 %v1895_v26, %s4200_s14  ;;  %s5254_s14 = sld [smem:[#allocation61_spill]] }
 0x6be   : > { %v1937_v32 = vpop.permute.xlu2 %1936 }
 0x6bf   : > { %v1959_v36 = vrot.slane %v1937_v32, 4 }
 0x6d6   : > { %v1940_v28 = vpop.permute.xlu1 %1939 }
 0x6d7   : > { %v1945_v29 = vrot.slane %v1940_v28, 4  ;;  %v1948_v31 = vsel %vm1148_vm1, %v1940_v28, %v1947_v30 }
 0x6d8   : > { %v1956_v35 = vperm.slane %v1948_v31, %v4616_v19 }
 0x6d9   : > { %v1946_v34 = vsel %vm1148_vm1, %v1945_v29, %v1895_v26 }
 0x6da   : > { %v1952_v37 = vperm.slane %v1946_v34, %v4616_v19  ;;  %v1983_v41 = vrot.slane %v1956_v35, 4 }
 0x6dc   : > { %v1971_v45 = vrot.slane %v1952_v37, 4 }
 0x6de   : > { %v1943_v39 = vpop.permute.xlu1 %1942 }
 0x6df   : > { %v1957_v40 = vrot.slane %v1943_v39, 4  ;;  %v1960_v2 = vsel %vm1148_vm1, %v1943_v39, %v1959_v36 }
 0x6e0   : > { %v1968_v43 = vperm.slane %v1960_v2, %v4616_v19 }
 0x6e1   : > { %v1958_v44 = vsel %vm1148_vm1, %v1957_v40, %v1937_v32 }
 0x6e2   : > { %v1964_v46 = vperm.slane %v1958_v44, %v4616_v19  ;;  %v1981_v4 = vrot.slane %v1968_v43, 4  ;;  %v1984_v47 = vsel %vm1148_vm1, %v1968_v43, %v1983_v41  ;;  %v2309_v43 = vld [vmem:[%s4550_s30] sm:$0xf]  ;;  %s5015_s30 = scalar_lea.vmem [#allocation29], %s3182_s17 }
 0x6e3   : > { %v1992_v48 = vperm.slane %v1984_v47, %v4626_v33  ;;  %v2393_v44 = vunpack.c.l.bf16 %v2309_v43 }
 0x6e4   : > { %v1969_v50 = vrot.slane %v1964_v46, 4  ;;  %v1972_v51 = vsel %vm1148_vm1, %v1964_v46, %v1971_v45  ;;  %v1982_v14 = vsel %vm1148_vm1, %v1981_v4, %v1956_v35 }
 0x6e5   : > { %v1980_v52 = vperm.slane %v1972_v51, %v4626_v33  ;;  %v1988_v53 = vperm.slane %v1982_v14, %v4626_v33  ;;  %v1999_v54 = vrot.slane %v1992_v48, 4  ;;  %vm2394_vm10 = vcmp.gt.f32.partialorder %v2393_v44, 0.0 }
 0x6e6   : > { %v1970_v22 = vsel %vm1148_vm1, %v1969_v50, %v1952_v37 }
 0x6e7   : > { %v1976_v55 = vperm.slane %v1970_v22, %v4626_v33  ;;  %v1995_v56 = vrot.slane %v1980_v52, 4  ;;  %v1997_v57 = vrot.slane %v1988_v53, 4  ;;  %v2000_v58 = vsel %vm1148_vm1, 0.0, %v1999_v54 }
 0x6e8   : > { %v2012_v38 = vsel %vm1148_vm1, %v1999_v54, %v1988_v53  ;;  %v2017_v59 = vrot.slane %v2000_v58, 4 }
 0x6e9   : > { %v1993_v60 = vrot.slane %v1976_v55, 4  ;;  %v1996_v61 = vsel %vm1148_vm1, 0.0, %v1995_v56  ;;  %v1998_v62 = vsel %vm1148_vm1, 0.0, %v1997_v57  ;;  %v2001_v63 = vsel %vm1148_vm1, %v1995_v56, %v1976_v55 }
 0x6ea   : > { %v2005_v1 = vperm.slane %v2001_v63, %v4616_v19  ;;  %v2006_v6 = vrot.slane %v1996_v61, 4  ;;  %v2016_v7 = vperm.slane %v2012_v38, %v4616_v19  ;;  %v2018_v12 = vsel %vm1148_vm1, %v2017_v59, %v1998_v62 }
 0x6eb   : > { %v1994_v8 = vsel %vm1148_vm1, 0.0, %v1993_v60  ;;  %v2022_v10 = vperm.slane %v2018_v12, %v4616_v19  ;;  %v3510_v38 = vpack.i.bf16 %v4836_v3, %v4822_v49  ;;  %v3515_v59 = vpack.i.bf16 %v4838_v5, %v4849_v13 }
 0x6ec   : > { %v2007_v9 = vsel %vm1148_vm1, %v2006_v6, %v1994_v8  ;;  %v2025_v11 = vrot.slane %v2005_v1, 4  ;;  %v2037_v15 = vrot.slane %v2016_v7, 4 }
 0x6ed   : > { %v2011_v16 = vperm.slane %v2007_v9, %v4616_v19  ;;  %v2035_v17 = vrot.slane %v2022_v10, 4 }
 0x6ee   : > { %v2038_v18 = vsel %vm1148_vm1, %v2022_v10, %v2037_v15 }
 0x6ef   : > { %v2036_v20 = vsel %vm1148_vm1, %v2035_v17, %v2016_v7  ;;  %v2026_v21 = vsel %vm1148_vm1, %v2011_v16, %v2025_v11  ;;  %v2046_v23 = vperm.slane %v2038_v18, %v4626_v33  ;;  %v2023_v24 = vrot.slane %v2011_v16, 4 }
 0x6f0   : > { %v2034_v25 = vperm.slane %v2026_v21, %v4626_v33  ;;  %v2042_v26 = vperm.slane %v2036_v20, %v4626_v33 }
 0x6f1   : > { %v2051_v27 = vrot.slane %v2046_v23, 4  ;;  %v2024_v28 = vsel %vm1148_vm1, %v2023_v24, %v2005_v1 }
 0x6f2   : > { %v2030_v29 = vperm.slane %v2024_v28, %v4626_v33  ;;  %v2047_v30 = vrot.slane %v2042_v26, 4  ;;  %v2053_v31 = vrot.slane %v2034_v25, 4 }
 0x6f3   : > { %v2052_v32 = vsel %vm1148_vm1, %v2051_v27, %v2034_v25 }
 0x6f4   : > { %v2057_v34 = vpack.c.bf16 %v2052_v32, %v2052_v32  ;;  %v2048_v35 = vsel %vm1148_vm1, %v2047_v30, %v2030_v29  ;;  %v2054_v36 = vsel %vm1148_vm1, %v2046_v23, %v2053_v31  ;;  %v2049_v37 = vrot.slane %v2030_v29, 4 }
 0x6f5   : > { %v2055_v39 = vpack.c.bf16 %v2048_v35, %v2048_v35  ;;  %v2058_v40 = vpack.c.bf16 %v2054_v36, %v2054_v36 }
 0x6f6   : > { %3227 = vmatmul.msk.bf16.vlgmr.msra.gmra.mxu1 %vm1522_vm2, %v2057_v34  ;;  %v2050_v2 = vsel %vm1148_vm1, %v2042_v26, %v2049_v37 }
 0x6f7   : > { %3225 = vmatmul.msk.bf16.vlgmr.msrb.gmra.mxu3 %vm1522_vm2, %v2055_v39  ;;  %3228 = vmatmul.msk.bf16.vlgmr.msra.gmra.mxu2 %vm1522_vm2, %v2058_v40  ;;  %v2056_v41 = vpack.c.bf16 %v2050_v2, %v2050_v2 }
 0x6f9   : > { %3226 = vmatmul.msk.bf16.vlgmr.msra.gmra.mxu0 %vm1522_vm2, %v2056_v41 }
 0x773   : > { %v2370_v45 = vpop.f32.mrf.mxu1 }
 0x774   : > { %v2399_v55 = vsel %vm2394_vm10, -1e+09, %v2370_v45 }
 0x775   : > { %v2407_v58 = vsel %vm1522_vm2, %v2399_v55, -inf }
 0x776   : > { %v2351_v46 = vpop.f32.mrf.mxu0 }
 0x777   : > { %v2398_v4 = vsel %vm2394_vm10, -1e+09, %v2351_v46 }
 0x778   : > { %v2404_v47 = vsel %vm1522_vm2, %v2398_v4, -inf }
 0x779   : > { %2405 = vmax.xlane.f32.xlu2 %v2404_v47 }
 0x77a   : > { %v2332_v48 = vpop.f32.mrf.mxu3  ;;  %v2389_v50 = vpop.f32.mrf.mxu2 }
 0x77b   : > { %v2397_v51 = vsel %vm2394_vm10, -1e+09, %v2332_v48  ;;  %v2372_v14 = vpop.f32.mrf.mxu1  ;;  %v2400_v52 = vsel %vm2394_vm10, -1e+09, %v2389_v50 }
 0x77c   : > { %v2410_v53 = vsel %vm1522_vm2, %v2400_v52, -inf  ;;  %v2401_v54 = vsel %vm1522_vm2, %v2397_v51, -inf }
 0x77d   : > { %2411 = vmax.xlane.f32.xlu0 %v2410_v53  ;;  %2402 = vmax.xlane.f32.xlu1 %v2401_v54 }
 0x77e   : > { %v2353_v22 = vpop.f32.mrf.mxu0 }
 0x782   : > { %v2334_v56 = vpop.f32.mrf.mxu3  ;;  %v2391_v57 = vpop.f32.mrf.mxu2 }
 0x785   : > { %2408 = vmax.xlane.f32.xlu1 %v2407_v58 }
 0x791   : > { %3511 = vrot.lane.b32.xlu0 %v3510_v38, %s4201_s18  ;;  %3516 = vrot.lane.b32.xlu2 %v3515_v59, %s4201_s18  ;;  %s3285_s18 = sshll.u32 %s4366_s9, 4 }
 0x792   : > { %s2818_s6 = scalar_lea.hbm %s5257_s22, %s3285_s18 }
 0x793   : > { %s2821_s4 = sshll.u32 %s2818_s6, 4  ;;  %s2822_s4 = int_to_ptr.hbm [resolvable:$true] %s2821_s4 }
 0x7ec   : > { %v2406_v60 = vpop.xlane.xlu2 %2405 }
 0x7ed   : > { %v2414_v61 = vsub.f32 %v2398_v4, %v2406_v60 }
 0x7ef   : > { %v2419_v62 = vmul.f32 1.442695, %v2414_v61 }
 0x7f0   : > { %v2403_v63 = vpop.xlane.xlu1 %2402  ;;  %v2412_v1 = vpop.xlane.xlu0 %2411 }
 0x7f1   : > { %3553 = vpow2.f32 %v2419_v62  ;;  %v2413_v6 = vsub.f32 %v2397_v51, %v2403_v63  ;;  %v2416_v12 = vsub.f32 %v2400_v52, %v2412_v1 }
 0x7f3   : > { %v2417_v7 = vmul.f32 1.442695, %v2413_v6  ;;  %v2423_v49 = vmul.f32 1.442695, %v2416_v12 }
 0x7f4   : > { %v3517_v10 = vpop.permute.xlu2 %3516 }
 0x7f5   : > { %3555 = vpow2.f32 %v2417_v7  ;;  %v3519_v15 = vunpack.i.h.bf16 %v3517_v10  ;;  %v3518_v16 = vunpack.i.l.bf16 %v3517_v10 }
 0x7f6   : > { %3557 = vpow2.f32 %v2423_v49 }
 0x7f7   : > { %v4952_v8 = vpop.eup %3553  ;;  %v2207_v20 = vrot.slane %v3519_v15, 4  ;;  %v2195_v23 = vrot.slane %v3518_v16, 4 }
 0x7f8   : > { %v2428_v3 = vsel %vm1522_vm2, %v4952_v8, 0.0  ;;  %v2409_v5 = vpop.xlane.xlu1 %2408 }
 0x7f9   : > { %2429 = vadd.xlane.f32.xlu0 %v2428_v3  ;;  %v2415_v9 = vsub.f32 %v2399_v55, %v2409_v5 }
 0x7fb   : > { %v4956_v13 = vpop.eup %3555  ;;  %v2421_v17 = vmul.f32 1.442695, %v2415_v9 }
 0x7fc   : > { %v2425_v11 = vsel %vm1522_vm2, %v4956_v13, 0.0  ;;  %v4960_v18 = vpop.eup %3557 }
 0x7fd   : > { %2426 = vadd.xlane.f32.xlu1 %v2425_v11  ;;  %3559 = vpow2.f32 %v2421_v17  ;;  %v2434_v26 = vsel %vm1522_vm2, %v4960_v18, 0.0 }
 0x803   : > { %v3512_v21 = vpop.permute.xlu0 %3511  ;;  %v4972_v2 = vpop.eup %3559 }
 0x804   : > { %v3514_v24 = vunpack.i.h.bf16 %v3512_v21  ;;  %v3513_v25 = vunpack.i.l.bf16 %v3512_v21  ;;  %v2431_v50 = vsel %vm1522_vm2, %v4972_v2, 0.0 }
 0x805   : > { %2435 = vadd.xlane.f32.xlu1 %v2434_v26 }
 0x806   : > { %v2209_v27 = vrot.slane %v3514_v24, 4  ;;  %v2196_v28 = vsel %vm1148_vm1, %v2195_v23, %v3513_v25  ;;  %v2197_v29 = vrot.slane %v3513_v25, 4  ;;  %v2208_v30 = vsel %vm1148_vm1, %v2207_v20, %v3514_v24 }
 0x807   : > { %v2202_v31 = vperm.slane %v2196_v28, %v4616_v19  ;;  %v2214_v32 = vperm.slane %v2208_v30, %v4616_v19 }
 0x808   : > { %v2198_v34 = vsel %vm1148_vm1, %v3518_v16, %v2197_v29  ;;  %v2210_v35 = vsel %vm1148_vm1, %v3519_v15, %v2209_v27 }
 0x809   : > { %v2206_v36 = vperm.slane %v2198_v34, %v4616_v19  ;;  %v2218_v37 = vperm.slane %v2210_v35, %v4616_v19  ;;  %v2219_v39 = vrot.slane %v2214_v32, 4  ;;  %v2221_v40 = vrot.slane %v2202_v31, 4 }
 0x80b   : > { %v2220_v41 = vsel %vm1148_vm1, %v2219_v39, %v2202_v31  ;;  %v2222_v43 = vsel %vm1148_vm1, %v2214_v32, %v2221_v40  ;;  %v2231_v44 = vrot.slane %v2218_v37, 4  ;;  %v2233_v45 = vrot.slane %v2206_v36, 4 }
 0x80c   : > { %v2226_v46 = vperm.slane %v2220_v41, %v4626_v33  ;;  %v2230_v4 = vperm.slane %v2222_v43, %v4626_v33 }
 0x80d   : > { %v2232_v47 = vsel %vm1148_vm1, %v2231_v44, %v2206_v36  ;;  %v2234_v48 = vsel %vm1148_vm1, %v2218_v37, %v2233_v45  ;;  %2432 = vadd.xlane.f32.xlu1 %v2431_v50 }
 0x80e   : > { %v2238_v51 = vperm.slane %v2232_v47, %v4626_v33  ;;  %v2242_v14 = vperm.slane %v2234_v48, %v4626_v33  ;;  %v2243_v52 = vrot.slane %v2226_v46, 4  ;;  %v2245_v53 = vrot.slane %v2230_v4, 4 }
 0x810   : > { %v2246_v54 = vsel %vm1148_vm1, 0.0, %v2245_v53  ;;  %v2247_v22 = vrot.slane %v2238_v51, 4  ;;  %v2249_v55 = vrot.slane %v2242_v14, 4  ;;  %v2251_v56 = vsel %vm1148_vm1, %v2245_v53, %v2226_v46 }
 0x811   : > { %v2256_v57 = vrot.slane %v2246_v54, 4  ;;  %v2244_v58 = vsel %vm1148_vm1, 0.0, %v2243_v52  ;;  %v2255_v59 = vperm.slane %v2251_v56, %v4616_v19  ;;  %v2311_v54 = vld [vmem:[#allocation20 + $0x4] sm:$0xf]  ;;  %v2313_v56 = vld [vmem:[#allocation20 + $0xc] sm:$0xf] }
 0x812   : > { %v2250_v38 = vsel %vm1148_vm1, 0.0, %v2249_v55  ;;  %v2262_v60 = vsel %vm1148_vm1, %v2249_v55, %v2238_v51  ;;  %v2248_v1 = vsel %vm1148_vm1, 0.0, %v2247_v22  ;;  %v2552_v22 = vsel %vm1658_vm4, %v2311_v54, 0 }
 0x813   : > { %v2267_v61 = vrot.slane %v2250_v38, 4  ;;  %v2257_v62 = vsel %vm1148_vm1, %v2256_v57, %v2244_v58  ;;  %v2266_v63 = vperm.slane %v2262_v60, %v4616_v19  ;;  %v2275_v7 = vrot.slane %v2255_v59, 4  ;;  %v2312_v58 = vld [vmem:[#allocation20 + $0x8] sm:$0xf] }
 0x814   : > { %v2261_v6 = vperm.slane %v2257_v62, %v4616_v19  ;;  %v2590_v57 = vsel %vm1658_vm4, %v2313_v56, 0 }
 0x815   : > { %v2268_v12 = vsel %vm1148_vm1, %v2267_v61, %v2248_v1  ;;  %v2287_v49 = vrot.slane %v2266_v63, 4 }
 0x816   : > { %v2272_v3 = vperm.slane %v2268_v12, %v4616_v19  ;;  %v2276_v5 = vsel %vm1148_vm1, %v2261_v6, %v2275_v7  ;;  %v2273_v10 = vrot.slane %v2261_v6, 4 }
 0x817   : > { %v2284_v9 = vperm.slane %v2276_v5, %v4626_v33 }
 0x818   : > { %v2288_v11 = vsel %vm1148_vm1, %v2272_v3, %v2287_v49  ;;  %v2274_v15 = vsel %vm1148_vm1, %v2273_v10, %v2255_v59  ;;  %v2285_v16 = vrot.slane %v2272_v3, 4 }
 0x819   : > { %v2296_v17 = vperm.slane %v2288_v11, %v4626_v33  ;;  %v2303_v20 = vrot.slane %v2284_v9, 4  ;;  %v2280_v21 = vperm.slane %v2274_v15, %v4626_v33 }
 0x81a   : > { %v2286_v23 = vsel %vm1148_vm1, %v2285_v16, %v2266_v63 }
 0x81b   : > { %v2304_v24 = vsel %vm1148_vm1, %v2296_v17, %v2303_v20  ;;  %v2292_v19 = vperm.slane %v2286_v23, %v4626_v33  ;;  %v2299_v25 = vrot.slane %v2280_v21, 4  ;;  %v2301_v26 = vrot.slane %v2296_v17, 4 }
 0x81c   : > { %v2308_v27 = vpack.c.bf16 %v2304_v24, %v2304_v24 }
 0x81d   : > { %v2300_v28 = vsel %vm1148_vm1, %v2292_v19, %v2299_v25  ;;  %v2302_v29 = vsel %vm1148_vm1, %v2301_v26, %v2284_v9  ;;  %v2297_v30 = vrot.slane %v2292_v19, 4  ;;  %v3526_v19 = vld [vmem:[#allocation22] ss:$0 sm:$0xff] }
 0x81e   : > { %v2510_v31 = vsel %vm1658_vm4, %v2308_v27, 0  ;;  %v2306_v32 = vpack.c.bf16 %v2300_v28, %v2300_v28  ;;  %v2307_v34 = vpack.c.bf16 %v2302_v29, %v2302_v29 }
 0x81f   : > { %2519 = vmatpush.bf16.msrb.mxu2 %v2510_v31  ;;  %v2298_v35 = vsel %vm1148_vm1, %v2297_v30, %v2280_v21 }
 0x820   : > { %v2472_v36 = vsel %vm1658_vm4, %v2306_v32, 0  ;;  %v2491_v33 = vsel %vm1658_vm4, %v2307_v34, 0  ;;  %v2305_v37 = vpack.c.bf16 %v2298_v35, %v2298_v35 }
 0x821   : > { %2481 = vmatpush.bf16.msrb.mxu0 %v2472_v36  ;;  %2500 = vmatpush.bf16.msrb.mxu1 %v2491_v33 }
 0x822   : > { %v2453_v39 = vsel %vm1658_vm4, %v2305_v37, 0  ;;  %v3280_v37 = vld [vmem:[%s5253_s10 + $0x8] sm:$0xff] }
 0x823   : > { %2462 = vmatpush.bf16.msra.mxu3 %v2453_v39  ;;  %2599 = vmatpush.bf16.msra.mxu2 %v2590_v57  ;;  %v3284_v39 = vld [vmem:[%s5254_s14 + $0x18] sm:$0xff] }
 0x825   : > { %2561 = vmatpush.bf16.msra.mxu0 %v2552_v22  ;;  %v3282_v22 = vld [vmem:[%s5254_s14 + $0x8] sm:$0xff] }
 0x86c   : > { %v2430_v40 = vpop.xlane.xlu0 %2429 }
 0x86d   : > { %3561 = vrcp.f32 %v2430_v40 }
 0x870   : > { %v2427_v41 = vpop.xlane.xlu1 %2426 }
 0x871   : > { %3563 = vrcp.f32 %v2427_v41 }
 0x873   : > { %v3562_v43 = vpop.eup %3561 }
 0x874   : > { %v2442_v44 = vmul.f32 %v3562_v43, %v4952_v8  ;;  %v3283_v43 = vld [vmem:[%s5254_s14 + $0x10] sm:$0xff] }
 0x876   : > { %v2446_v45 = vpack.c.bf16 %v2442_v44, %v2442_v44 }
 0x877   : > { %v3564_v46 = vpop.eup %3563 }
 0x878   : > { %2779 = vst.msk [vmem:[%s5015_s30 + $0x4] sm:$0xf] %vm2773_vm5, %v2446_v45  ;;  %3230 = vmatmul.msk.bf16.vlgmr.msrb.gmra.mxu0 %vm1522_vm2, %v2446_v45  ;;  %v2441_v4 = vmul.f32 %v3564_v46, %v4956_v13  ;;  %v2436_v47 = vpop.xlane.xlu1 %2435 }
 0x879   : > { %3565 = vrcp.f32 %v2436_v47  ;;  %2732 = vmatpush.bf16.msrb.mxu0 %v3284_v39 }
 0x87a   : > { %v2445_v48 = vpack.c.bf16 %v2441_v4, %v2441_v4 }
 0x87c   : > { %2778 = vst.msk [vmem:[%s5015_s30] sm:$0xf] %vm2773_vm5, %v2445_v48  ;;  %3229 = vmatmul.msk.bf16.vlgmr.msra.gmra.mxu3 %vm1522_vm2, %v2445_v48 }
 0x87d   : > { %2733 = vmatpush.bf16.msrb.mxu0 %v3283_v43 }
 0x87f   : > { %v3566_v8 = vpop.eup %3565 }
 0x880   : > { %v2444_v50 = vmul.f32 %v3566_v8, %v4960_v18  ;;  %v2433_v51 = vpop.xlane.xlu1 %2432  ;;  %v2310_v18 = vld [vmem:[#allocation20] sm:$0xf] }
 0x881   : > { %3567 = vrcp.f32 %v2433_v51  ;;  %v2533_v55 = vsel %vm1658_vm4, %v2310_v18, 0  ;;  %2734 = vmatpush.bf16.msrb.mxu0 %v3282_v22  ;;  %v3281_v18 = vld [vmem:[%s5254_s14] sm:$0xff] }
 0x882   : > { %v2448_v14 = vpack.c.bf16 %v2444_v50, %v2444_v50  ;;  %2542 = vmatpush.bf16.msrb.mxu3 %v2533_v55  ;;  %v3527_v50 = vld [vmem:[#allocation23] ss:$0 sm:$0xff]  ;;  %v3529_v55 = vld [vmem:[%s5255_s24] ss:$0 sm:$0xff]  ;;  %s4037_s24 = sshra.s32 %s2822_s4, 4  ;;  %s4038_s24 = int_to_ptr.hbm [resolvable:$true] %s4037_s24 }
 0x883   : > { %s4039_s29 = scalar_lea.hbm %s4038_s24, 16  ;;  %p4044_p9 = scmp.lt.s32.totalorder %s4038_s24, %s5257_s22 }
 0x884   : > { %2781 = vst.msk [vmem:[%s5015_s30 + $0xc] sm:$0xf] %vm2773_vm5, %v2448_v14  ;;  %3232 = vmatmul.msk.bf16.vlgmr.msrb.gmra.mxu2 %vm1522_vm2, %v2448_v14  ;;  %v3528_v14 = vld [vmem:[#allocation25] ss:$0 sm:$0xff]  ;;  %p4040_p1 = scmp.ne.s32.totalorder %s4038_s24, %s4039_s29  ;;  %p4045_p8 = scmp.lt.s32.totalorder %s4043_s19, %s4039_s29 }
 0x885   : > { %2735 = vmatpush.bf16.msrb.mxu0 %v3281_v18 }
 0x886   : > { %2688 = vmatpush.bf16.msra.mxu3 %v3280_v37  ;;  %p4041_p13 = pnand %p4040_p1, %p4484_p0  ;;  %p4046_p10 = por %p4045_p8, %p4044_p9 }
 0x887   : > { %v3568_v52 = vpop.eup %3567 }
 0x888   : > { %v2443_v13 = vmul.f32 %v3568_v52, %v4972_v2  ;;  %v2571_v2 = vsel %vm1658_vm4, %v2312_v58, 0  ;;  %p4042_p7 = pneg %p4041_p13 }
 0x889   : > { %2580 = vmatpush.bf16.msra.mxu1 %v2571_v2 }
 0x88a   : > { %v2447_v53 = vpack.c.bf16 %v2443_v13, %v2443_v13  ;;  %p4047_p12 = pnand %p4046_p10, %p4042_p7 }
 0x88c   : > { %2780 = vst.msk [vmem:[%s5015_s30 + $0x8] sm:$0xf] %vm2773_vm5, %v2447_v53  ;;  %3231 = vmatmul.msk.bf16.vlgmr.msrb.gmra.mxu1 %vm1522_vm2, %v2447_v53 }
 0x8f5   : > { %v2483_v38 = vpop.f32.mrf.mxu0 }
 0x8f6   : > { %v2526_v59 = vpack.c.bf16 %v2483_v38, %v2483_v38 }
 0x8f8   : > { %3234 = vmatmul.msk.bf16.vlgmr.msra.gmra.mxu0 %vm1522_vm2, %v2526_v59  ;;  %v3530_v59 = vld [vmem:[%s5256_s15] ss:$0 sm:$0xff] }
 0x8fd   : > { %v2485_v60 = vpop.f32.mrf.mxu0 }
 0x8ff   : > { %v2464_v61 = vpop.f32.mrf.mxu3 }
 0x900   : > { %v2525_v62 = vpack.c.bf16 %v2464_v61, %v2464_v61 }
 0x902   : > { %3233 = vmatmul.msk.bf16.vlgmr.msrb.gmra.mxu3 %vm1522_vm2, %v2525_v62 }
 0x907   : > { %v2466_v63 = vpop.f32.mrf.mxu3  ;;  %v2521_v1 = vpop.f32.mrf.mxu2 }
 0x908   : > { %v2528_v6 = vpack.c.bf16 %v2521_v1, %v2521_v1 }
 0x909   : > { %v2502_v7 = vpop.f32.mrf.mxu1 }
 0x90a   : > { %v2527_v12 = vpack.c.bf16 %v2502_v7, %v2502_v7  ;;  %3236 = vmatmul.msk.bf16.vlgmr.msra.gmra.mxu2 %vm1522_vm2, %v2528_v6 }
 0x90c   : > { %3235 = vmatmul.msk.bf16.vlgmr.msra.gmra.mxu1 %vm1522_vm2, %v2527_v12 }
 0x90f   : > { %v2523_v49 = vpop.f32.mrf.mxu2 }
 0x911   : > { %v2504_v3 = vpop.f32.mrf.mxu1 }
 0x975   : > { %v2563_v5 = vpop.f32.mrf.mxu0 }
 0x976   : > { %v2606_v16 = vsel %vm1120_vm0, %v2563_v5, 0.0 }
 0x97d   : > { %v2565_v10 = vpop.f32.mrf.mxu0 }
 0x985   : > { %v2544_v9 = vpop.f32.mrf.mxu3 }
 0x986   : > { %v2605_v11 = vsel %vm1120_vm0, %v2544_v9, 0.0 }
 0x987   : > { %v2607_v20 = vadd.f32 %v2606_v16, %v2605_v11 }
 0x989   : > { %v2582_v15 = vpop.f32.mrf.mxu1 }
 0x98a   : > { %v2608_v17 = vsel %vm1120_vm0, %v2582_v15, 0.0 }
 0x98b   : > { %v2609_v21 = vadd.f32 %v2608_v17, %v2607_v20 }
 0x98d   : > { %v2546_v23 = vpop.f32.mrf.mxu3  ;;  %v2601_v24 = vpop.f32.mrf.mxu2 }
 0x98e   : > { %v2610_v25 = vsel %vm1120_vm0, %v2601_v24, 0.0 }
 0x98f   : > { %v2611_v26 = vadd.f32 %v2610_v25, %v2609_v21 }
 0x991   : > { %v2615_v27 = vadd.f32 %v3526_v19, %v2611_v26  ;;  %v2584_v28 = vpop.f32.mrf.mxu1 }
 0x993   : > { %v2616_v29 = vadd.f32 %v2615_v27, %v4831_v0  ;;  %v3279_v0 = vld [vmem:[%s5253_s10] sm:$0xff] }
 0x994   : > { %2689 = vmatpush.bf16.msra.mxu3 %v3279_v0 }
 0x995   : > { %v2603_v30 = vpop.f32.mrf.mxu2  ;;  %v2617_v31 = vsel %vm1120_vm0, %v2616_v29, 0.0 }
 0x996   : > { %2618 = vadd.xlane.f32.xlu2 %v2617_v31 }
 0xa09   : > { %v2619_v32 = vpop.xlane.xlu2 %2618 }
 0xa0a   : > { %v2620_v34 = vmul.f32 %v2619_v32, %v4818_v42 }
 0xa0c   : > { %v2621_v35 = vsub.f32 %v2616_v29, %v2620_v34 }
 0xa0e   : > { %v2622_v36 = vmul.f32 %v2621_v35, %v2621_v35 }
 0xa10   : > { %v2623_v33 = vsel %vm1120_vm0, %v2622_v36, 0.0 }
 0xa11   : > { %2624 = vadd.xlane.f32.xlu1 %v2623_v33 }
 0xa84   : > { %v2625_v40 = vpop.xlane.xlu1 %2624 }
 0xa85   : > { %v2626_v41 = vmul.f32 %v2625_v40, %v4818_v42 }
 0xa87   : > { %v2627_v44 = vadd.f32 1e-05, %v2626_v41 }
 0xa89   : > { %3569 = vrsqrt.f32 %v2627_v44  ;;  %vm2634_vm12 = vweird.f32 %v2627_v44 }
 0xa8f   : > { %v3570_v45 = vpop.eup %3569 }
 0xa90   : > { %v2629_v46 = vmul.f32 %v3570_v45, %v2627_v44  ;;  %vm2635_vm11 = vweird.f32 %v3570_v45 }
 0xa91   : > { %vm2636_vm13 = vmor %vm2634_vm12, %vm2635_vm11 }
 0xa92   : > { %v2630_v4 = vmul.f32 %v3570_v45, %v2629_v46 }
 0xa94   : > { %v2631_v47 = vmul.f32 0.5, %v2630_v4 }
 0xa96   : > { %v2632_v48 = vsub.f32 1.5, %v2631_v47 }
 0xa98   : > { %v2633_v8 = vmul.f32 %v3570_v45, %v2632_v48 }
 0xa9a   : > { %v2637_v51 = vsel %vm2636_vm13, %v3570_v45, %v2633_v8 }
 0xa9b   : > { %v2638_v52 = vmul.f32 %v2637_v51, %v2621_v35 }
 0xa9d   : > { %v2642_v13 = vmul.f32 %v3527_v50, %v2638_v52 }
 0xa9f   : > { %v2646_v53 = vadd.f32 %v3528_v14, %v2642_v13 }
 0xaa1   : > { %v2663_v54 = vpack.c.bf16 %v2646_v53, %v2646_v53 }
 0xaa3   : > { %3245 = vmatmul.msk.bf16.vlgmr.msra.gmra.mxu3 %vm1120_vm0, %v2663_v54 }
 0xb26   : > { %v2691_v56 = vpop.f32.mrf.mxu3 }
 0xb27   : > { %v2692_v57 = vadd.f32 %v3529_v55, %v2691_v56 }
 0xb29   : > { %v2695_v58 = vmax.f32 %v2692_v57, 0.0 }
 0xb2b   : > { %v2696_v2 = vpack.c.bf16 %v2695_v58, %v2695_v58 }
 0xb2d   : > { %3262 = vmatmul.msk.bf16.vlgmr.msrb.gmra.mxu0 %vm2724_vm14, %v2696_v2 }
 0xb2e   : > { %v2693_v38 = vpop.f32.mrf.mxu3 }
 0xbaa   : > { %v2737_v60 = vpop.f32.mrf.mxu0 }
 0xbab   : > { %v2738_v61 = vadd.f32 %v3530_v59, %v2737_v60 }
 0xbad   : > { %v2741_v62 = vadd.f32 %v2738_v61, %v2646_v53 }
 0xbaf   : > { %v2742_v63 = vsel %vm1120_vm0, %v2741_v62, 0.0 }
 0xbb0   : > { %2743 = vadd.xlane.f32.xlu1 %v2742_v63 }
 0xbb2   : > { %v2739_v1 = vpop.f32.mrf.mxu0 }
 0xc23   : > { %v2744_v6 = vpop.xlane.xlu1 %2743 }
 0xc24   : > { %v2745_v7 = vmul.f32 %v2744_v6, %v4818_v42 }
 0xc26   : > { %v2746_v12 = vsub.f32 %v2741_v62, %v2745_v7 }
 0xc28   : > { %v2747_v49 = vmul.f32 %v2746_v12, %v2746_v12 }
 0xc2a   : > { %v2748_v3 = vsel %vm1120_vm0, %v2747_v49, 0.0 }
 0xc2b   : > { %2749 = vadd.xlane.f32.xlu1 %v2748_v3 }
 0xc2c   : > { %4050 = shalt.err (!%p4047_p12)
}
 0xc2d   : > { %s4206_s16 = smov 4   ;;  %s5258_s26 = smov 64  }
 0xc2e   : > { %3344 = dma.vmem_to_hbm [thread:$0]  (%p4484_p0), %s2820_s23, 256, %s2822_s4, %s5084_s5, %s5258_s26, %s5258_s26, %s4206_s16  }
 0xc2f   : > { %s5259_s15 = sld [smem:[#allocation67_spill]]  ;;  %s2836_s2 = sshll.u32 %s5015_s30, 4  ;;  %s2837_s2 = int_to_ptr.vmem [resolvable:$true] %s2836_s2 }
 0xc35   : > { %s2835_s1 = scalar_lea.hbm %s5259_s15, %s3285_s18  ;;  %s4071_s10 = scalar_lea.hbm %s5259_s15, 32 }
 0xc36   : > { %s2838_s17 = sshll.u32 %s2835_s1, 4  ;;  %s2839_s17 = int_to_ptr.hbm [resolvable:$true] %s2838_s17 }
 0xc37   : > { %s4065_s19 = sshra.s32 %s2839_s17, 4  ;;  %s4066_s19 = int_to_ptr.hbm [resolvable:$true] %s4065_s19 }
 0xc38   : > { %s4067_s24 = scalar_lea.hbm %s4066_s19, 16  ;;  %p4072_p5 = scmp.lt.s32.totalorder %s4066_s19, %s5259_s15 }
 0xc39   : > { %p4068_p4 = scmp.ne.s32.totalorder %s4066_s19, %s4067_s24  ;;  %p4073_p3 = scmp.lt.s32.totalorder %s4071_s10, %s4067_s24 }
 0xc3b   : > { %p4069_p11 = pnand %p4068_p4, %p4484_p0  ;;  %p4074_p1 = por %p4073_p3, %p4072_p5 }
 0xc3d   : > { %p4070_p2 = pneg %p4069_p11 }
 0xc3f   : > { %p4075_p13 = pnand %p4074_p1, %p4070_p2 }
 0xc41   : > { %4078 = shalt.err (!%p4075_p13)
}
 0xc42   : > { %3345 = dma.vmem_to_hbm [thread:$0]  (%p4484_p0), %s2837_s2, 256, %s2839_s17, %s5084_s5, %s5258_s26, %s5258_s26, %s4206_s16  }
 0xc43   : > { %s3181_s1 = sshll.u32 %s4537_s13, 3  ;;  %s3266_s30 = sshll.u32 %s4366_s9, 3 }
 0xc44   : > { %s5260_s6 = sld [smem:[#allocation63_spill]]  ;;  %s1073_s9 = scalar_lea.vmem [#allocation26], %s3181_s1 }
 0xc45   : > { %s5261_s16 = sld [smem:[#allocation65_spill]]  ;;  %s2805_s24 = sshll.u32 %s1073_s9, 4  ;;  %s2806_s24 = int_to_ptr.vmem [resolvable:$true] %s2805_s24 }
 0xc46   : > { %s5262_s19 = sld [smem:[#allocation64_spill]]  ;;  %s2783_s20 = scalar_lea.sflag [#allocation4], %s4537_s13 }
 0xc4a   : > { %v3531_v23 = vld [vmem:[%s5260_s6] ss:$0 sm:$0xff] }
 0xc4b   : > { %s2803_s26 = scalar_lea.hbm %s5261_s16, %s3266_s30  ;;  %s4099_s1 = scalar_lea.hbm %s5261_s16, 16 }
 0xc4c   : > { %v3532_v19 = vld [vmem:[%s5262_s19] ss:$0 sm:$0xff]  ;;  %s2807_s29 = sshll.u32 %s2803_s26, 4  ;;  %s2808_s29 = int_to_ptr.hbm [resolvable:$true] %s2807_s29 }
 0xc4d   : > { %s4093_s23 = sshra.s32 %s2808_s29, 4  ;;  %s4094_s23 = int_to_ptr.hbm [resolvable:$true] %s4093_s23 }
 0xc4e   : > { %s4095_s4 = scalar_lea.hbm %s4094_s23, 8  ;;  %p4100_p10 = scmp.lt.s32.totalorder %s4094_s23, %s5261_s16 }
 0xc4f   : > { %p4096_p7 = scmp.ne.s32.totalorder %s4094_s23, %s4095_s4  ;;  %p4101_p12 = scmp.lt.s32.totalorder %s4099_s1, %s4095_s4 }
 0xc51   : > { %p4097_p9 = pnand %p4096_p7, %p4484_p0  ;;  %p4102_p4 = por %p4101_p12, %p4100_p10 }
 0xc53   : > { %p4098_p8 = pneg %p4097_p9 }
 0xc55   : > { %p4103_p11 = pnand %p4102_p4, %p4098_p8 }
 0xc9e   : > { %v2750_v5 = vpop.xlane.xlu1 %2749 }
 0xc9f   : > { %v2751_v10 = vmul.f32 %v2750_v5, %v4818_v42 }
 0xca1   : > { %v2752_v9 = vadd.f32 1e-05, %v2751_v10 }
 0xca3   : > { %3571 = vrsqrt.f32 %v2752_v9  ;;  %vm2759_vm1 = vweird.f32 %v2752_v9 }
 0xca9   : > { %v3572_v11 = vpop.eup %3571 }
 0xcaa   : > { %v2754_v15 = vmul.f32 %v3572_v11, %v2752_v9  ;;  %vm2760_vm15 = vweird.f32 %v3572_v11 }
 0xcab   : > { %vm2761_vm2 = vmor %vm2759_vm1, %vm2760_vm15 }
 0xcac   : > { %v2755_v16 = vmul.f32 %v3572_v11, %v2754_v15 }
 0xcae   : > { %v2756_v17 = vmul.f32 0.5, %v2755_v16 }
 0xcb0   : > { %v2757_v20 = vsub.f32 1.5, %v2756_v17 }
 0xcb2   : > { %v2758_v21 = vmul.f32 %v3572_v11, %v2757_v20 }
 0xcb4   : > { %v2762_v42 = vsel %vm2761_vm2, %v3572_v11, %v2758_v21 }
 0xcb5   : > { %v2763_v24 = vmul.f32 %v2762_v42, %v2746_v12 }
 0xcb7   : > { %v2767_v25 = vmul.f32 %v3531_v23, %v2763_v24 }
 0xcb9   : > { %v2771_v26 = vadd.f32 %v3532_v19, %v2767_v25 }
 0xcbb   : > { %2772 = vst.msk [vmem:[%s1073_s9] sm:$0xff] %vm1120_vm0, %v2771_v26 }
 0xcbc   : > { %4106 = shalt.err (!%p4103_p11)
}
 0xcbd   : > { %3343 = dma.vmem_to_hbm [thread:$0]  (%p4484_p0), %s2806_s24, 128, %s2808_s29, %s2783_s20  }
 0xcbe PF: > { %s2853_s13 = sand.u32 1, %s4169_s27   ;;  %p5263_p2 = scmp.ge.s32.totalorder %s4181_s28, 2 }
 0xcbf   : > { %s2854_s2 = scalar_lea.sflag [#allocation4], %s2853_s13 }
 0xcc0   : > { %p3397_p5 = pnand %p5263_p2, %p4492_p6 }
 0xcc2   : > { %p3398_p3 = pneg %p3397_p5 }
 0xcc4   : > { %4160 = dma.done.wait (%p3398_p3), %s2854_s2, 128  }
 0xcc5   : > { %4162 = vsyncadd (%p3398_p3), %s2854_s2, 4294967168  ;;  %s5264_s5 = sadd.s32 4294967294, %s4181_s28  }
 0xcc6   : > { %s2863_s26 = sand.u32 1, %s5264_s5  }
 0xcc7   : > { %s2864_s11 = scalar_lea.sflag [#allocation28], %s2863_s26 }
 0xcc8   : > { %4164 = dma.done.wait (%p3398_p3), %s2864_s11, 512  }
 0xcc9   : > { %4166 = vsyncadd (%p3398_p3), %s2864_s11, 4294966784  ;;  %p52_p0 = scmp.ge.s32.totalorder %s4460_s0, 4   ;;  %s5265_s27 = smov %s4173_s3 }
 0xcca   : > { %s5266_s3 = smov %s4177_s7  ;;  %s5267_s7 = smov %s4472_s8 }
 0xccb   : > { %s5268_s28 = smov %s4460_s0  ;;  %54 = sbr.rel (!%p52_p0) target bundleno = 43 (0x2b), region = 264 }
 0xcd0   :  { %2880 = vsyncpa [#allocation3], 1 }
 0xcd1   :  { %2882 = vsyncpa [#allocation3 + $0x1], 1 }
 0xcd2   :  { %2883 = vsyncpa [#allocation6], 1 }
 0xcd3   :  { %2885 = vsyncpa [#allocation6 + $0x1], 1 }
 0xcd4   :  { %2886 = vsyncpa [#allocation9], 1 }
 0xcd5   :  { %2887 = vsyncpa [#allocation12], 1 }
 0xcd6   :  { %2888 = vsyncpa [#allocation15], 1 }
 0xcd7   :  { %2889 = vsyncpa [#allocation18], 1 }
 0xcd8   :  { %2890 = vsyncpa [#allocation21], 1 }
 0xcd9   :  { %2891 = vsyncpa [#allocation24], 1 }
 0xcda   :  { %2892 = vsyncpa [#allocation4], 1 }
 0xcdb   :  { %2894 = vsyncpa [#allocation4 + $0x1], 1 }
 0xcdc   :  { %2895 = vsyncpa [#allocation28], 1 }
 0xcdd   :  { %2897 = vsyncpa [#allocation28 + $0x1], 1 }

// kernel: tpu_custom_call.1
= control target key start
LH: loop header
LB: loop body
LE: loop exit
PB: predicated region body
PF: predicated region fallthrough
CT: control target
= control target key end

     0   :  { %s5160_s0 = inlined_call_operand.vmem [shape: f32[2,8,32], index: 0, kind: input, shape index: {}]   ;;  %s5161_s1 = inlined_call_operand.vmem [shape: f32[2,8,32], index: 1, kind: input, shape index: {}]   ;;  %s5162_s2 = inlined_call_operand.hbm [shape: bf16[2,8,8], index: 2, kind: input, shape index: {}]   ;;  %s5163_s3 = inlined_call_operand.hbm [shape: bf16[2,8,8], index: 3, kind: input, shape index: {}]   ;;  %s5164_s4 = inlined_call_operand.vmem [shape: bf16[32,96], index: 4, kind: input, shape index: {}]   ;;  %s5165_s5 = inlined_call_operand.hbm [shape: f32[1,96], index: 5, kind: input, shape index: {}]   ;;  %s5166_s6 = inlined_call_operand.hbm [shape: bf16[4,8,32], index: 6, kind: input, shape index: {}]   ;;  %s5167_s7 = inlined_call_operand.hbm [shape: f32[1,32], index: 7, kind: input, shape index: {}]   ;;  %s5168_s8 = inlined_call_operand.hbm [shape: f32[1,32], index: 8, kind: input, shape index: {}]   ;;  %s5169_s9 = inlined_call_operand.hbm [shape: f32[1,32], index: 9, kind: input, shape index: {}]   ;;  %s5170_s10 = inlined_call_operand.hbm [shape: bf16[32,32], index: 10, kind: input, shape index: {}]   ;;  %s5171_s11 = inlined_call_operand.hbm [shape: f32[1,32], index: 11, kind: input, shape index: {}]   ;;  %s5172_s12 = inlined_call_operand.hbm [shape: bf16[32,64], index: 12, kind: input, shape index: {}]   ;;  %s5173_s13 = inlined_call_operand.hbm [shape: f32[1,64], index: 13, kind: input, shape index: {}]   ;;  %s5174_s14 = inlined_call_operand.hbm [shape: bf16[4,8,32], index: 14, kind: input, shape index: {}]   ;;  %s5175_s15 = inlined_call_operand.hbm [shape: f32[1,32], index: 15, kind: input, shape index: {}]   ;;  %s5176_s16 = inlined_call_operand.hbm [shape: f32[1,32], index: 16, kind: input, shape index: {}]   ;;  %s5177_s17 = inlined_call_operand.hbm [shape: f32[1,32], index: 17, kind: input, shape index: {}]   ;;  %s5178_s18 = inlined_call_operand.vmem [shape: bf16[32,64], index: 18, kind: input, shape index: {}]   ;;  %s5179_s19 = inlined_call_operand.vmem [shape: f32[1,64], index: 19, kind: input, shape index: {}]   ;;  %s5180_s20 = inlined_call_operand.vmem [shape: bf16[64,32], index: 20, kind: input, shape index: {}]   ;;  %s5181_s21 = inlined_call_operand.vmem [shape: f32[1,32], index: 21, kind: input, shape index: {}]   ;;  %s5182_s22 = inlined_call_operand.vmem [shape: f32[1,32], index: 22, kind: input, shape index: {}]   ;;  %s5183_s23 = inlined_call_operand.vmem [shape: f32[1,32], index: 23, kind: input, shape index: {}]   ;;  %s5184_s24 = inlined_call_operand.hbm [shape: f32[2,8,32], index: 24, kind: output, shape index: {0}]   ;;  %s5185_s25 = inlined_call_operand.hbm [shape: bf16[2,4,8,8], index: 25, kind: output, shape index: {1}]   ;;  %s5186_s26 = inlined_call_operand.hbm [shape: bf16[2,4,8,8], index: 26, kind: output, shape index: {2}]  }
   0x1   :  { %5201 = sst [smem:[#allocation41_spill]] %s5160_s0 }
   0x2   :  { %5202 = sst [smem:[#allocation42_spill]] %s5161_s1 }
   0x3   :  { %5203 = sst [smem:[#allocation43_spill]] %s5162_s2 }
   0x4   :  { %5204 = sst [smem:[#allocation44_spill]] %s5163_s3 }
   0x5   :  { %5205 = sst [smem:[#allocation45_spill]] %s5164_s4 }
   0x6   :  { %5206 = sst [smem:[#allocation46_spill]] %s5165_s5 }
   0x7   :  { %5207 = sst [smem:[#allocation47_spill]] %s5166_s6 }
   0x8   :  { %5208 = sst [smem:[#allocation48_spill]] %s5167_s7 }
   0x9   :  { %5209 = sst [smem:[#allocation49_spill]] %s5168_s8 }
   0xa   :  { %5210 = sst [smem:[#allocation50_spill]] %s5169_s9 }
   0xb   :  { %5211 = sst [smem:[#allocation51_spill]] %s5170_s10 }
   0xc   :  { %5212 = sst [smem:[#allocation52_spill]] %s5171_s11 }
   0xd   :  { %5213 = sst [smem:[#allocation53_spill]] %s5172_s12 }
   0xe   :  { %5214 = sst [smem:[#allocation54_spill]] %s5173_s13 }
   0xf   :  { %5215 = sst [smem:[#allocation55_spill]] %s5174_s14 }
  0x10   :  { %5216 = sst [smem:[#allocation56_spill]] %s5175_s15 }
  0x11   :  { %5217 = sst [smem:[#allocation57_spill]] %s5176_s16 }
  0x12   :  { %5218 = sst [smem:[#allocation58_spill]] %s5177_s17 }
  0x13   :  { %5219 = sst [smem:[#allocation59_spill]] %s5178_s18 }
  0x14   :  { %5220 = sst [smem:[#allocation60_spill]] %s5179_s19 }
  0x15   :  { %5221 = sst [smem:[#allocation61_spill]] %s5180_s20 }
  0x16   :  { %5222 = sst [smem:[#allocation62_spill]] %s5181_s21 }
  0x17   :  { %5223 = sst [smem:[#allocation63_spill]] %s5182_s22 }
  0x18   :  { %5224 = sst [smem:[#allocation64_spill]] %s5183_s23 }
  0x19   :  { %5225 = sst [smem:[#allocation65_spill]] %s5184_s24 }
  0x1a   :  { %5226 = sst [smem:[#allocation66_spill]] %s5185_s25 }
  0x1b   :  { %5227 = sst [smem:[#allocation67_spill]] %s5186_s26 }
  0x1c   :  { %32 = vsyncpa [#allocation3], 0 }
  0x1d   :  { %34 = vsyncpa [#allocation3 + $0x1], 0 }
  0x1e   :  { %35 = vsyncpa [#allocation6], 0 }
  0x1f   :  { %37 = vsyncpa [#allocation6 + $0x1], 0 }
  0x20   :  { %38 = vsyncpa [#allocation9], 0 }
  0x21   :  { %39 = vsyncpa [#allocation12], 0 }
  0x22   :  { %40 = vsyncpa [#allocation15], 0 }
  0x23   :  { %41 = vsyncpa [#allocation18], 0 }
  0x24   :  { %42 = vsyncpa [#allocation21], 0 }
  0x25   :  { %43 = vsyncpa [#allocation24], 0 }
  0x26   :  { %44 = vsyncpa [#allocation4], 0 }
  0x27   :  { %46 = vsyncpa [#allocation4 + $0x1], 0 }
  0x28   :  { %47 = vsyncpa [#allocation28], 0 }
  0x29   :  { %49 = vsyncpa [#allocation28 + $0x1], 0  ;;  %s4342_s27 = smov 0   ;;  %s4344_s3 = smov 0  }
  0x2a   :  { %s4346_s7 = smov 0   ;;  %s4348_s28 = smov 0  }
  0x2b LB: > { %s5228_s29 = sld [smem:[#allocation46_spill]]  ;;  %s4366_s9 = sadd.s32 4294967295, %s4181_s28   ;;  %s4181_s28 = sphi %s4348_s28, %s5268_s28   ;;  %s4177_s7 = sphi %s4346_s7, %s5267_s7   ;;  %s4173_s3 = sphi %s4344_s3, %s5266_s3   ;;  %s4169_s27 = sphi %s4342_s27, %s5265_s27  }
  0x2c   : > { %p3146_p0 = scmp.ge.s32.totalorder %s4181_s28, 1  ;;  %p128_p1 = scmp.eq.s32.totalorder %s4366_s9, 0 }
  0x2d   : > { %p662_p2 = scmp.lt.s32.totalorder %s4181_s28, 3  ;;  %s4183_s2 = smov [#allocation7]  }
  0x2e   : > { %s679_s5 = sshll.u32 %s4183_s2, 4  ;;  %s5230_s1 = sld [smem:[#allocation47_spill]]  ;;  %s680_s5 = int_to_ptr.vmem [resolvable:$true] %s679_s5 }
  0x2f   : > { %p4371_p3 = pnand %p3146_p0, %p662_p2  ;;  %s4185_s2 = smov 64  }
  0x30   : > { %s4186_s24 = smov 4   ;;  %s4187_s26 = smov [#allocation11]  }
  0x31   : > { %s677_s0 = sshll.u32 %s5228_s29, 4  ;;  %p3349_p5 = pneg %p4371_p3  ;;  %s678_s0 = int_to_ptr.hbm [resolvable:$true] %s677_s0 }
  0x32   : > { %s4184_s29 = smov [#allocation8]   ;;  %s717_s25 = sshll.u32 %s4187_s26, 4  ;;  %s718_s25 = int_to_ptr.vmem [resolvable:$true] %s717_s25 }
  0x33   : > { %p4383_p6 = pnand %p3349_p5, %p128_p1  ;;  %s690_s23 = sshll.u32 %s4184_s29, 4  ;;  %s691_s23 = int_to_ptr.vmem [resolvable:$true] %s690_s23 }
  0x34   : > { %s688_s8 = sshll.u32 %s5230_s1, 4  ;;  %s5232_s1 = sld [smem:[#allocation49_spill]]  ;;  %s689_s8 = int_to_ptr.hbm [resolvable:$true] %s688_s8 }
  0x35   : > { %3352 = dma.hbm_to_vmem [thread:$0]  (!%p4383_p6), %s678_s0, 16, %s680_s5, [#allocation6]  }
  0x36   : > { %3355 = dma.hbm_to_vmem [thread:$0]  (!%p4383_p6), %s689_s8, 256, %s691_s23, [#allocation9], %s4185_s2, %s4185_s2, %s4186_s24  }
  0x37   : > { %s5233_s0 = sld [smem:[#allocation51_spill]]  ;;  %s4188_s19 = smov [#allocation14]  }
  0x38   : > { %s740_s20 = sshll.u32 %s4188_s19, 4  ;;  %s5234_s12 = sld [smem:[#allocation53_spill]]  ;;  %s741_s20 = int_to_ptr.vmem [resolvable:$true] %s740_s20 }
  0x39   : > { %s5235_s14 = sld [smem:[#allocation55_spill]]  ;;  %s4190_s18 = smov [#allocation20]  }
  0x3a   : > { %s715_s22 = sshll.u32 %s5232_s1, 4  ;;  %s792_s19 = sshll.u32 %s4190_s18, 4  ;;  %s716_s22 = int_to_ptr.hbm [resolvable:$true] %s715_s22  ;;  %s793_s19 = int_to_ptr.vmem [resolvable:$true] %s792_s19 }
  0x3b   : > { %3361 = dma.hbm_to_vmem [thread:$0]  (!%p4383_p6), %s716_s22, 16, %s718_s25, [#allocation12]  }
  0x3c   : > { %s4189_s22 = smov [#allocation17]   ;;  %s5236_s16 = sld [smem:[#allocation57_spill]] }
  0x3d   : > { %s738_s5 = sshll.u32 %s5233_s0, 4  ;;  %s766_s25 = sshll.u32 %s4189_s22, 4  ;;  %s739_s5 = int_to_ptr.hbm [resolvable:$true] %s738_s5  ;;  %s767_s25 = int_to_ptr.vmem [resolvable:$true] %s766_s25 }
  0x3e   : > { %s764_s8 = sshll.u32 %s5234_s12, 4  ;;  %s4191_s26 = smov [#allocation23]   ;;  %s765_s8 = int_to_ptr.hbm [resolvable:$true] %s764_s8 }
  0x3f   : > { %3367 = dma.hbm_to_vmem [thread:$0]  (!%p4383_p6), %s739_s5, 256, %s741_s20, [#allocation15], %s4185_s2, %s4185_s2, %s4186_s24  }
  0x40   : > { %s790_s10 = sshll.u32 %s5235_s14, 4  ;;  %s5237_s5 = sld [smem:[#allocation48_spill]]  ;;  %s791_s10 = int_to_ptr.hbm [resolvable:$true] %s790_s10 }
  0x41   : > { %3373 = dma.hbm_to_vmem [thread:$0]  (!%p4383_p6), %s765_s8, 256, %s767_s25, [#allocation18], %s4185_s2, %s4185_s2, %s4186_s24  }
  0x42   : > { %s817_s20 = sshll.u32 %s5236_s16, 4  ;;  %s819_s8 = sshll.u32 %s4191_s26, 4  ;;  %s818_s20 = int_to_ptr.hbm [resolvable:$true] %s817_s20  ;;  %s820_s8 = int_to_ptr.vmem [resolvable:$true] %s819_s8 }
  0x43   : > { %3379 = dma.hbm_to_vmem [thread:$0]  (!%p4383_p6), %s791_s10, 256, %s793_s19, [#allocation21], %s4185_s2, %s4185_s2, %s4186_s24  }
  0x44   : > { %3385 = dma.hbm_to_vmem [thread:$0]  (!%p4383_p6), %s818_s20, 16, %s820_s8, [#allocation24]  }
  0x45   : > { %s4192_s21 = smov [#allocation10]   ;;  %s5238_s6 = sld [smem:[#allocation50_spill]] }
  0x46   : > { %s703_s23 = sshll.u32 %s5237_s5, 4  ;;  %s705_s22 = sshll.u32 %s4192_s21, 4  ;;  %s704_s23 = int_to_ptr.hbm [resolvable:$true] %s703_s23  ;;  %s706_s22 = int_to_ptr.vmem [resolvable:$true] %s705_s22 }
  0x47   : > { %3358 = dma.hbm_to_vmem [thread:$0]  (!%p4383_p6), %s704_s23, 16, %s706_s22, [#allocation9]  }
  0x48   : > { %s5239_s11 = sld [smem:[#allocation52_spill]]  ;;  %s4193_s19 = smov [#allocation13]  }
  0x49   : > { %s729_s29 = sshll.u32 %s4193_s19, 4  ;;  %s4194_s20 = smov [#allocation16]   ;;  %s730_s29 = int_to_ptr.vmem [resolvable:$true] %s729_s29 }
  0x4a   : > { %s755_s0 = sshll.u32 %s4194_s20, 4  ;;  %s5240_s13 = sld [smem:[#allocation54_spill]]  ;;  %s756_s0 = int_to_ptr.vmem [resolvable:$true] %s755_s0 }
  0x4b   : > { %s727_s1 = sshll.u32 %s5238_s6, 4  ;;  %s5241_s15 = sld [smem:[#allocation56_spill]]  ;;  %s728_s1 = int_to_ptr.hbm [resolvable:$true] %s727_s1 }
  0x4c   : > { %3364 = dma.hbm_to_vmem [thread:$0]  (!%p4383_p6), %s728_s1, 16, %s730_s29, [#allocation12]  }
  0x4d   : > { %s4195_s25 = smov [#allocation19]   ;;  %s4196_s6 = smov [#allocation22]  }
  0x4e   : > { %s753_s10 = sshll.u32 %s5239_s11, 4  ;;  %s781_s18 = sshll.u32 %s4195_s25, 4  ;;  %s754_s10 = int_to_ptr.hbm [resolvable:$true] %s753_s10  ;;  %s782_s18 = int_to_ptr.vmem [resolvable:$true] %s781_s18 }
  0x4f   : > { %3370 = dma.hbm_to_vmem [thread:$0]  (!%p4383_p6), %s754_s10, 16, %s756_s0, [#allocation15]  }
  0x50   : > { %s779_s8 = sshll.u32 %s5240_s13, 4  ;;  %s807_s1 = sshll.u32 %s4196_s6, 4  ;;  %s780_s8 = int_to_ptr.hbm [resolvable:$true] %s779_s8  ;;  %s808_s1 = int_to_ptr.vmem [resolvable:$true] %s807_s1 }
  0x51   : > { %s805_s22 = sshll.u32 %s5241_s15, 4  ;;  %s5242_s17 = sld [smem:[#allocation58_spill]]  ;;  %s806_s22 = int_to_ptr.hbm [resolvable:$true] %s805_s22 }
  0x52   : > { %3376 = dma.hbm_to_vmem [thread:$0]  (!%p4383_p6), %s780_s8, 16, %s782_s18, [#allocation18]  }
  0x53   : > { %3382 = dma.hbm_to_vmem [thread:$0]  (!%p4383_p6), %s806_s22, 16, %s808_s1, [#allocation21]  }
  0x54   : > { %s4197_s19 = smov [#allocation25]   ;;  %s5195_s20 = sadd.s32 4294967294, %s4181_s28  }
  0x55   : > { %s831_s29 = sshll.u32 %s4197_s19, 4  ;;  %s4460_s0 = sadd.s32 1, %s4181_s28   ;;  %s832_s29 = int_to_ptr.vmem [resolvable:$true] %s831_s29 }
  0x56   : > { %s114_s5 = sadd.s32 1, %s4177_s7  ;;  %s111_s26 = ssub.s32 %s4181_s28, %s4460_s0 }
  0x57   : > { %s829_s10 = sshll.u32 %s5242_s17, 4  ;;  %p121_p7 = scmp.ne.s32.totalorder %s4177_s7, %s4173_s3  ;;  %s830_s10 = int_to_ptr.hbm [resolvable:$true] %s829_s10 }
  0x58   : > { %3388 = dma.hbm_to_vmem [thread:$0]  (!%p4383_p6), %s830_s10, 16, %s832_s29, [#allocation24]  }
  0x59   : > { %p112_p8 = scmp.eq.s32.totalorder %s111_s26, 0  ;;  %p122_p9 = scmp.eq.s32.totalorder %s4181_s28, 0 }
  0x5a   : > { %p127_p10 = scmp.ne.s32.totalorder %s4173_s3, %s4169_s27  ;;  %p597_p11 = scmp.eq.s32.totalorder %s4366_s9, 1 }
  0x5b   : > { %s4472_s8 = scalar_select %p112_p8, %s4177_s7, %s114_s5  }
  0x5c   : > { %p4474_p12 = por %p122_p9, %p121_p7  ;;  %p4480_p13 = por %p128_p1, %p127_p10 }
  0x5d   : > { %p4484_p0 = por %p597_p11, %p121_p7  ;;  %p603_p2 = scmp.eq.s32.totalorder %s5195_s20, 1 }
  0x5e   : > { %p3419_p5 = scmp.lt.s32.totalorder %s4181_s28, 2  ;;  %s874_s22 = sand.u32 1, %s4177_s7  }
  0x5f   : > { %p4492_p6 = por %p603_p2, %p127_p10  ;;  %s3161_s18 = sshll.u32 %s874_s22, 2 }
  0x60   : > { %s3162_s6 = sshll.u32 %s4181_s28, 2  ;;  %s5247_s2 = sld [smem:[#allocation43_spill]] }
  0x61   : > { %s878_s29 = scalar_lea.vmem [#allocation2], %s3161_s18  ;;  %p4502_p7 = pnand %p3419_p5, %p4474_p12 }
  0x62   : > { %s886_s5 = sshll.u32 %s878_s29, 4  ;;  %s5249_s12 = sld [smem:[#allocation44_spill]]  ;;  %s887_s5 = int_to_ptr.vmem [resolvable:$true] %s886_s5 }
  0x63   : > { %s893_s14 = sand.u32 1, %s4181_s28   ;;  %s875_s15 = scalar_lea.sflag [#allocation3], %s874_s22 }
  0x64   : > { %p3967_p9 = pneg %p4502_p7 }
  0x66   : > { %s882_s10 = scalar_lea.hbm %s5247_s2, %s3162_s6  ;;  %s3970_s29 = scalar_lea.hbm %s5247_s2, 8 }
  0x67   : > { %s884_s19 = sshll.u32 %s882_s10, 4  ;;  %s885_s19 = int_to_ptr.hbm [resolvable:$true] %s884_s19 }
  0x68   : > { %s901_s13 = scalar_lea.hbm %s5249_s12, %s3162_s6  ;;  %s3963_s1 = sshra.s32 %s885_s19, 4  ;;  %s3964_s1 = int_to_ptr.hbm [resolvable:$true] %s3963_s1 }
  0x69   : > { %s3965_s24 = scalar_lea.hbm %s3964_s1, 4  ;;  %p3971_p12 = scmp.lt.s32.totalorder %s3964_s1, %s5247_s2 }
  0x6a   : > { %p3966_p8 = scmp.ne.s32.totalorder %s3964_s1, %s3965_s24  ;;  %p3972_p2 = scmp.lt.s32.totalorder %s3970_s29, %s3965_s24 }
  0x6c   : > { %p3968_p10 = pnand %p3967_p9, %p3966_p8  ;;  %p3973_p5 = por %p3972_p2, %p3971_p12 }
  0x6e   : > { %p3969_p11 = pneg %p3968_p10 }
  0x70   : > { %p3974_p4 = pnand %p3973_p5, %p3969_p11 }
  0x72   : > { %3977 = shalt.err (!%p3974_p4)
}
  0x73   : > { %3392 = dma.hbm_to_vmem [thread:$0]  (!%p4502_p7), %s885_s19, 64, %s887_s5, %s875_s15  }
  0x74   : > { %s903_s22 = sshll.u32 %s901_s13, 4  ;;  %s897_s6 = scalar_lea.vmem [#allocation5], %s3161_s18  ;;  %s904_s22 = int_to_ptr.hbm [resolvable:$true] %s903_s22 }
  0x75   : > { %s905_s16 = sshll.u32 %s897_s6, 4  ;;  %s894_s17 = scalar_lea.sflag [#allocation6], %s893_s14  ;;  %s906_s16 = int_to_ptr.vmem [resolvable:$true] %s905_s16 }
  0x76   : > { %s3993_s23 = sshra.s32 %s904_s22, 4  ;;  %s4000_s29 = scalar_lea.hbm %s5249_s12, 8  ;;  %s3994_s23 = int_to_ptr.hbm [resolvable:$true] %s3993_s23 }
  0x77   : > { %s3995_s10 = scalar_lea.hbm %s3994_s23, 4  ;;  %p4001_p4 = scmp.lt.s32.totalorder %s3994_s23, %s5249_s12 }
  0x78   : > { %p3996_p8 = scmp.ne.s32.totalorder %s3994_s23, %s3995_s10  ;;  %p4002_p11 = scmp.lt.s32.totalorder %s4000_s29, %s3995_s10 }
  0x7a   : > { %p3998_p10 = pnand %p3996_p8, %p3967_p9  ;;  %p4003_p2 = por %p4002_p11, %p4001_p4 }
  0x7c   : > { %p3999_p12 = pneg %p3998_p10 }
  0x7e   : > { %p4004_p5 = pnand %p4003_p2, %p3999_p12 }
  0x80   : > { %4007 = shalt.err (!%p4004_p5)
}
  0x81   : > { %3395 = dma.hbm_to_vmem [thread:$0]  (!%p4502_p7), %s904_s22, 64, %s906_s16, %s894_s17  }
  0x82   : > { %914 = sbr.rel (%p4371_p3) target bundleno = 3262 (0xcbe), region = 116  ;;  %s4537_s13 = sand.u32 (!%p4371_p3), 1, %s4173_s3  }
  0x83   : > { %s3166_s14 = sshll.u32 (!%p4371_p3), %s4537_s13, 2  ;;  %s917_s18 = scalar_lea.sflag (!%p4371_p3), [#allocation3], %s4537_s13 }
  0x84   : > { %s4541_s19 = scalar_lea.vmem (!%p4371_p3), [#allocation2], %s3166_s14 }
  0x87   : > { %4124 = dma.done.wait (%p4480_p13), %s917_s18, 64  }
  0x88   : > { %4126 = vsyncadd (%p4480_p13), %s917_s18, 4294967232  ;;  %s926_s16 = sand.u32 1, %s4366_s9   ;;  %s4550_s30 = scalar_lea.vmem [#allocation5], %s3166_s14 }
  0x89   : > { %s927_s17 = scalar_lea.sflag [#allocation6], %s926_s16 }
  0x8a   : > { %4128 = dma.done.wait (%p4480_p13), %s927_s17, 64  }
  0x8b   : > { %4130 = vsyncadd (%p4480_p13), %s927_s17, 4294967232 }
  0x8c   : > { %4132 = dma.done.wait (%p128_p1), [#allocation6], 16  }
  0x8d   : > { %4134 = vsyncadd (%p128_p1), [#allocation6], 4294967280 }
  0x8e   : > { %4136 = dma.done.wait (%p128_p1), [#allocation9], 272  }
  0x8f   : > { %4138 = vsyncadd (%p128_p1), [#allocation9], 4294967024 }
  0x90   : > { %4140 = dma.done.wait (%p128_p1), [#allocation12], 32  }
  0x91   : > { %4142 = vsyncadd (%p128_p1), [#allocation12], 4294967264 }
  0x92   : > { %4144 = dma.done.wait (%p128_p1), [#allocation15], 272  }
  0x93   : > { %4146 = vsyncadd (%p128_p1), [#allocation15], 4294967024 }
  0x94   : > { %4148 = dma.done.wait (%p128_p1), [#allocation18], 272  }
  0x95   : > { %4150 = vsyncadd (%p128_p1), [#allocation18], 4294967024 }
  0x96   : > { %4152 = dma.done.wait (%p128_p1), [#allocation21], 272  }
  0x97   : > { %4154 = vsyncadd (%p128_p1), [#allocation21], 4294967024 }
  0x98   : > { %4156 = dma.done.wait (%p128_p1), [#allocation24], 32  }
  0x99   : > { %4158 = vsyncadd (%p128_p1), [#allocation24], 4294967264  ;;  %p1088_p3 = scmp.lt.s32.totalorder %s4366_s9, 1  ;;  %s5250_s22 = sld [smem:[#allocation41_spill]]  ;;  %vm1120_vm0 = vcmask 261120   ;;  %vm1148_vm1 = vcmask 1047556  }
  0x9a   : > { %s5251_s1 = sld [smem:[#allocation45_spill]]  ;;  %v3520_v4 = vld [vmem:[#allocation7] ss:$0 sm:$0xff]  ;;  %s4198_s11 = smov 120   ;;  %v4202_v13 = vmov 1983009808  }
  0x9b   : > { %s4586_s4 = scalar_select %p1088_p3, %s4366_s9, 1  ;;  %v1153_v14 = vunpack.c.l.s4 %v4202_v13  ;;  %v4203_v26 = vmov 1934713408   ;;  %vm1522_vm2 = vcmask 64512   ;;  %vm1658_vm4 = vcmask 1043456  }
  0x9c   : > { %s4199_s15 = smov 112   ;;  %s4200_s14 = smov 104   ;;  %v1177_v27 = vunpack.c.l.s4 %v4203_v26  ;;  %vm2773_vm5 = vcmask 60416   ;;  %vm2724_vm14 = vcmask 523264  }
  0x9d   : > { %s3184_s5 = sshll.u32 %s4586_s4, 3  ;;  %s4201_s18 = smov 96   ;;  %v4616_v19 = vunpack.c.0.s8 %v1153_v14 }
  0x9e   : > { %v4626_v33 = vunpack.c.0.s8 %v1177_v27  ;;  %s3182_s17 = sshll.u32 %s4537_s13, 4  ;;  %s5253_s10 = sld [smem:[#allocation59_spill]] }
  0x9f   : > { %s1091_s6 = scalar_lea.vmem %s5250_s22, %s3184_s5  ;;  %s4781_s26 = scalar_lea.vmem [#allocation27], %s3182_s17 }
  0xa0   : > { %v3274_v0 = vld [vmem:[%s5251_s1 + $0x8] sm:$0xff]  ;;  %v3273_v1 = vld [vmem:[%s5251_s1] sm:$0xff]  ;;  %s5255_s24 = sld [smem:[#allocation60_spill]] }
  0xa1   : > { %v4600_v2 = vld [vmem:[%s1091_s6] sm:$0xff]  ;;  %1130 = vmatpush.bf16.msra.mxu0 %v3274_v0  ;;  %s5252_s6 = sld [smem:[#allocation42_spill]] }
  0xa2   : > { %v1099_v3 = vpack.c.bf16 %v4600_v2, %v4600_v2  ;;  %s5257_s22 = sld [smem:[#allocation66_spill]] }
  0xa5   : > { %1131 = vmatpush.bf16.msra.mxu0 %v3273_v1 }
  0xa7   : > { %s1095_s23 = scalar_lea.vmem %s5252_s6, %s3184_s5  ;;  %s5084_s5 = scalar_lea.sflag [#allocation28], %s926_s16 }
  0xa8   : > { %3194 = vmatmul.msk.bf16.vlgmr.msra.gmra.mxu0 %vm1120_vm0, %v1099_v3 }
 0x125   : > { %v1133_v5 = vpop.f32.mrf.mxu0 }
 0x126   : > { %v1134_v6 = vadd.f32 %v3520_v4, %v1133_v5 }
 0x128   : > { %1138 = vrot.lane.b32.xlu1 %v1134_v6, %s4198_s11  ;;  %1141 = vrot.lane.b32.xlu0 %v1134_v6, %s4199_s15  ;;  %v1150_v16 = vrot.slane %v1134_v6, 4 }
 0x12d   : > { %v1135_v7 = vpop.f32.mrf.mxu0 }
 0x130   : > { %1144 = vrot.lane.b32.xlu0 %v1134_v6, %s4200_s14 }
 0x19a   : > { %v1142_v8 = vpop.permute.xlu0 %1141  ;;  %v1139_v10 = vpop.permute.xlu1 %1138 }
 0x19b   : > { %v4608_v9 = vpack.i.bf16 %v1134_v6, %v1142_v8  ;;  %v1147_v15 = vrot.slane %v1142_v8, 4  ;;  %v1162_v18 = vrot.slane %v1139_v10, 4  ;;  %v1151_v20 = vsel %vm1148_vm1, %v1142_v8, %v1150_v16 }
 0x19c   : > { %v1159_v24 = vperm.slane %v1151_v20, %v4616_v19 }
 0x19d   : > { %3491 = vrot.lane.b32.xlu1 %v4608_v9, %s4201_s18  ;;  %v1149_v21 = vsel %vm1148_vm1, %v1147_v15, %v1134_v6 }
 0x19e   : > { %v1155_v25 = vperm.slane %v1149_v21, %v4616_v19  ;;  %v1186_v30 = vrot.slane %v1159_v24, 4 }
 0x1a0   : > { %v1174_v32 = vrot.slane %v1155_v25, 4 }
 0x1a2   : > { %v1145_v11 = vpop.permute.xlu0 %1144 }
 0x1a3   : > { %v4612_v12 = vpack.i.bf16 %v1139_v10, %v1145_v11  ;;  %v1160_v17 = vrot.slane %v1145_v11, 4  ;;  %v1163_v22 = vsel %vm1148_vm1, %v1145_v11, %v1162_v18 }
 0x1a4   : > { %v1171_v28 = vperm.slane %v1163_v22, %v4616_v19 }
 0x1a5   : > { %3496 = vrot.lane.b32.xlu2 %v4612_v12, %s4201_s18  ;;  %v1161_v23 = vsel %vm1148_vm1, %v1160_v17, %v1139_v10 }
 0x1a6   : > { %v1167_v29 = vperm.slane %v1161_v23, %v4616_v19  ;;  %v1184_v34 = vrot.slane %v1171_v28, 4  ;;  %v1187_v36 = vsel %vm1148_vm1, %v1171_v28, %v1186_v30 }
 0x1a7   : > { %v1195_v41 = vperm.slane %v1187_v36, %v4626_v33 }
 0x1a8   : > { %v1172_v35 = vrot.slane %v1167_v29, 4  ;;  %v1175_v37 = vsel %vm1148_vm1, %v1167_v29, %v1174_v32  ;;  %v1185_v40 = vsel %vm1148_vm1, %v1184_v34, %v1159_v24 }
 0x1a9   : > { %v1183_v43 = vperm.slane %v1175_v37, %v4626_v33  ;;  %v1191_v46 = vperm.slane %v1185_v40, %v4626_v33  ;;  %v1202_v48 = vrot.slane %v1195_v41, 4 }
 0x1aa   : > { %v1173_v42 = vsel %vm1148_vm1, %v1172_v35, %v1155_v25 }
 0x1ab   : > { %v1179_v47 = vperm.slane %v1173_v42, %v4626_v33  ;;  %v1198_v49 = vrot.slane %v1183_v43, 4  ;;  %v1200_v52 = vrot.slane %v1191_v46, 4  ;;  %v1203_v54 = vsel %vm1148_vm1, 0.0, %v1202_v48 }
 0x1ac   : > { %v1220_v0 = vrot.slane %v1203_v54, 4  ;;  %v1215_v11 = vsel %vm1148_vm1, %v1202_v48, %v1191_v46 }
 0x1ad   : > { %v1196_v57 = vrot.slane %v1179_v47, 4  ;;  %v1199_v58 = vsel %vm1148_vm1, 0.0, %v1198_v49  ;;  %v1201_v63 = vsel %vm1148_vm1, 0.0, %v1200_v52  ;;  %v1204_v13 = vsel %vm1148_vm1, %v1198_v49, %v1179_v47 }
 0x1ae   : > { %v1209_v1 = vrot.slane %v1199_v58, 4  ;;  %v1221_v22 = vsel %vm1148_vm1, %v1220_v0, %v1201_v63  ;;  %v1208_v25 = vperm.slane %v1204_v13, %v4616_v19  ;;  %v1219_v26 = vperm.slane %v1215_v11, %v4616_v19 }
 0x1af   : > { %v1197_v5 = vsel %vm1148_vm1, 0.0, %v1196_v57  ;;  %v1225_v30 = vperm.slane %v1221_v22, %v4616_v19 }
 0x1b0   : > { %v1210_v21 = vsel %vm1148_vm1, %v1209_v1, %v1197_v5  ;;  %v1228_v36 = vrot.slane %v1208_v25, 4  ;;  %v1240_v37 = vrot.slane %v1219_v26, 4 }
 0x1b1   : > { %v1214_v29 = vperm.slane %v1210_v21, %v4616_v19  ;;  %v1238_v49 = vrot.slane %v1225_v30, 4 }
 0x1b2   : > { %v1241_v57 = vsel %vm1148_vm1, %v1225_v30, %v1240_v37 }
 0x1b3   : > { %v1226_v48 = vrot.slane %v1214_v29, 4  ;;  %v1239_v1 = vsel %vm1148_vm1, %v1238_v49, %v1219_v26 }
 0x1b5   : > { %v1227_v0 = vsel %vm1148_vm1, %v1226_v48, %v1208_v25 }
 0x1b6   : > { %v1233_v13 = vperm.slane %v1227_v0, %v4626_v33 }
 0x1ff   : > { %v3497_v31 = vpop.permute.xlu2 %3496 }
 0x200   : > { %v3499_v38 = vunpack.i.h.bf16 %v3497_v31  ;;  %v3498_v39 = vunpack.i.l.bf16 %v3497_v31 }
 0x202   : > { %v1288_v44 = vrot.slane %v3499_v38, 4  ;;  %v1286_v45 = vrot.slane %v3498_v39, 4 }
 0x204   : > { %v1287_v50 = vsel %vm1148_vm1, %v1286_v45, %v3499_v38  ;;  %v1289_v51 = vsel %vm1148_vm1, %v3498_v39, %v1288_v44 }
 0x205   : > { %v1293_v59 = vperm.slane %v1287_v50, %v4616_v19  ;;  %v1297_v60 = vperm.slane %v1289_v51, %v4616_v19 }
 0x207   : > { %v1298_v6 = vrot.slane %v1293_v59, 4  ;;  %v1310_v7 = vrot.slane %v1297_v60, 4 }
 0x20f   : > { %v3492_v53 = vpop.permute.xlu1 %3491 }
 0x210   : > { %v3494_v55 = vunpack.i.h.bf16 %v3492_v53  ;;  %v3493_v56 = vunpack.i.l.bf16 %v3492_v53 }
 0x212   : > { %v1276_v61 = vrot.slane %v3494_v55, 4  ;;  %v1274_v62 = vrot.slane %v3493_v56, 4 }
 0x214   : > { %v1275_v3 = vsel %vm1148_vm1, %v1274_v62, %v3494_v55  ;;  %v1277_v4 = vsel %vm1148_vm1, %v3493_v56, %v1276_v61  ;;  %v1229_v56 = vsel %vm1148_vm1, %v1214_v29, %v1228_v36 }
 0x215   : > { %v1281_v8 = vperm.slane %v1275_v3, %v4616_v19  ;;  %v1285_v10 = vperm.slane %v1277_v4, %v4616_v19  ;;  %v1237_v5 = vperm.slane %v1229_v56, %v4626_v33 }
 0x217   : > { %v1299_v14 = vsel %vm1148_vm1, %v1298_v6, %v1281_v8  ;;  %v1300_v15 = vrot.slane %v1281_v8, 4  ;;  %v1311_v16 = vsel %vm1148_vm1, %v1310_v7, %v1285_v10  ;;  %v1312_v17 = vrot.slane %v1285_v10, 4 }
 0x218   : > { %v1305_v18 = vperm.slane %v1299_v14, %v4626_v33  ;;  %v1317_v20 = vperm.slane %v1311_v16, %v4626_v33  ;;  %v1249_v6 = vperm.slane %v1241_v57, %v4626_v33  ;;  %v1245_v14 = vperm.slane %v1239_v1, %v4626_v33 }
 0x219   : > { %v1301_v23 = vsel %vm1148_vm1, %v1293_v59, %v1300_v15  ;;  %v1313_v24 = vsel %vm1148_vm1, %v1297_v60, %v1312_v17  ;;  %v1256_v25 = vrot.slane %v1237_v5, 4 }
 0x21a   : > { %v1309_v27 = vperm.slane %v1301_v23, %v4626_v33  ;;  %v1321_v28 = vperm.slane %v1313_v24, %v4626_v33  ;;  %v1322_v31 = vrot.slane %v1305_v18, 4  ;;  %v1326_v34 = vrot.slane %v1317_v20, 4 }
 0x21b   : > { %v1254_v24 = vrot.slane %v1249_v6, 4  ;;  %v1250_v30 = vrot.slane %v1245_v14, 4  ;;  %v1257_v36 = vsel %vm1148_vm1, %v1249_v6, %v1256_v25 }
 0x21c   : > { %v1324_v32 = vrot.slane %v1309_v27, 4  ;;  %v1328_v35 = vrot.slane %v1321_v28, 4  ;;  %v1327_v46 = vsel %vm1148_vm1, 0.0, %v1326_v34  ;;  %v1323_v47 = vsel %vm1148_vm1, 0.0, %v1322_v31 }
 0x21d   : > { %v1252_v31 = vrot.slane %v1233_v13, 4  ;;  %v1251_v37 = vsel %vm1148_vm1, %v1250_v30, %v1233_v13 }
 0x21e   : > { %v1325_v38 = vsel %vm1148_vm1, 0.0, %v1324_v32  ;;  %v1329_v39 = vsel %vm1148_vm1, 0.0, %v1328_v35  ;;  %v1330_v40 = vsel %vm1148_vm1, %v1324_v32, %v1305_v18  ;;  %v1341_v41 = vsel %vm1148_vm1, %v1328_v35, %v1317_v20 }
 0x21f   : > { %v1346_v42 = vrot.slane %v1329_v39, 4  ;;  %v1334_v43 = vperm.slane %v1330_v40, %v4616_v19  ;;  %v1335_v44 = vrot.slane %v1325_v38, 4  ;;  %v1345_v45 = vperm.slane %v1341_v41, %v4616_v19 }
 0x220   : > { %v1255_v35 = vsel %vm1148_vm1, %v1254_v24, %v1237_v5  ;;  %v1253_v38 = vsel %vm1148_vm1, %v1245_v14, %v1252_v31  ;;  %v1261_v40 = vpack.c.bf16 %v1257_v36, %v1257_v36  ;;  %v1258_v41 = vpack.c.bf16 %v1251_v37, %v1251_v37 }
 0x221   : > { %v1336_v50 = vsel %vm1148_vm1, %v1335_v44, %v1323_v47  ;;  %v1347_v51 = vsel %vm1148_vm1, %v1346_v42, %v1327_v46  ;;  %v1354_v52 = vrot.slane %v1334_v43, 4  ;;  %v1366_v53 = vrot.slane %v1345_v45, 4 }
 0x222   : > { %v1340_v54 = vperm.slane %v1336_v50, %v4616_v19  ;;  %v1351_v55 = vperm.slane %v1347_v51, %v4616_v19  ;;  %v1260_v39 = vpack.c.bf16 %v1255_v35, %v1255_v35  ;;  %v1259_v42 = vpack.c.bf16 %v1253_v38, %v1253_v38 }
 0x224   : > { %v1355_v58 = vsel %vm1148_vm1, %v1340_v54, %v1354_v52  ;;  %v1367_v59 = vsel %vm1148_vm1, %v1351_v55, %v1366_v53  ;;  %v1352_v60 = vrot.slane %v1340_v54, 4  ;;  %v1364_v61 = vrot.slane %v1351_v55, 4 }
 0x225   : > { %v1363_v62 = vperm.slane %v1355_v58, %v4626_v33  ;;  %v1375_v63 = vperm.slane %v1367_v59, %v4626_v33 }
 0x226   : > { %v1353_v3 = vsel %vm1148_vm1, %v1352_v60, %v1334_v43  ;;  %v1365_v4 = vsel %vm1148_vm1, %v1364_v61, %v1345_v45  ;;  %v1514_v43 = vld [vmem:[%s4541_s19] sm:$0xf]  ;;  %s5196_s19 = smov 64  }
 0x227   : > { %v1380_v7 = vrot.slane %v1375_v63, 4  ;;  %v1382_v8 = vrot.slane %v1363_v62, 4  ;;  %v1359_v10 = vperm.slane %v1353_v3, %v4626_v33  ;;  %v1371_v11 = vperm.slane %v1365_v4, %v4626_v33 }
 0x228   : > { %v1599_v44 = vunpack.c.l.bf16 %v1514_v43 }
 0x229   : > { %v1381_v15 = vsel %vm1148_vm1, %v1380_v7, %v1363_v62  ;;  %v1383_v16 = vsel %vm1148_vm1, %v1375_v63, %v1382_v8  ;;  %v1376_v17 = vrot.slane %v1371_v11, 4  ;;  %v1378_v18 = vrot.slane %v1359_v10, 4 }
 0x22a   : > { %v1386_v20 = vpack.c.bf16 %v1381_v15, %v1381_v15  ;;  %v1387_v21 = vpack.c.bf16 %v1383_v16, %v1383_v16  ;;  %vm1600_vm3 = vcmp.gt.f32.partialorder %v1599_v44, 0.0 }
 0x22b   : > { %v1377_v22 = vsel %vm1148_vm1, %v1376_v17, %v1359_v10  ;;  %v1379_v23 = vsel %vm1148_vm1, %v1371_v11, %v1378_v18 }
 0x22c   : > { %v1565_v26 = vsel %vm1522_vm2, %v1386_v20, 0  ;;  %v1584_v27 = vsel %vm1522_vm2, %v1387_v21, 0  ;;  %v1384_v28 = vpack.c.bf16 %v1377_v22, %v1377_v22  ;;  %v1385_v29 = vpack.c.bf16 %v1379_v23, %v1379_v23 }
 0x22d   : > { %1574 = vmatpush.bf16.xpose.msra.mxu3 %v1565_v26  ;;  %1593 = vmatpush.bf16.xpose.msrb.mxu0 %v1584_v27 }
 0x22e   : > { %v1527_v32 = vsel %vm1522_vm2, %v1384_v28, 0  ;;  %v1546_v34 = vsel %vm1522_vm2, %v1385_v29, 0 }
 0x22f   : > { %1536 = vmatpush.bf16.xpose.msra.mxu1 %v1527_v32  ;;  %1555 = vmatpush.bf16.xpose.msra.mxu2 %v1546_v34 }
 0x234   : > { %3197 = vmatmul.msk.bf16.vlgmr.msra.gmra.mxu3 %vm1522_vm2, %v1260_v39  ;;  %3198 = vmatmul.msk.bf16.vlgmr.msrb.gmra.mxu0 %vm1522_vm2, %v1261_v40 }
 0x236   : > { %3195 = vmatmul.msk.bf16.vlgmr.msra.gmra.mxu1 %vm1522_vm2, %v1258_v41  ;;  %3196 = vmatmul.msk.bf16.vlgmr.msra.gmra.mxu2 %vm1522_vm2, %v1259_v42 }
 0x2b1   : > { %v1595_v45 = vpop.f32.mrf.mxu0 }
 0x2b2   : > { %v1606_v46 = vsel %vm1600_vm3, -1e+09, %v1595_v45 }
 0x2b3   : > { %v1538_v47 = vpop.f32.mrf.mxu1  ;;  %v1616_v48 = vsel %vm1522_vm2, %v1606_v46, -inf }
 0x2b4   : > { %v1603_v49 = vsel %vm1600_vm3, -1e+09, %v1538_v47  ;;  %1617 = vmax.xlane.f32.xlu2 %v1616_v48 }
 0x2b5   : > { %v1607_v50 = vsel %vm1522_vm2, %v1603_v49, -inf }
 0x2b6   : > { %1608 = vmax.xlane.f32.xlu1 %v1607_v50 }
 0x2b7   : > { %v1576_v51 = vpop.f32.mrf.mxu3 }
 0x2b8   : > { %v1605_v52 = vsel %vm1600_vm3, -1e+09, %v1576_v51 }
 0x2b9   : > { %v1557_v53 = vpop.f32.mrf.mxu2  ;;  %v1597_v54 = vpop.f32.mrf.mxu0  ;;  %v1613_v55 = vsel %vm1522_vm2, %v1605_v52, -inf }
 0x2ba   : > { %v1604_v56 = vsel %vm1600_vm3, -1e+09, %v1557_v53  ;;  %1614 = vmax.xlane.f32.xlu0 %v1613_v55 }
 0x2bb   : > { %v1540_v57 = vpop.f32.mrf.mxu1  ;;  %v1610_v58 = vsel %vm1522_vm2, %v1604_v56, -inf }
 0x2bc   : > { %1611 = vmax.xlane.f32.xlu2 %v1610_v58 }
 0x2bf   : > { %v1578_v59 = vpop.f32.mrf.mxu3 }
 0x2c1   : > { %v1559_v60 = vpop.f32.mrf.mxu2 }
 0x2ce   : > { %3506 = vrot.lane.b32.xlu0 %v4612_v12, %s5196_s19 }
 0x2d4   : > { %3501 = vrot.lane.b32.xlu2 %v4608_v9, %s5196_s19  ;;  %s4043_s19 = scalar_lea.hbm %s5257_s22, 32 }
 0x327   : > { %v1618_v61 = vpop.xlane.xlu2 %1617 }
 0x328   : > { %v1622_v62 = vsub.f32 %v1606_v46, %v1618_v61 }
 0x329   : > { %v1609_v12 = vpop.xlane.xlu1 %1608 }
 0x32a   : > { %v1629_v63 = vmul.f32 1.442695, %v1622_v62  ;;  %v1619_v13 = vsub.f32 %v1603_v49, %v1609_v12 }
 0x32c   : > { %3533 = vpow2.f32 %v1629_v63  ;;  %v1623_v18 = vmul.f32 1.442695, %v1619_v13 }
 0x32d   : > { %v1615_v0 = vpop.xlane.xlu0 %1614 }
 0x32e   : > { %v1621_v5 = vsub.f32 %v1605_v52, %v1615_v0 }
 0x32f   : > { %v1612_v1 = vpop.xlane.xlu2 %1611 }
 0x330   : > { %v1620_v3 = vsub.f32 %v1604_v56, %v1612_v1  ;;  %v1627_v8 = vmul.f32 1.442695, %v1621_v5 }
 0x332   : > { %v4717_v4 = vpop.eup %3533  ;;  %v1625_v6 = vmul.f32 1.442695, %v1620_v3 }
 0x333   : > { %v1640_v7 = vsel %vm1522_vm2, %v4717_v4, 0.0 }
 0x334   : > { %3535 = vpow2.f32 %v1625_v6  ;;  %1641 = vadd.xlane.f32.xlu0 %v1640_v7 }
 0x335   : > { %3537 = vpow2.f32 %v1627_v8 }
 0x336   : > { %3539 = vpow2.f32 %v1623_v18 }
 0x337   : > { %v3502_v10 = vpop.permute.xlu2 %3501 }
 0x338   : > { %v3504_v9 = vunpack.i.h.bf16 %v3502_v10  ;;  %v3503_v11 = vunpack.i.l.bf16 %v3502_v10 }
 0x33a   : > { %v4721_v14 = vpop.eup %3535  ;;  %v1402_v15 = vrot.slane %v3504_v9, 4  ;;  %v1400_v16 = vrot.slane %v3503_v11, 4 }
 0x33b   : > { %v1634_v17 = vsel %vm1522_vm2, %v4721_v14, 0.0  ;;  %v4727_v22 = vpop.eup %3537 }
 0x33c   : > { %1635 = vadd.xlane.f32.xlu1 %v1634_v17  ;;  %v1401_v20 = vsel %vm1148_vm1, %v1400_v16, %v3504_v9  ;;  %v1403_v21 = vsel %vm1148_vm1, %v3503_v11, %v1402_v15  ;;  %v1637_v30 = vsel %vm1522_vm2, %v4727_v22, 0.0  ;;  %v4737_v38 = vpop.eup %3539 }
 0x33d   : > { %v1407_v26 = vperm.slane %v1401_v20, %v4616_v19  ;;  %v1411_v27 = vperm.slane %v1403_v21, %v4616_v19  ;;  %v1631_v47 = vsel %vm1522_vm2, %v4737_v38, 0.0 }
 0x33f   : > { %v1426_v34 = vrot.slane %v1407_v26, 4  ;;  %v1438_v35 = vrot.slane %v1411_v27, 4 }
 0x340   : > { %v3507_v23 = vpop.permute.xlu0 %3506 }
 0x341   : > { %v3509_v24 = vunpack.i.h.bf16 %v3507_v23  ;;  %v3508_v25 = vunpack.i.l.bf16 %v3507_v23 }
 0x343   : > { %v1414_v28 = vrot.slane %v3509_v24, 4  ;;  %v1412_v29 = vrot.slane %v3508_v25, 4 }
 0x344   : > { %1638 = vadd.xlane.f32.xlu1 %v1637_v30 }
 0x345   : > { %v1413_v31 = vsel %vm1148_vm1, %v1412_v29, %v3509_v24  ;;  %v1415_v32 = vsel %vm1148_vm1, %v3508_v25, %v1414_v28 }
 0x346   : > { %v1419_v36 = vperm.slane %v1413_v31, %v4616_v19  ;;  %v1423_v37 = vperm.slane %v1415_v32, %v4616_v19 }
 0x348   : > { %v1424_v39 = vrot.slane %v1419_v36, 4  ;;  %v1427_v40 = vsel %vm1148_vm1, %v1419_v36, %v1426_v34  ;;  %v1436_v41 = vrot.slane %v1423_v37, 4  ;;  %v1439_v42 = vsel %vm1148_vm1, %v1423_v37, %v1438_v35 }
 0x349   : > { %v1435_v43 = vperm.slane %v1427_v40, %v4626_v33  ;;  %v1447_v44 = vperm.slane %v1439_v42, %v4626_v33 }
 0x34a   : > { %v1425_v45 = vsel %vm1148_vm1, %v1424_v39, %v1407_v26  ;;  %v1437_v46 = vsel %vm1148_vm1, %v1436_v41, %v1411_v27 }
 0x34b   : > { %v1431_v48 = vperm.slane %v1425_v45, %v4626_v33  ;;  %v1443_v49 = vperm.slane %v1437_v46, %v4626_v33  ;;  %v1450_v50 = vrot.slane %v1435_v43, 4  ;;  %v1454_v51 = vrot.slane %v1447_v44, 4 }
 0x34c   : > { %1632 = vadd.xlane.f32.xlu1 %v1631_v47 }
 0x34d   : > { %v1448_v52 = vrot.slane %v1431_v48, 4  ;;  %v1451_v53 = vsel %vm1148_vm1, 0.0, %v1450_v50  ;;  %v1452_v54 = vrot.slane %v1443_v49, 4  ;;  %v1455_v55 = vsel %vm1148_vm1, 0.0, %v1454_v51 }
 0x34e   : > { %v1461_v56 = vrot.slane %v1451_v53, 4  ;;  %v1472_v57 = vrot.slane %v1455_v55, 4  ;;  %v1456_v58 = vsel %vm1148_vm1, %v1450_v50, %v1431_v48  ;;  %v1467_v59 = vsel %vm1148_vm1, %v1454_v51, %v1443_v49  ;;  %v1518_v53 = vld [vmem:[#allocation8 + $0xc] sm:$0xf] }
 0x34f   : > { %v1449_v60 = vsel %vm1148_vm1, 0.0, %v1448_v52  ;;  %v1453_v61 = vsel %vm1148_vm1, 0.0, %v1452_v54  ;;  %v1460_v62 = vperm.slane %v1456_v58, %v4616_v19  ;;  %v1471_v63 = vperm.slane %v1467_v59, %v4616_v19  ;;  %v1515_v58 = vld [vmem:[#allocation8] sm:$0xf] }
 0x350   : > { %v1462_v0 = vsel %vm1148_vm1, %v1461_v56, %v1449_v60  ;;  %v1473_v1 = vsel %vm1148_vm1, %v1472_v57, %v1453_v61  ;;  %v1797_v54 = vsel %vm1658_vm4, %v1518_v53, 0  ;;  %v1517_v56 = vld [vmem:[#allocation8 + $0x8] sm:$0xf] }
 0x351   : > { %v1466_v3 = vperm.slane %v1462_v0, %v4616_v19  ;;  %v1477_v5 = vperm.slane %v1473_v1, %v4616_v19  ;;  %v1480_v6 = vrot.slane %v1460_v62, 4  ;;  %v1492_v7 = vrot.slane %v1471_v63, 4 }
 0x352   : > { %v1778_v57 = vsel %vm1658_vm4, %v1517_v56, 0 }
 0x353   : > { %v1481_v12 = vsel %vm1148_vm1, %v1466_v3, %v1480_v6  ;;  %v1493_v8 = vsel %vm1148_vm1, %v1477_v5, %v1492_v7  ;;  %v1478_v10 = vrot.slane %v1466_v3, 4  ;;  %v1490_v9 = vrot.slane %v1477_v5, 4 }
 0x354   : > { %v1489_v11 = vperm.slane %v1481_v12, %v4626_v33  ;;  %v1501_v13 = vperm.slane %v1493_v8, %v4626_v33 }
 0x355   : > { %v1479_v15 = vsel %vm1148_vm1, %v1478_v10, %v1460_v62  ;;  %v1491_v16 = vsel %vm1148_vm1, %v1490_v9, %v1471_v63  ;;  %v3278_v10 = vld [vmem:[#allocation17 + $0x8] sm:$0xff] }
 0x356   : > { %v1506_v17 = vrot.slane %v1501_v13, 4  ;;  %v1508_v18 = vrot.slane %v1489_v11, 4  ;;  %v1485_v20 = vperm.slane %v1479_v15, %v4626_v33  ;;  %v1497_v21 = vperm.slane %v1491_v16, %v4626_v33 }
 0x358   : > { %v1507_v23 = vsel %vm1148_vm1, %v1506_v17, %v1489_v11  ;;  %v1509_v24 = vsel %vm1148_vm1, %v1501_v13, %v1508_v18  ;;  %v1502_v25 = vrot.slane %v1497_v21, 4  ;;  %v1504_v26 = vrot.slane %v1485_v20, 4 }
 0x359   : > { %v1512_v27 = vpack.c.bf16 %v1507_v23, %v1507_v23  ;;  %v1513_v28 = vpack.c.bf16 %v1509_v24, %v1509_v24  ;;  %v3521_v24 = vld [vmem:[#allocation10] ss:$0 sm:$0xff] }
 0x35a   : > { %v1503_v29 = vsel %vm1148_vm1, %v1502_v25, %v1485_v20  ;;  %v1505_v30 = vsel %vm1148_vm1, %v1497_v21, %v1504_v26 }
 0x35b   : > { %v1698_v31 = vsel %vm1658_vm4, %v1512_v27, 0  ;;  %v1717_v32 = vsel %vm1658_vm4, %v1513_v28, 0  ;;  %v1510_v34 = vpack.c.bf16 %v1503_v29, %v1503_v29  ;;  %v1511_v35 = vpack.c.bf16 %v1505_v30, %v1505_v30 }
 0x35c   : > { %1707 = vmatpush.bf16.msrb.mxu3 %v1698_v31  ;;  %1726 = vmatpush.bf16.msra.mxu0 %v1717_v32  ;;  %v1098_v32 = vld [vmem:[%s1095_s23] sm:$0xff]  ;;  %s2819_s23 = sshll.u32 %s4781_s26, 4  ;;  %s2820_s23 = int_to_ptr.vmem [resolvable:$true] %s2819_s23 }
 0x35d   : > { %v1660_v36 = vsel %vm1658_vm4, %v1510_v34, 0  ;;  %v1679_v37 = vsel %vm1658_vm4, %v1511_v35, 0  ;;  %v3277_v34 = vld [vmem:[#allocation17] sm:$0xff]  ;;  %v1898_v35 = vpack.c.bf16 %v1098_v32, %v1098_v32 }
 0x35e   : > { %1669 = vmatpush.bf16.msrb.mxu1 %v1660_v36  ;;  %1688 = vmatpush.bf16.msrb.mxu2 %v1679_v37  ;;  %v4205_v36 = vmov 32.0  }
 0x360   : > { %1806 = vmatpush.bf16.msrb.mxu0 %v1797_v54  ;;  %1787 = vmatpush.bf16.msra.mxu3 %v1778_v57 }
 0x3a7   : > { %v1642_v39 = vpop.xlane.xlu0 %1641 }
 0x3a8   : > { %3541 = vrcp.f32 %v1642_v39 }
 0x3ae   : > { %v3542_v40 = vpop.eup %3541 }
 0x3af   : > { %v1650_v41 = vmul.f32 %v3542_v40, %v4717_v4  ;;  %v1636_v42 = vpop.xlane.xlu1 %1635 }
 0x3b0   : > { %3543 = vrcp.f32 %v1636_v42 }
 0x3b1   : > { %v1654_v43 = vpack.c.bf16 %v1650_v41, %v1650_v41 }
 0x3b3   : > { %2777 = vst.msk [vmem:[%s4781_s26 + $0xc] sm:$0xf] %vm2773_vm5, %v1654_v43  ;;  %3202 = vmatmul.msk.bf16.vlgmr.msra.gmra.mxu0 %vm1522_vm2, %v1654_v43 }
 0x3b6   : > { %v3544_v44 = vpop.eup %3543 }
 0x3b7   : > { %v1648_v45 = vmul.f32 %v3544_v44, %v4721_v14  ;;  %v1639_v46 = vpop.xlane.xlu1 %1638 }
 0x3b8   : > { %3545 = vrcp.f32 %v1639_v46 }
 0x3b9   : > { %v1652_v4 = vpack.c.bf16 %v1648_v45, %v1648_v45 }
 0x3bb   : > { %3200 = vmatmul.msk.bf16.vlgmr.msrb.gmra.mxu2 %vm1522_vm2, %v1652_v4  ;;  %2775 = vst.msk [vmem:[%s4781_s26 + $0x4] sm:$0xf] %vm2773_vm5, %v1652_v4 }
 0x3be   : > { %v3546_v47 = vpop.eup %3545 }
 0x3bf   : > { %v1649_v48 = vmul.f32 %v3546_v47, %v4727_v22  ;;  %v1633_v49 = vpop.xlane.xlu1 %1632  ;;  %v1516_v22 = vld [vmem:[#allocation8 + $0x4] sm:$0xf]  ;;  %v3524_v47 = vld [vmem:[#allocation19] ss:$0 sm:$0xff] }
 0x3c0   : > { %3547 = vrcp.f32 %v1633_v49  ;;  %v1759_v55 = vsel %vm1658_vm4, %v1516_v22, 0 }
 0x3c1   : > { %v1653_v50 = vpack.c.bf16 %v1649_v48, %v1649_v48  ;;  %1768 = vmatpush.bf16.msra.mxu2 %v1759_v55  ;;  %3549 = vrcp.f32 %v4205_v36 }
 0x3c3   : > { %3201 = vmatmul.msk.bf16.vlgmr.msrb.gmra.mxu3 %vm1522_vm2, %v1653_v50  ;;  %2776 = vst.msk [vmem:[%s4781_s26 + $0x8] sm:$0xf] %vm2773_vm5, %v1653_v50 }
 0x3c5   : > { %1928 = vmatpush.bf16.msrb.mxu2 %v3278_v10 }
 0x3c6   : > { %v3548_v51 = vpop.eup %3547 }
 0x3c7   : > { %v1647_v14 = vmul.f32 %v3548_v51, %v4737_v38  ;;  %v1740_v38 = vsel %vm1658_vm4, %v1515_v58, 0  ;;  %v3550_v37 = vpop.eup %3549  ;;  %v3276_v51 = vld [vmem:[#allocation14 + $0x8] sm:$0xff] }
 0x3c8   : > { %1749 = vmatpush.bf16.msra.mxu1 %v1740_v38  ;;  %v1828_v39 = vmul.f32 32.0, %v3550_v37  ;;  %vm1832_vm6 = vweird.f32 %v3550_v37 }
 0x3c9   : > { %v1651_v52 = vpack.c.bf16 %v1647_v14, %v1647_v14  ;;  %1929 = vmatpush.bf16.msrb.mxu2 %v3277_v34  ;;  %v3275_v14 = vld [vmem:[#allocation14] sm:$0xff] }
 0x3ca   : > { %v1829_v40 = vsub.f32 1.0, %v1828_v39 }
 0x3cb   : > { %3199 = vmatmul.msk.bf16.vlgmr.msrb.gmra.mxu1 %vm1522_vm2, %v1651_v52  ;;  %2774 = vst.msk [vmem:[%s4781_s26] sm:$0xf] %vm2773_vm5, %v1651_v52 }
 0x3cc   : > { %1891 = vmatpush.bf16.msrb.mxu1 %v3276_v51 }
 0x3d0   : > { %1892 = vmatpush.bf16.msrb.mxu1 %v3275_v14 }
 0x430   : > { %v1728_v59 = vpop.f32.mrf.mxu0 }
 0x431   : > { %v1735_v60 = vpack.c.bf16 %v1728_v59, %v1728_v59  ;;  %v3522_v59 = vld [vmem:[#allocation11] ss:$0 sm:$0xff] }
 0x433   : > { %3206 = vmatmul.msk.bf16.vlgmr.msrb.gmra.mxu0 %vm1522_vm2, %v1735_v60 }
 0x438   : > { %v1730_v61 = vpop.f32.mrf.mxu0 }
 0x439   : > { %v3523_v61 = vld [vmem:[#allocation13] ss:$0 sm:$0xff] }
 0x43e   : > { %v1690_v62 = vpop.f32.mrf.mxu2 }
 0x43f   : > { %v1733_v63 = vpack.c.bf16 %v1690_v62, %v1690_v62 }
 0x441   : > { %3204 = vmatmul.msk.bf16.vlgmr.msra.gmra.mxu2 %vm1522_vm2, %v1733_v63 }
 0x446   : > { %v1692_v0 = vpop.f32.mrf.mxu2  ;;  %v1709_v1 = vpop.f32.mrf.mxu3 }
 0x447   : > { %v1734_v3 = vpack.c.bf16 %v1709_v1, %v1709_v1 }
 0x448   : > { %v1671_v5 = vpop.f32.mrf.mxu1 }
 0x449   : > { %v1732_v6 = vpack.c.bf16 %v1671_v5, %v1671_v5  ;;  %3205 = vmatmul.msk.bf16.vlgmr.msra.gmra.mxu3 %vm1522_vm2, %v1734_v3 }
 0x44b   : > { %3203 = vmatmul.msk.bf16.vlgmr.msra.gmra.mxu1 %vm1522_vm2, %v1732_v6 }
 0x44e   : > { %v1711_v7 = vpop.f32.mrf.mxu3 }
 0x450   : > { %v1673_v12 = vpop.f32.mrf.mxu1 }
 0x451   : > { %3224 = vmatmul.msk.bf16.vlgmr.msrb.gmra.mxu2 %vm1120_vm0, %v1898_v35 }
 0x4b0   : > { %v1808_v8 = vpop.f32.mrf.mxu0 }
 0x4b1   : > { %v1817_v25 = vsel %vm1120_vm0, %v1808_v8, 0.0 }
 0x4b8   : > { %v1810_v9 = vpop.f32.mrf.mxu0 }
 0x4c4   : > { %v1770_v11 = vpop.f32.mrf.mxu2 }
 0x4c5   : > { %v1813_v16 = vsel %vm1120_vm0, %v1770_v11, 0.0 }
 0x4c8   : > { %v1751_v13 = vpop.f32.mrf.mxu1 }
 0x4c9   : > { %v1812_v15 = vsel %vm1120_vm0, %v1751_v13, 0.0 }
 0x4ca   : > { %v1814_v17 = vadd.f32 %v1813_v16, %v1812_v15 }
 0x4cc   : > { %v1772_v18 = vpop.f32.mrf.mxu2  ;;  %v1789_v20 = vpop.f32.mrf.mxu3 }
 0x4cd   : > { %v1815_v21 = vsel %vm1120_vm0, %v1789_v20, 0.0 }
 0x4ce   : > { %v1816_v23 = vadd.f32 %v1815_v21, %v1814_v17 }
 0x4d0   : > { %v1818_v26 = vadd.f32 %v1817_v25, %v1816_v23  ;;  %v1753_v27 = vpop.f32.mrf.mxu1 }
 0x4d2   : > { %v1822_v28 = vadd.f32 %v3521_v24, %v1818_v26 }
 0x4d4   : > { %v1791_v29 = vpop.f32.mrf.mxu3  ;;  %v1823_v30 = vadd.f32 %v1822_v28, %v4600_v2  ;;  %v1830_v2 = vmul.f32 %v3550_v37, %v1829_v40  ;;  %v1931_v48 = vpop.f32.mrf.mxu2 }
 0x4d5   : > { %v4822_v49 = vadd.f32 %v3524_v47, %v1931_v48 }
 0x4d6   : > { %v1824_v31 = vsel %vm1120_vm0, %v1823_v30, 0.0  ;;  %v1831_v41 = vadd.f32 %v3550_v37, %v1830_v2 }
 0x4d7   : > { %1825 = vadd.xlane.f32.xlu2 %v1824_v31  ;;  %2066 = vrot.lane.b32.xlu0 %v4822_v49, %s4200_s14  ;;  %v2071_v9 = vrot.slane %v4822_v49, 4 }
 0x4d8   : > { %v4818_v42 = vsel %vm1832_vm6, %v3550_v37, %v1831_v41 }
 0x4dc   : > { %v1933_v50 = vpop.f32.mrf.mxu2 }
 0x549   : > { %v4838_v5 = vpop.permute.xlu0 %2066 }
 0x54a   : > { %v1826_v43 = vpop.xlane.xlu2 %1825  ;;  %v2081_v7 = vrot.slane %v4838_v5, 4 }
 0x54b   : > { %v1834_v44 = vmul.f32 %v4818_v42, %v1826_v43 }
 0x54d   : > { %v1835_v45 = vsub.f32 %v1823_v30, %v1834_v44 }
 0x54f   : > { %v1836_v46 = vmul.f32 %v1835_v45, %v1835_v45 }
 0x551   : > { %v1837_v4 = vsel %vm1120_vm0, %v1836_v46, 0.0 }
 0x552   : > { %1838 = vadd.xlane.f32.xlu1 %v1837_v4 }
 0x56b   : > { %2060 = vrot.lane.b32.xlu1 %v4822_v49, %s4198_s11 }
 0x573   : > { %2063 = vrot.lane.b32.xlu1 %v4822_v49, %s4199_s15 }
 0x5c5   : > { %v1839_v52 = vpop.xlane.xlu1 %1838 }
 0x5c6   : > { %v1840_v53 = vmul.f32 %v1839_v52, %v4818_v42 }
 0x5c8   : > { %v1841_v54 = vadd.f32 1e-05, %v1840_v53 }
 0x5ca   : > { %3551 = vrsqrt.f32 %v1841_v54  ;;  %vm1848_vm8 = vweird.f32 %v1841_v54 }
 0x5d0   : > { %v3552_v22 = vpop.eup %3551 }
 0x5d1   : > { %v1843_v55 = vmul.f32 %v3552_v22, %v1841_v54  ;;  %vm1849_vm7 = vweird.f32 %v3552_v22 }
 0x5d2   : > { %vm1850_vm9 = vmor %vm1848_vm8, %vm1849_vm7 }
 0x5d3   : > { %v1844_v56 = vmul.f32 %v3552_v22, %v1843_v55 }
 0x5d5   : > { %v1845_v57 = vmul.f32 0.5, %v1844_v56 }
 0x5d7   : > { %v1846_v58 = vsub.f32 1.5, %v1845_v57 }
 0x5d9   : > { %v1847_v38 = vmul.f32 %v3552_v22, %v1846_v58 }
 0x5db   : > { %v1851_v60 = vsel %vm1850_vm9, %v3552_v22, %v1847_v38 }
 0x5dc   : > { %v1852_v62 = vmul.f32 %v1851_v60, %v1835_v45 }
 0x5dd   : > { %v4836_v3 = vpop.permute.xlu1 %2060 }
 0x5de   : > { %v1856_v63 = vmul.f32 %v3522_v59, %v1852_v62  ;;  %v2083_v6 = vrot.slane %v4836_v3, 4  ;;  %v2082_v12 = vsel %vm1148_vm1, %v2081_v7, %v4836_v3 }
 0x5df   : > { %v2088_v11 = vperm.slane %v2082_v12, %v4616_v19 }
 0x5e0   : > { %v4831_v0 = vadd.f32 %v3523_v61, %v1856_v63  ;;  %v2084_v8 = vsel %vm1148_vm1, %v4838_v5, %v2083_v6 }
 0x5e1   : > { %v2092_v10 = vperm.slane %v2084_v8, %v4616_v19  ;;  %v2093_v20 = vrot.slane %v2088_v11, 4 }
 0x5e2   : > { %v1861_v1 = vpack.c.bf16 %v4831_v0, %v4831_v0 }
 0x5e3   : > { %v2105_v15 = vrot.slane %v2092_v10, 4 }
 0x5e4   : > { %3215 = vmatmul.msk.bf16.vlgmr.msrb.gmra.mxu1 %vm1120_vm0, %v1861_v1 }
 0x5e5   : > { %v4849_v13 = vpop.permute.xlu1 %2063 }
 0x5e6   : > { %v2069_v16 = vrot.slane %v4849_v13, 4  ;;  %v2072_v17 = vsel %vm1148_vm1, %v4849_v13, %v2071_v9 }
 0x5e7   : > { %v2080_v18 = vperm.slane %v2072_v17, %v4616_v19 }
 0x5e8   : > { %v2070_v21 = vsel %vm1148_vm1, %v2069_v16, %v4822_v49 }
 0x5e9   : > { %v2076_v23 = vperm.slane %v2070_v21, %v4616_v19  ;;  %v2107_v24 = vrot.slane %v2080_v18, 4  ;;  %v2106_v25 = vsel %vm1148_vm1, %v2105_v15, %v2080_v18 }
 0x5ea   : > { %v2112_v26 = vperm.slane %v2106_v25, %v4626_v33 }
 0x5eb   : > { %v2095_v27 = vrot.slane %v2076_v23, 4  ;;  %v2094_v28 = vsel %vm1148_vm1, %v2093_v20, %v2076_v23  ;;  %v2108_v29 = vsel %vm1148_vm1, %v2092_v10, %v2107_v24  ;;  %v3525_v24 = vld [vmem:[#allocation16] ss:$0 sm:$0xff] }
 0x5ec   : > { %v2100_v30 = vperm.slane %v2094_v28, %v4626_v33  ;;  %v2116_v31 = vperm.slane %v2108_v29, %v4626_v33  ;;  %v2121_v32 = vrot.slane %v2112_v26, 4 }
 0x5ed   : > { %v2096_v34 = vsel %vm1148_vm1, %v2088_v11, %v2095_v27 }
 0x5ee   : > { %v2104_v35 = vperm.slane %v2096_v34, %v4626_v33  ;;  %v2117_v36 = vrot.slane %v2100_v30, 4  ;;  %v2123_v37 = vrot.slane %v2116_v31, 4  ;;  %v2122_v40 = vsel %vm1148_vm1, 0.0, %v2121_v32 }
 0x5f0   : > { %v2119_v39 = vrot.slane %v2104_v35, 4  ;;  %v2124_v2 = vsel %vm1148_vm1, 0.0, %v2123_v37  ;;  %v2136_v41 = vsel %vm1148_vm1, %v2123_v37, %v2112_v26  ;;  %v2118_v44 = vsel %vm1148_vm1, 0.0, %v2117_v36 }
 0x5f1   : > { %v2141_v43 = vrot.slane %v2124_v2, 4  ;;  %v2140_v47 = vperm.slane %v2136_v41, %v4616_v19 }
 0x5f2   : > { %v2120_v45 = vsel %vm1148_vm1, 0.0, %v2119_v39  ;;  %v2125_v52 = vsel %vm1148_vm1, %v2119_v39, %v2100_v30 }
 0x5f3   : > { %v2130_v46 = vrot.slane %v2120_v45, 4  ;;  %v2142_v4 = vsel %vm1148_vm1, %v2141_v43, %v2122_v40  ;;  %v2129_v53 = vperm.slane %v2125_v52, %v4616_v19  ;;  %v2161_v55 = vrot.slane %v2140_v47, 4 }
 0x5f4   : > { %v2146_v48 = vperm.slane %v2142_v4, %v4616_v19 }
 0x5f5   : > { %v2131_v50 = vsel %vm1148_vm1, %v2130_v46, %v2118_v44  ;;  %v2149_v58 = vrot.slane %v2129_v53, 4 }
 0x5f6   : > { %v2135_v51 = vperm.slane %v2131_v50, %v4616_v19  ;;  %v2159_v14 = vrot.slane %v2146_v48, 4  ;;  %v2162_v38 = vsel %vm1148_vm1, %v2146_v48, %v2161_v55 }
 0x5f7   : > { %v2170_v61 = vperm.slane %v2162_v38, %v4626_v33 }
 0x5f8   : > { %v2147_v54 = vrot.slane %v2135_v51, 4  ;;  %v2160_v22 = vsel %vm1148_vm1, %v2159_v14, %v2140_v47  ;;  %v2150_v62 = vsel %vm1148_vm1, %v2135_v51, %v2149_v58 }
 0x5f9   : > { %v2166_v56 = vperm.slane %v2160_v22, %v4626_v33  ;;  %v2158_v6 = vperm.slane %v2150_v62, %v4626_v33  ;;  %v2175_v7 = vrot.slane %v2170_v61, 4 }
 0x5fa   : > { %v2148_v57 = vsel %vm1148_vm1, %v2147_v54, %v2129_v53 }
 0x5fb   : > { %v2154_v59 = vperm.slane %v2148_v57, %v4626_v33  ;;  %v2171_v60 = vrot.slane %v2166_v56, 4  ;;  %v2176_v10 = vsel %vm1148_vm1, %v2175_v7, %v2158_v6  ;;  %v2177_v9 = vrot.slane %v2158_v6, 4 }
 0x5fc   : > { %v2181_v16 = vpack.c.bf16 %v2176_v10, %v2176_v10 }
 0x5fd   : > { %v2172_v63 = vsel %vm1148_vm1, %v2171_v60, %v2154_v59  ;;  %v2173_v1 = vrot.slane %v2154_v59, 4  ;;  %v2178_v17 = vsel %vm1148_vm1, %v2170_v61, %v2177_v9 }
 0x5fe   : > { %v2179_v12 = vpack.c.bf16 %v2172_v63, %v2172_v63  ;;  %v2359_v20 = vsel %vm1522_vm2, %v2181_v16, 0  ;;  %v2182_v21 = vpack.c.bf16 %v2178_v17, %v2178_v17 }
 0x5ff   : > { %v2174_v8 = vsel %vm1148_vm1, %v2166_v56, %v2173_v1  ;;  %2368 = vmatpush.bf16.xpose.msra.mxu1 %v2359_v20 }
 0x600   : > { %v2321_v11 = vsel %vm1522_vm2, %v2179_v12, 0  ;;  %v2180_v15 = vpack.c.bf16 %v2174_v8, %v2174_v8  ;;  %v2378_v23 = vsel %vm1522_vm2, %v2182_v21, 0 }
 0x601   : > { %2330 = vmatpush.bf16.xpose.msrb.mxu3 %v2321_v11  ;;  %2387 = vmatpush.bf16.xpose.msra.mxu2 %v2378_v23 }
 0x602   : > { %v2340_v18 = vsel %vm1522_vm2, %v2180_v15, 0 }
 0x603   : > { %2349 = vmatpush.bf16.xpose.msra.mxu0 %v2340_v18 }
 0x661   : > { %v1894_v25 = vpop.f32.mrf.mxu1 }
 0x662   : > { %v1895_v26 = vadd.f32 %v3525_v24, %v1894_v25 }
 0x664   : > { %1939 = vrot.lane.b32.xlu1 %v1895_v26, %s4199_s15  ;;  %1936 = vrot.lane.b32.xlu2 %v1895_v26, %s4198_s11  ;;  %v1947_v30 = vrot.slane %v1895_v26, 4  ;;  %s5256_s15 = sld [smem:[#allocation62_spill]] }
 0x669   : > { %v1896_v27 = vpop.f32.mrf.mxu1 }
 0x66c   : > { %1942 = vrot.lane.b32.xlu1 %v1895_v26, %s4200_s14  ;;  %s5254_s14 = sld [smem:[#allocation61_spill]] }
 0x6be   : > { %v1937_v32 = vpop.permute.xlu2 %1936 }
 0x6bf   : > { %v1959_v36 = vrot.slane %v1937_v32, 4 }
 0x6d6   : > { %v1940_v28 = vpop.permute.xlu1 %1939 }
 0x6d7   : > { %v1945_v29 = vrot.slane %v1940_v28, 4  ;;  %v1948_v31 = vsel %vm1148_vm1, %v1940_v28, %v1947_v30 }
 0x6d8   : > { %v1956_v35 = vperm.slane %v1948_v31, %v4616_v19 }
 0x6d9   : > { %v1946_v34 = vsel %vm1148_vm1, %v1945_v29, %v1895_v26 }
 0x6da   : > { %v1952_v37 = vperm.slane %v1946_v34, %v4616_v19  ;;  %v1983_v41 = vrot.slane %v1956_v35, 4 }
 0x6dc   : > { %v1971_v45 = vrot.slane %v1952_v37, 4 }
 0x6de   : > { %v1943_v39 = vpop.permute.xlu1 %1942 }
 0x6df   : > { %v1957_v40 = vrot.slane %v1943_v39, 4  ;;  %v1960_v2 = vsel %vm1148_vm1, %v1943_v39, %v1959_v36 }
 0x6e0   : > { %v1968_v43 = vperm.slane %v1960_v2, %v4616_v19 }
 0x6e1   : > { %v1958_v44 = vsel %vm1148_vm1, %v1957_v40, %v1937_v32 }
 0x6e2   : > { %v1964_v46 = vperm.slane %v1958_v44, %v4616_v19  ;;  %v1981_v4 = vrot.slane %v1968_v43, 4  ;;  %v1984_v47 = vsel %vm1148_vm1, %v1968_v43, %v1983_v41  ;;  %v2309_v43 = vld [vmem:[%s4550_s30] sm:$0xf]  ;;  %s5015_s30 = scalar_lea.vmem [#allocation29], %s3182_s17 }
 0x6e3   : > { %v1992_v48 = vperm.slane %v1984_v47, %v4626_v33  ;;  %v2393_v44 = vunpack.c.l.bf16 %v2309_v43 }
 0x6e4   : > { %v1969_v50 = vrot.slane %v1964_v46, 4  ;;  %v1972_v51 = vsel %vm1148_vm1, %v1964_v46, %v1971_v45  ;;  %v1982_v14 = vsel %vm1148_vm1, %v1981_v4, %v1956_v35 }
 0x6e5   : > { %v1980_v52 = vperm.slane %v1972_v51, %v4626_v33  ;;  %v1988_v53 = vperm.slane %v1982_v14, %v4626_v33  ;;  %v1999_v54 = vrot.slane %v1992_v48, 4  ;;  %vm2394_vm10 = vcmp.gt.f32.partialorder %v2393_v44, 0.0 }
 0x6e6   : > { %v1970_v22 = vsel %vm1148_vm1, %v1969_v50, %v1952_v37 }
 0x6e7   : > { %v1976_v55 = vperm.slane %v1970_v22, %v4626_v33  ;;  %v1995_v56 = vrot.slane %v1980_v52, 4  ;;  %v1997_v57 = vrot.slane %v1988_v53, 4  ;;  %v2000_v58 = vsel %vm1148_vm1, 0.0, %v1999_v54 }
 0x6e8   : > { %v2012_v38 = vsel %vm1148_vm1, %v1999_v54, %v1988_v53  ;;  %v2017_v59 = vrot.slane %v2000_v58, 4 }
 0x6e9   : > { %v1993_v60 = vrot.slane %v1976_v55, 4  ;;  %v1996_v61 = vsel %vm1148_vm1, 0.0, %v1995_v56  ;;  %v1998_v62 = vsel %vm1148_vm1, 0.0, %v1997_v57  ;;  %v2001_v63 = vsel %vm1148_vm1, %v1995_v56, %v1976_v55 }
 0x6ea   : > { %v2005_v1 = vperm.slane %v2001_v63, %v4616_v19  ;;  %v2006_v6 = vrot.slane %v1996_v61, 4  ;;  %v2016_v7 = vperm.slane %v2012_v38, %v4616_v19  ;;  %v2018_v12 = vsel %vm1148_vm1, %v2017_v59, %v1998_v62 }
 0x6eb   : > { %v1994_v8 = vsel %vm1148_vm1, 0.0, %v1993_v60  ;;  %v2022_v10 = vperm.slane %v2018_v12, %v4616_v19  ;;  %v3510_v38 = vpack.i.bf16 %v4836_v3, %v4822_v49  ;;  %v3515_v59 = vpack.i.bf16 %v4838_v5, %v4849_v13 }
 0x6ec   : > { %v2007_v9 = vsel %vm1148_vm1, %v2006_v6, %v1994_v8  ;;  %v2025_v11 = vrot.slane %v2005_v1, 4  ;;  %v2037_v15 = vrot.slane %v2016_v7, 4 }
 0x6ed   : > { %v2011_v16 = vperm.slane %v2007_v9, %v4616_v19  ;;  %v2035_v17 = vrot.slane %v2022_v10, 4 }
 0x6ee   : > { %v2038_v18 = vsel %vm1148_vm1, %v2022_v10, %v2037_v15 }
 0x6ef   : > { %v2036_v20 = vsel %vm1148_vm1, %v2035_v17, %v2016_v7  ;;  %v2026_v21 = vsel %vm1148_vm1, %v2011_v16, %v2025_v11  ;;  %v2046_v23 = vperm.slane %v2038_v18, %v4626_v33  ;;  %v2023_v24 = vrot.slane %v2011_v16, 4 }
 0x6f0   : > { %v2034_v25 = vperm.slane %v2026_v21, %v4626_v33  ;;  %v2042_v26 = vperm.slane %v2036_v20, %v4626_v33 }
 0x6f1   : > { %v2051_v27 = vrot.slane %v2046_v23, 4  ;;  %v2024_v28 = vsel %vm1148_vm1, %v2023_v24, %v2005_v1 }
 0x6f2   : > { %v2030_v29 = vperm.slane %v2024_v28, %v4626_v33  ;;  %v2047_v30 = vrot.slane %v2042_v26, 4  ;;  %v2053_v31 = vrot.slane %v2034_v25, 4 }
 0x6f3   : > { %v2052_v32 = vsel %vm1148_vm1, %v2051_v27, %v2034_v25 }
 0x6f4   : > { %v2057_v34 = vpack.c.bf16 %v2052_v32, %v2052_v32  ;;  %v2048_v35 = vsel %vm1148_vm1, %v2047_v30, %v2030_v29  ;;  %v2054_v36 = vsel %vm1148_vm1, %v2046_v23, %v2053_v31  ;;  %v2049_v37 = vrot.slane %v2030_v29, 4 }
 0x6f5   : > { %v2055_v39 = vpack.c.bf16 %v2048_v35, %v2048_v35  ;;  %v2058_v40 = vpack.c.bf16 %v2054_v36, %v2054_v36 }
 0x6f6   : > { %3227 = vmatmul.msk.bf16.vlgmr.msra.gmra.mxu1 %vm1522_vm2, %v2057_v34  ;;  %v2050_v2 = vsel %vm1148_vm1, %v2042_v26, %v2049_v37 }
 0x6f7   : > { %3225 = vmatmul.msk.bf16.vlgmr.msrb.gmra.mxu3 %vm1522_vm2, %v2055_v39  ;;  %3228 = vmatmul.msk.bf16.vlgmr.msra.gmra.mxu2 %vm1522_vm2, %v2058_v40  ;;  %v2056_v41 = vpack.c.bf16 %v2050_v2, %v2050_v2 }
 0x6f9   : > { %3226 = vmatmul.msk.bf16.vlgmr.msra.gmra.mxu0 %vm1522_vm2, %v2056_v41 }
 0x773   : > { %v2370_v45 = vpop.f32.mrf.mxu1 }
 0x774   : > { %v2399_v55 = vsel %vm2394_vm10, -1e+09, %v2370_v45 }
 0x775   : > { %v2407_v58 = vsel %vm1522_vm2, %v2399_v55, -inf }
 0x776   : > { %v2351_v46 = vpop.f32.mrf.mxu0 }
 0x777   : > { %v2398_v4 = vsel %vm2394_vm10, -1e+09, %v2351_v46 }
 0x778   : > { %v2404_v47 = vsel %vm1522_vm2, %v2398_v4, -inf }
 0x779   : > { %2405 = vmax.xlane.f32.xlu2 %v2404_v47 }
 0x77a   : > { %v2332_v48 = vpop.f32.mrf.mxu3  ;;  %v2389_v50 = vpop.f32.mrf.mxu2 }
 0x77b   : > { %v2397_v51 = vsel %vm2394_vm10, -1e+09, %v2332_v48  ;;  %v2372_v14 = vpop.f32.mrf.mxu1  ;;  %v2400_v52 = vsel %vm2394_vm10, -1e+09, %v2389_v50 }
 0x77c   : > { %v2410_v53 = vsel %vm1522_vm2, %v2400_v52, -inf  ;;  %v2401_v54 = vsel %vm1522_vm2, %v2397_v51, -inf }
 0x77d   : > { %2411 = vmax.xlane.f32.xlu0 %v2410_v53  ;;  %2402 = vmax.xlane.f32.xlu1 %v2401_v54 }
 0x77e   : > { %v2353_v22 = vpop.f32.mrf.mxu0 }
 0x782   : > { %v2334_v56 = vpop.f32.mrf.mxu3  ;;  %v2391_v57 = vpop.f32.mrf.mxu2 }
 0x785   : > { %2408 = vmax.xlane.f32.xlu1 %v2407_v58 }
 0x791   : > { %3511 = vrot.lane.b32.xlu0 %v3510_v38, %s4201_s18  ;;  %3516 = vrot.lane.b32.xlu2 %v3515_v59, %s4201_s18  ;;  %s3285_s18 = sshll.u32 %s4366_s9, 4 }
 0x792   : > { %s2818_s6 = scalar_lea.hbm %s5257_s22, %s3285_s18 }
 0x793   : > { %s2821_s4 = sshll.u32 %s2818_s6, 4  ;;  %s2822_s4 = int_to_ptr.hbm [resolvable:$true] %s2821_s4 }
 0x7ec   : > { %v2406_v60 = vpop.xlane.xlu2 %2405 }
 0x7ed   : > { %v2414_v61 = vsub.f32 %v2398_v4, %v2406_v60 }
 0x7ef   : > { %v2419_v62 = vmul.f32 1.442695, %v2414_v61 }
 0x7f0   : > { %v2403_v63 = vpop.xlane.xlu1 %2402  ;;  %v2412_v1 = vpop.xlane.xlu0 %2411 }
 0x7f1   : > { %3553 = vpow2.f32 %v2419_v62  ;;  %v2413_v6 = vsub.f32 %v2397_v51, %v2403_v63  ;;  %v2416_v12 = vsub.f32 %v2400_v52, %v2412_v1 }
 0x7f3   : > { %v2417_v7 = vmul.f32 1.442695, %v2413_v6  ;;  %v2423_v49 = vmul.f32 1.442695, %v2416_v12 }
 0x7f4   : > { %v3517_v10 = vpop.permute.xlu2 %3516 }
 0x7f5   : > { %3555 = vpow2.f32 %v2417_v7  ;;  %v3519_v15 = vunpack.i.h.bf16 %v3517_v10  ;;  %v3518_v16 = vunpack.i.l.bf16 %v3517_v10 }
 0x7f6   : > { %3557 = vpow2.f32 %v2423_v49 }
 0x7f7   : > { %v4952_v8 = vpop.eup %3553  ;;  %v2207_v20 = vrot.slane %v3519_v15, 4  ;;  %v2195_v23 = vrot.slane %v3518_v16, 4 }
 0x7f8   : > { %v2428_v3 = vsel %vm1522_vm2, %v4952_v8, 0.0  ;;  %v2409_v5 = vpop.xlane.xlu1 %2408 }
 0x7f9   : > { %2429 = vadd.xlane.f32.xlu0 %v2428_v3  ;;  %v2415_v9 = vsub.f32 %v2399_v55, %v2409_v5 }
 0x7fb   : > { %v4956_v13 = vpop.eup %3555  ;;  %v2421_v17 = vmul.f32 1.442695, %v2415_v9 }
 0x7fc   : > { %v2425_v11 = vsel %vm1522_vm2, %v4956_v13, 0.0  ;;  %v4960_v18 = vpop.eup %3557 }
 0x7fd   : > { %2426 = vadd.xlane.f32.xlu1 %v2425_v11  ;;  %3559 = vpow2.f32 %v2421_v17  ;;  %v2434_v26 = vsel %vm1522_vm2, %v4960_v18, 0.0 }
 0x803   : > { %v3512_v21 = vpop.permute.xlu0 %3511  ;;  %v4972_v2 = vpop.eup %3559 }
 0x804   : > { %v3514_v24 = vunpack.i.h.bf16 %v3512_v21  ;;  %v3513_v25 = vunpack.i.l.bf16 %v3512_v21  ;;  %v2431_v50 = vsel %vm1522_vm2, %v4972_v2, 0.0 }
 0x805   : > { %2435 = vadd.xlane.f32.xlu1 %v2434_v26 }
 0x806   : > { %v2209_v27 = vrot.slane %v3514_v24, 4  ;;  %v2196_v28 = vsel %vm1148_vm1, %v2195_v23, %v3513_v25  ;;  %v2197_v29 = vrot.slane %v3513_v25, 4  ;;  %v2208_v30 = vsel %vm1148_vm1, %v2207_v20, %v3514_v24 }
 0x807   : > { %v2202_v31 = vperm.slane %v2196_v28, %v4616_v19  ;;  %v2214_v32 = vperm.slane %v2208_v30, %v4616_v19 }
 0x808   : > { %v2198_v34 = vsel %vm1148_vm1, %v3518_v16, %v2197_v29  ;;  %v2210_v35 = vsel %vm1148_vm1, %v3519_v15, %v2209_v27 }
 0x809   : > { %v2206_v36 = vperm.slane %v2198_v34, %v4616_v19  ;;  %v2218_v37 = vperm.slane %v2210_v35, %v4616_v19  ;;  %v2219_v39 = vrot.slane %v2214_v32, 4  ;;  %v2221_v40 = vrot.slane %v2202_v31, 4 }
 0x80b   : > { %v2220_v41 = vsel %vm1148_vm1, %v2219_v39, %v2202_v31  ;;  %v2222_v43 = vsel %vm1148_vm1, %v2214_v32, %v2221_v40  ;;  %v2231_v44 = vrot.slane %v2218_v37, 4  ;;  %v2233_v45 = vrot.slane %v2206_v36, 4 }
 0x80c   : > { %v2226_v46 = vperm.slane %v2220_v41, %v4626_v33  ;;  %v2230_v4 = vperm.slane %v2222_v43, %v4626_v33 }
 0x80d   : > { %v2232_v47 = vsel %vm1148_vm1, %v2231_v44, %v2206_v36  ;;  %v2234_v48 = vsel %vm1148_vm1, %v2218_v37, %v2233_v45  ;;  %2432 = vadd.xlane.f32.xlu1 %v2431_v50 }
 0x80e   : > { %v2238_v51 = vperm.slane %v2232_v47, %v4626_v33  ;;  %v2242_v14 = vperm.slane %v2234_v48, %v4626_v33  ;;  %v2243_v52 = vrot.slane %v2226_v46, 4  ;;  %v2245_v53 = vrot.slane %v2230_v4, 4 }
 0x810   : > { %v2246_v54 = vsel %vm1148_vm1, 0.0, %v2245_v53  ;;  %v2247_v22 = vrot.slane %v2238_v51, 4  ;;  %v2249_v55 = vrot.slane %v2242_v14, 4  ;;  %v2251_v56 = vsel %vm1148_vm1, %v2245_v53, %v2226_v46 }
 0x811   : > { %v2256_v57 = vrot.slane %v2246_v54, 4  ;;  %v2244_v58 = vsel %vm1148_vm1, 0.0, %v2243_v52  ;;  %v2255_v59 = vperm.slane %v2251_v56, %v4616_v19  ;;  %v2311_v54 = vld [vmem:[#allocation20 + $0x4] sm:$0xf]  ;;  %v2313_v56 = vld [vmem:[#allocation20 + $0xc] sm:$0xf] }
 0x812   : > { %v2250_v38 = vsel %vm1148_vm1, 0.0, %v2249_v55  ;;  %v2262_v60 = vsel %vm1148_vm1, %v2249_v55, %v2238_v51  ;;  %v2248_v1 = vsel %vm1148_vm1, 0.0, %v2247_v22  ;;  %v2552_v22 = vsel %vm1658_vm4, %v2311_v54, 0 }
 0x813   : > { %v2267_v61 = vrot.slane %v2250_v38, 4  ;;  %v2257_v62 = vsel %vm1148_vm1, %v2256_v57, %v2244_v58  ;;  %v2266_v63 = vperm.slane %v2262_v60, %v4616_v19  ;;  %v2275_v7 = vrot.slane %v2255_v59, 4  ;;  %v2312_v58 = vld [vmem:[#allocation20 + $0x8] sm:$0xf] }
 0x814   : > { %v2261_v6 = vperm.slane %v2257_v62, %v4616_v19  ;;  %v2590_v57 = vsel %vm1658_vm4, %v2313_v56, 0 }
 0x815   : > { %v2268_v12 = vsel %vm1148_vm1, %v2267_v61, %v2248_v1  ;;  %v2287_v49 = vrot.slane %v2266_v63, 4 }
 0x816   : > { %v2272_v3 = vperm.slane %v2268_v12, %v4616_v19  ;;  %v2276_v5 = vsel %vm1148_vm1, %v2261_v6, %v2275_v7  ;;  %v2273_v10 = vrot.slane %v2261_v6, 4 }
 0x817   : > { %v2284_v9 = vperm.slane %v2276_v5, %v4626_v33 }
 0x818   : > { %v2288_v11 = vsel %vm1148_vm1, %v2272_v3, %v2287_v49  ;;  %v2274_v15 = vsel %vm1148_vm1, %v2273_v10, %v2255_v59  ;;  %v2285_v16 = vrot.slane %v2272_v3, 4 }
 0x819   : > { %v2296_v17 = vperm.slane %v2288_v11, %v4626_v33  ;;  %v2303_v20 = vrot.slane %v2284_v9, 4  ;;  %v2280_v21 = vperm.slane %v2274_v15, %v4626_v33 }
 0x81a   : > { %v2286_v23 = vsel %vm1148_vm1, %v2285_v16, %v2266_v63 }
 0x81b   : > { %v2304_v24 = vsel %vm1148_vm1, %v2296_v17, %v2303_v20  ;;  %v2292_v19 = vperm.slane %v2286_v23, %v4626_v33  ;;  %v2299_v25 = vrot.slane %v2280_v21, 4  ;;  %v2301_v26 = vrot.slane %v2296_v17, 4 }
 0x81c   : > { %v2308_v27 = vpack.c.bf16 %v2304_v24, %v2304_v24 }
 0x81d   : > { %v2300_v28 = vsel %vm1148_vm1, %v2292_v19, %v2299_v25  ;;  %v2302_v29 = vsel %vm1148_vm1, %v2301_v26, %v2284_v9  ;;  %v2297_v30 = vrot.slane %v2292_v19, 4  ;;  %v3526_v19 = vld [vmem:[#allocation22] ss:$0 sm:$0xff] }
 0x81e   : > { %v2510_v31 = vsel %vm1658_vm4, %v2308_v27, 0  ;;  %v2306_v32 = vpack.c.bf16 %v2300_v28, %v2300_v28  ;;  %v2307_v34 = vpack.c.bf16 %v2302_v29, %v2302_v29 }
 0x81f   : > { %2519 = vmatpush.bf16.msrb.mxu2 %v2510_v31  ;;  %v2298_v35 = vsel %vm1148_vm1, %v2297_v30, %v2280_v21 }
 0x820   : > { %v2472_v36 = vsel %vm1658_vm4, %v2306_v32, 0  ;;  %v2491_v33 = vsel %vm1658_vm4, %v2307_v34, 0  ;;  %v2305_v37 = vpack.c.bf16 %v2298_v35, %v2298_v35 }
 0x821   : > { %2481 = vmatpush.bf16.msrb.mxu0 %v2472_v36  ;;  %2500 = vmatpush.bf16.msrb.mxu1 %v2491_v33 }
 0x822   : > { %v2453_v39 = vsel %vm1658_vm4, %v2305_v37, 0  ;;  %v3280_v37 = vld [vmem:[%s5253_s10 + $0x8] sm:$0xff] }
 0x823   : > { %2462 = vmatpush.bf16.msra.mxu3 %v2453_v39  ;;  %2599 = vmatpush.bf16.msra.mxu2 %v2590_v57  ;;  %v3284_v39 = vld [vmem:[%s5254_s14 + $0x18] sm:$0xff] }
 0x825   : > { %2561 = vmatpush.bf16.msra.mxu0 %v2552_v22  ;;  %v3282_v22 = vld [vmem:[%s5254_s14 + $0x8] sm:$0xff] }
 0x86c   : > { %v2430_v40 = vpop.xlane.xlu0 %2429 }
 0x86d   : > { %3561 = vrcp.f32 %v2430_v40 }
 0x870   : > { %v2427_v41 = vpop.xlane.xlu1 %2426 }
 0x871   : > { %3563 = vrcp.f32 %v2427_v41 }
 0x873   : > { %v3562_v43 = vpop.eup %3561 }
 0x874   : > { %v2442_v44 = vmul.f32 %v3562_v43, %v4952_v8  ;;  %v3283_v43 = vld [vmem:[%s5254_s14 + $0x10] sm:$0xff] }
 0x876   : > { %v2446_v45 = vpack.c.bf16 %v2442_v44, %v2442_v44 }
 0x877   : > { %v3564_v46 = vpop.eup %3563 }
 0x878   : > { %2779 = vst.msk [vmem:[%s5015_s30 + $0x4] sm:$0xf] %vm2773_vm5, %v2446_v45  ;;  %3230 = vmatmul.msk.bf16.vlgmr.msrb.gmra.mxu0 %vm1522_vm2, %v2446_v45  ;;  %v2441_v4 = vmul.f32 %v3564_v46, %v4956_v13  ;;  %v2436_v47 = vpop.xlane.xlu1 %2435 }
 0x879   : > { %3565 = vrcp.f32 %v2436_v47  ;;  %2732 = vmatpush.bf16.msrb.mxu0 %v3284_v39 }
 0x87a   : > { %v2445_v48 = vpack.c.bf16 %v2441_v4, %v2441_v4 }
 0x87c   : > { %2778 = vst.msk [vmem:[%s5015_s30] sm:$0xf] %vm2773_vm5, %v2445_v48  ;;  %3229 = vmatmul.msk.bf16.vlgmr.msra.gmra.mxu3 %vm1522_vm2, %v2445_v48 }
 0x87d   : > { %2733 = vmatpush.bf16.msrb.mxu0 %v3283_v43 }
 0x87f   : > { %v3566_v8 = vpop.eup %3565 }
 0x880   : > { %v2444_v50 = vmul.f32 %v3566_v8, %v4960_v18  ;;  %v2433_v51 = vpop.xlane.xlu1 %2432  ;;  %v2310_v18 = vld [vmem:[#allocation20] sm:$0xf] }
 0x881   : > { %3567 = vrcp.f32 %v2433_v51  ;;  %v2533_v55 = vsel %vm1658_vm4, %v2310_v18, 0  ;;  %2734 = vmatpush.bf16.msrb.mxu0 %v3282_v22  ;;  %v3281_v18 = vld [vmem:[%s5254_s14] sm:$0xff] }
 0x882   : > { %v2448_v14 = vpack.c.bf16 %v2444_v50, %v2444_v50  ;;  %2542 = vmatpush.bf16.msrb.mxu3 %v2533_v55  ;;  %v3527_v50 = vld [vmem:[#allocation23] ss:$0 sm:$0xff]  ;;  %v3529_v55 = vld [vmem:[%s5255_s24] ss:$0 sm:$0xff]  ;;  %s4037_s24 = sshra.s32 %s2822_s4, 4  ;;  %s4038_s24 = int_to_ptr.hbm [resolvable:$true] %s4037_s24 }
 0x883   : > { %s4039_s29 = scalar_lea.hbm %s4038_s24, 16  ;;  %p4044_p9 = scmp.lt.s32.totalorder %s4038_s24, %s5257_s22 }
 0x884   : > { %2781 = vst.msk [vmem:[%s5015_s30 + $0xc] sm:$0xf] %vm2773_vm5, %v2448_v14  ;;  %3232 = vmatmul.msk.bf16.vlgmr.msrb.gmra.mxu2 %vm1522_vm2, %v2448_v14  ;;  %v3528_v14 = vld [vmem:[#allocation25] ss:$0 sm:$0xff]  ;;  %p4040_p1 = scmp.ne.s32.totalorder %s4038_s24, %s4039_s29  ;;  %p4045_p8 = scmp.lt.s32.totalorder %s4043_s19, %s4039_s29 }
 0x885   : > { %2735 = vmatpush.bf16.msrb.mxu0 %v3281_v18 }
 0x886   : > { %2688 = vmatpush.bf16.msra.mxu3 %v3280_v37  ;;  %p4041_p13 = pnand %p4040_p1, %p4484_p0  ;;  %p4046_p10 = por %p4045_p8, %p4044_p9 }
 0x887   : > { %v3568_v52 = vpop.eup %3567 }
 0x888   : > { %v2443_v13 = vmul.f32 %v3568_v52, %v4972_v2  ;;  %v2571_v2 = vsel %vm1658_vm4, %v2312_v58, 0  ;;  %p4042_p7 = pneg %p4041_p13 }
 0x889   : > { %2580 = vmatpush.bf16.msra.mxu1 %v2571_v2 }
 0x88a   : > { %v2447_v53 = vpack.c.bf16 %v2443_v13, %v2443_v13  ;;  %p4047_p12 = pnand %p4046_p10, %p4042_p7 }
 0x88c   : > { %2780 = vst.msk [vmem:[%s5015_s30 + $0x8] sm:$0xf] %vm2773_vm5, %v2447_v53  ;;  %3231 = vmatmul.msk.bf16.vlgmr.msrb.gmra.mxu1 %vm1522_vm2, %v2447_v53 }
 0x8f5   : > { %v2483_v38 = vpop.f32.mrf.mxu0 }
 0x8f6   : > { %v2526_v59 = vpack.c.bf16 %v2483_v38, %v2483_v38 }
 0x8f8   : > { %3234 = vmatmul.msk.bf16.vlgmr.msra.gmra.mxu0 %vm1522_vm2, %v2526_v59  ;;  %v3530_v59 = vld [vmem:[%s5256_s15] ss:$0 sm:$0xff] }
 0x8fd   : > { %v2485_v60 = vpop.f32.mrf.mxu0 }
 0x8ff   : > { %v2464_v61 = vpop.f32.mrf.mxu3 }
 0x900   : > { %v2525_v62 = vpack.c.bf16 %v2464_v61, %v2464_v61 }
 0x902   : > { %3233 = vmatmul.msk.bf16.vlgmr.msrb.gmra.mxu3 %vm1522_vm2, %v2525_v62 }
 0x907   : > { %v2466_v63 = vpop.f32.mrf.mxu3  ;;  %v2521_v1 = vpop.f32.mrf.mxu2 }
 0x908   : > { %v2528_v6 = vpack.c.bf16 %v2521_v1, %v2521_v1 }
 0x909   : > { %v2502_v7 = vpop.f32.mrf.mxu1 }
 0x90a   : > { %v2527_v12 = vpack.c.bf16 %v2502_v7, %v2502_v7  ;;  %3236 = vmatmul.msk.bf16.vlgmr.msra.gmra.mxu2 %vm1522_vm2, %v2528_v6 }
 0x90c   : > { %3235 = vmatmul.msk.bf16.vlgmr.msra.gmra.mxu1 %vm1522_vm2, %v2527_v12 }
 0x90f   : > { %v2523_v49 = vpop.f32.mrf.mxu2 }
 0x911   : > { %v2504_v3 = vpop.f32.mrf.mxu1 }
 0x975   : > { %v2563_v5 = vpop.f32.mrf.mxu0 }
 0x976   : > { %v2606_v16 = vsel %vm1120_vm0, %v2563_v5, 0.0 }
 0x97d   : > { %v2565_v10 = vpop.f32.mrf.mxu0 }
 0x985   : > { %v2544_v9 = vpop.f32.mrf.mxu3 }
 0x986   : > { %v2605_v11 = vsel %vm1120_vm0, %v2544_v9, 0.0 }
 0x987   : > { %v2607_v20 = vadd.f32 %v2606_v16, %v2605_v11 }
 0x989   : > { %v2582_v15 = vpop.f32.mrf.mxu1 }
 0x98a   : > { %v2608_v17 = vsel %vm1120_vm0, %v2582_v15, 0.0 }
 0x98b   : > { %v2609_v21 = vadd.f32 %v2608_v17, %v2607_v20 }
 0x98d   : > { %v2546_v23 = vpop.f32.mrf.mxu3  ;;  %v2601_v24 = vpop.f32.mrf.mxu2 }
 0x98e   : > { %v2610_v25 = vsel %vm1120_vm0, %v2601_v24, 0.0 }
 0x98f   : > { %v2611_v26 = vadd.f32 %v2610_v25, %v2609_v21 }
 0x991   : > { %v2615_v27 = vadd.f32 %v3526_v19, %v2611_v26  ;;  %v2584_v28 = vpop.f32.mrf.mxu1 }
 0x993   : > { %v2616_v29 = vadd.f32 %v2615_v27, %v4831_v0  ;;  %v3279_v0 = vld [vmem:[%s5253_s10] sm:$0xff] }
 0x994   : > { %2689 = vmatpush.bf16.msra.mxu3 %v3279_v0 }
 0x995   : > { %v2603_v30 = vpop.f32.mrf.mxu2  ;;  %v2617_v31 = vsel %vm1120_vm0, %v2616_v29, 0.0 }
 0x996   : > { %2618 = vadd.xlane.f32.xlu2 %v2617_v31 }
 0xa09   : > { %v2619_v32 = vpop.xlane.xlu2 %2618 }
 0xa0a   : > { %v2620_v34 = vmul.f32 %v2619_v32, %v4818_v42 }
 0xa0c   : > { %v2621_v35 = vsub.f32 %v2616_v29, %v2620_v34 }
 0xa0e   : > { %v2622_v36 = vmul.f32 %v2621_v35, %v2621_v35 }
 0xa10   : > { %v2623_v33 = vsel %vm1120_vm0, %v2622_v36, 0.0 }
 0xa11   : > { %2624 = vadd.xlane.f32.xlu1 %v2623_v33 }
 0xa84   : > { %v2625_v40 = vpop.xlane.xlu1 %2624 }
 0xa85   : > { %v2626_v41 = vmul.f32 %v2625_v40, %v4818_v42 }
 0xa87   : > { %v2627_v44 = vadd.f32 1e-05, %v2626_v41 }
 0xa89   : > { %3569 = vrsqrt.f32 %v2627_v44  ;;  %vm2634_vm12 = vweird.f32 %v2627_v44 }
 0xa8f   : > { %v3570_v45 = vpop.eup %3569 }
 0xa90   : > { %v2629_v46 = vmul.f32 %v3570_v45, %v2627_v44  ;;  %vm2635_vm11 = vweird.f32 %v3570_v45 }
 0xa91   : > { %vm2636_vm13 = vmor %vm2634_vm12, %vm2635_vm11 }
 0xa92   : > { %v2630_v4 = vmul.f32 %v3570_v45, %v2629_v46 }
 0xa94   : > { %v2631_v47 = vmul.f32 0.5, %v2630_v4 }
 0xa96   : > { %v2632_v48 = vsub.f32 1.5, %v2631_v47 }
 0xa98   : > { %v2633_v8 = vmul.f32 %v3570_v45, %v2632_v48 }
 0xa9a   : > { %v2637_v51 = vsel %vm2636_vm13, %v3570_v45, %v2633_v8 }
 0xa9b   : > { %v2638_v52 = vmul.f32 %v2637_v51, %v2621_v35 }
 0xa9d   : > { %v2642_v13 = vmul.f32 %v3527_v50, %v2638_v52 }
 0xa9f   : > { %v2646_v53 = vadd.f32 %v3528_v14, %v2642_v13 }
 0xaa1   : > { %v2663_v54 = vpack.c.bf16 %v2646_v53, %v2646_v53 }
 0xaa3   : > { %3245 = vmatmul.msk.bf16.vlgmr.msra.gmra.mxu3 %vm1120_vm0, %v2663_v54 }
 0xb26   : > { %v2691_v56 = vpop.f32.mrf.mxu3 }
 0xb27   : > { %v2692_v57 = vadd.f32 %v3529_v55, %v2691_v56 }
 0xb29   : > { %v2695_v58 = vmax.f32 %v2692_v57, 0.0 }
 0xb2b   : > { %v2696_v2 = vpack.c.bf16 %v2695_v58, %v2695_v58 }
 0xb2d   : > { %3262 = vmatmul.msk.bf16.vlgmr.msrb.gmra.mxu0 %vm2724_vm14, %v2696_v2 }
 0xb2e   : > { %v2693_v38 = vpop.f32.mrf.mxu3 }
 0xbaa   : > { %v2737_v60 = vpop.f32.mrf.mxu0 }
 0xbab   : > { %v2738_v61 = vadd.f32 %v3530_v59, %v2737_v60 }
 0xbad   : > { %v2741_v62 = vadd.f32 %v2738_v61, %v2646_v53 }
 0xbaf   : > { %v2742_v63 = vsel %vm1120_vm0, %v2741_v62, 0.0 }
 0xbb0   : > { %2743 = vadd.xlane.f32.xlu1 %v2742_v63 }
 0xbb2   : > { %v2739_v1 = vpop.f32.mrf.mxu0 }
 0xc23   : > { %v2744_v6 = vpop.xlane.xlu1 %2743 }
 0xc24   : > { %v2745_v7 = vmul.f32 %v2744_v6, %v4818_v42 }
 0xc26   : > { %v2746_v12 = vsub.f32 %v2741_v62, %v2745_v7 }
 0xc28   : > { %v2747_v49 = vmul.f32 %v2746_v12, %v2746_v12 }
 0xc2a   : > { %v2748_v3 = vsel %vm1120_vm0, %v2747_v49, 0.0 }
 0xc2b   : > { %2749 = vadd.xlane.f32.xlu1 %v2748_v3 }
 0xc2c   : > { %4050 = shalt.err (!%p4047_p12)
}
 0xc2d   : > { %s4206_s16 = smov 4   ;;  %s5258_s26 = smov 64  }
 0xc2e   : > { %3344 = dma.vmem_to_hbm [thread:$0]  (%p4484_p0), %s2820_s23, 256, %s2822_s4, %s5084_s5, %s5258_s26, %s5258_s26, %s4206_s16  }
 0xc2f   : > { %s5259_s15 = sld [smem:[#allocation67_spill]]  ;;  %s2836_s2 = sshll.u32 %s5015_s30, 4  ;;  %s2837_s2 = int_to_ptr.vmem [resolvable:$true] %s2836_s2 }
 0xc35   : > { %s2835_s1 = scalar_lea.hbm %s5259_s15, %s3285_s18  ;;  %s4071_s10 = scalar_lea.hbm %s5259_s15, 32 }
 0xc36   : > { %s2838_s17 = sshll.u32 %s2835_s1, 4  ;;  %s2839_s17 = int_to_ptr.hbm [resolvable:$true] %s2838_s17 }
 0xc37   : > { %s4065_s19 = sshra.s32 %s2839_s17, 4  ;;  %s4066_s19 = int_to_ptr.hbm [resolvable:$true] %s4065_s19 }
 0xc38   : > { %s4067_s24 = scalar_lea.hbm %s4066_s19, 16  ;;  %p4072_p5 = scmp.lt.s32.totalorder %s4066_s19, %s5259_s15 }
 0xc39   : > { %p4068_p4 = scmp.ne.s32.totalorder %s4066_s19, %s4067_s24  ;;  %p4073_p3 = scmp.lt.s32.totalorder %s4071_s10, %s4067_s24 }
 0xc3b   : > { %p4069_p11 = pnand %p4068_p4, %p4484_p0  ;;  %p4074_p1 = por %p4073_p3, %p4072_p5 }
 0xc3d   : > { %p4070_p2 = pneg %p4069_p11 }
 0xc3f   : > { %p4075_p13 = pnand %p4074_p1, %p4070_p2 }
 0xc41   : > { %4078 = shalt.err (!%p4075_p13)
}
 0xc42   : > { %3345 = dma.vmem_to_hbm [thread:$0]  (%p4484_p0), %s2837_s2, 256, %s2839_s17, %s5084_s5, %s5258_s26, %s5258_s26, %s4206_s16  }
 0xc43   : > { %s3181_s1 = sshll.u32 %s4537_s13, 3  ;;  %s3266_s30 = sshll.u32 %s4366_s9, 3 }
 0xc44   : > { %s5260_s6 = sld [smem:[#allocation63_spill]]  ;;  %s1073_s9 = scalar_lea.vmem [#allocation26], %s3181_s1 }
 0xc45   : > { %s5261_s16 = sld [smem:[#allocation65_spill]]  ;;  %s2805_s24 = sshll.u32 %s1073_s9, 4  ;;  %s2806_s24 = int_to_ptr.vmem [resolvable:$true] %s2805_s24 }
 0xc46   : > { %s5262_s19 = sld [smem:[#allocation64_spill]]  ;;  %s2783_s20 = scalar_lea.sflag [#allocation4], %s4537_s13 }
 0xc4a   : > { %v3531_v23 = vld [vmem:[%s5260_s6] ss:$0 sm:$0xff] }
 0xc4b   : > { %s2803_s26 = scalar_lea.hbm %s5261_s16, %s3266_s30  ;;  %s4099_s1 = scalar_lea.hbm %s5261_s16, 16 }
 0xc4c   : > { %v3532_v19 = vld [vmem:[%s5262_s19] ss:$0 sm:$0xff]  ;;  %s2807_s29 = sshll.u32 %s2803_s26, 4  ;;  %s2808_s29 = int_to_ptr.hbm [resolvable:$true] %s2807_s29 }
 0xc4d   : > { %s4093_s23 = sshra.s32 %s2808_s29, 4  ;;  %s4094_s23 = int_to_ptr.hbm [resolvable:$true] %s4093_s23 }
 0xc4e   : > { %s4095_s4 = scalar_lea.hbm %s4094_s23, 8  ;;  %p4100_p10 = scmp.lt.s32.totalorder %s4094_s23, %s5261_s16 }
 0xc4f   : > { %p4096_p7 = scmp.ne.s32.totalorder %s4094_s23, %s4095_s4  ;;  %p4101_p12 = scmp.lt.s32.totalorder %s4099_s1, %s4095_s4 }
 0xc51   : > { %p4097_p9 = pnand %p4096_p7, %p4484_p0  ;;  %p4102_p4 = por %p4101_p12, %p4100_p10 }
 0xc53   : > { %p4098_p8 = pneg %p4097_p9 }
 0xc55   : > { %p4103_p11 = pnand %p4102_p4, %p4098_p8 }
 0xc9e   : > { %v2750_v5 = vpop.xlane.xlu1 %2749 }
 0xc9f   : > { %v2751_v10 = vmul.f32 %v2750_v5, %v4818_v42 }
 0xca1   : > { %v2752_v9 = vadd.f32 1e-05, %v2751_v10 }
 0xca3   : > { %3571 = vrsqrt.f32 %v2752_v9  ;;  %vm2759_vm1 = vweird.f32 %v2752_v9 }
 0xca9   : > { %v3572_v11 = vpop.eup %3571 }
 0xcaa   : > { %v2754_v15 = vmul.f32 %v3572_v11, %v2752_v9  ;;  %vm2760_vm15 = vweird.f32 %v3572_v11 }
 0xcab   : > { %vm2761_vm2 = vmor %vm2759_vm1, %vm2760_vm15 }
 0xcac   : > { %v2755_v16 = vmul.f32 %v3572_v11, %v2754_v15 }
 0xcae   : > { %v2756_v17 = vmul.f32 0.5, %v2755_v16 }
 0xcb0   : > { %v2757_v20 = vsub.f32 1.5, %v2756_v17 }
 0xcb2   : > { %v2758_v21 = vmul.f32 %v3572_v11, %v2757_v20 }
 0xcb4   : > { %v2762_v42 = vsel %vm2761_vm2, %v3572_v11, %v2758_v21 }
 0xcb5   : > { %v2763_v24 = vmul.f32 %v2762_v42, %v2746_v12 }
 0xcb7   : > { %v2767_v25 = vmul.f32 %v3531_v23, %v2763_v24 }
 0xcb9   : > { %v2771_v26 = vadd.f32 %v3532_v19, %v2767_v25 }
 0xcbb   : > { %2772 = vst.msk [vmem:[%s1073_s9] sm:$0xff] %vm1120_vm0, %v2771_v26 }
 0xcbc   : > { %4106 = shalt.err (!%p4103_p11)
}
 0xcbd   : > { %3343 = dma.vmem_to_hbm [thread:$0]  (%p4484_p0), %s2806_s24, 128, %s2808_s29, %s2783_s20  }
 0xcbe PF: > { %s2853_s13 = sand.u32 1, %s4169_s27   ;;  %p5263_p2 = scmp.ge.s32.totalorder %s4181_s28, 2 }
 0xcbf   : > { %s2854_s2 = scalar_lea.sflag [#allocation4], %s2853_s13 }
 0xcc0   : > { %p3397_p5 = pnand %p5263_p2, %p4492_p6 }
 0xcc2   : > { %p3398_p3 = pneg %p3397_p5 }
 0xcc4   : > { %4160 = dma.done.wait (%p3398_p3), %s2854_s2, 128  }
 0xcc5   : > { %4162 = vsyncadd (%p3398_p3), %s2854_s2, 4294967168  ;;  %s5264_s5 = sadd.s32 4294967294, %s4181_s28  }
 0xcc6   : > { %s2863_s26 = sand.u32 1, %s5264_s5  }
 0xcc7   : > { %s2864_s11 = scalar_lea.sflag [#allocation28], %s2863_s26 }
 0xcc8   : > { %4164 = dma.done.wait (%p3398_p3), %s2864_s11, 512  }
 0xcc9   : > { %4166 = vsyncadd (%p3398_p3), %s2864_s11, 4294966784  ;;  %p52_p0 = scmp.ge.s32.totalorder %s4460_s0, 4   ;;  %s5265_s27 = smov %s4173_s3 }
 0xcca   : > { %s5266_s3 = smov %s4177_s7  ;;  %s5267_s7 = smov %s4472_s8 }
 0xccb   : > { %s5268_s28 = smov %s4460_s0  ;;  %54 = sbr.rel (!%p52_p0) target bundleno = 43 (0x2b), region = 264 }
 0xcd0   :  { %2880 = vsyncpa [#allocation3], 1 }
 0xcd1   :  { %2882 = vsyncpa [#allocation3 + $0x1], 1 }
 0xcd2   :  { %2883 = vsyncpa [#allocation6], 1 }
 0xcd3   :  { %2885 = vsyncpa [#allocation6 + $0x1], 1 }
 0xcd4   :  { %2886 = vsyncpa [#allocation9], 1 }
 0xcd5   :  { %2887 = vsyncpa [#allocation12], 1 }
 0xcd6   :  { %2888 = vsyncpa [#allocation15], 1 }
 0xcd7   :  { %2889 = vsyncpa [#allocation18], 1 }
 0xcd8   :  { %2890 = vsyncpa [#allocation21], 1 }
 0xcd9   :  { %2891 = vsyncpa [#allocation24], 1 }
 0xcda   :  { %2892 = vsyncpa [#allocation4], 1 }
 0xcdb   :  { %2894 = vsyncpa [#allocation4 + $0x1], 1 }
 0xcdc   :  { %2895 = vsyncpa [#allocation28], 1 }
 0xcdd   :  { %2897 = vsyncpa [#allocation28 + $0x1], 1 }

</bundles_post_ra>
